<compile_context>
chip_gen: v7x
topology: tpu7x:2x2x1
jax: 0.10.0
libtpu: 0.0.40
codegen_flags: <defaults>
</compile_context>

<pallas_src>
import numpy as np
import jax
import jax.numpy as jnp
from jax.experimental import pallas as pl
from jax.experimental.pallas import tpu as pltpu

BN_EPS = 1e-5

# Tap order for the wrapper-side 9-tap window packing: centre tap first so the
# raw pixel channels (needed by the shortcut) are lanes [0, Cin) of the packed
# operand (a zero-offset slice, no lane shuffling inside the kernel).
_TAP_ORDER = ((1, 1), (0, 0), (0, 1), (0, 2), (1, 0), (1, 2), (2, 0), (2, 1), (2, 2))


# ----------------------------- fused Pallas kernel -----------------------------

def _make_block_kernel(*, H, W, Cin, Cout, stride, projection, im2col):
    """Fused ResidualBlock forward for one image (one grid step)."""
    Wp1 = W + 2                    # width of the flat, width-padded conv1 layout
    Ho = (H - 1) // stride + 1
    Wo = (W - 1) // stride + 1
    Wp2 = Wo + 2                   # width of the flat conv2 / output layout
    m1 = H * Wp1                   # dense (stride-1) conv1 output rows
    m2 = Ho * Wp2                  # conv2 / output rows
    pad0 = Wp2 + 1                 # flat halo rows above/below the conv2 input

    def kernel(*refs):
        it = iter(refs)
        x_ref = next(it)
        w1_ref = next(it); s1_ref = next(it); b1_ref = next(it)
        w2_ref = next(it); s2_ref = next(it); b2_ref = next(it)
        sel_ref = next(it) if stride > 1 else None
        if projection:
            wsc_ref = next(it); ssc_ref = next(it); bsc_ref = next(it)
        o_ref = next(it)
        y1s_ref = next(it)

        # ---- conv1 (3x3, pad 1, computed dense at stride 1) + BN1 + ReLU ----
        if im2col:
            x_all = x_ref[0]                                      # (m1, 9*Cin) bf16
            acc1 = jnp.dot(x_all, w1_ref[...],
                           preferred_element_type=jnp.float32)    # one deep-K dot
            x_center = x_all[:, :Cin]                             # raw pixels (centre tap)
        else:
            acc1 = None
            for ki in range(3):
                for kj in range(3):
                    start = ki * Wp1 + kj                         # static offsets
                    win = x_ref[0, start:start + m1, :]
                    part = jnp.dot(win, w1_ref[ki * 3 + kj],
                                   preferred_element_type=jnp.float32)
                    acc1 = part if acc1 is None else acc1 + part
            x_center = x_ref[0, Wp1 + 1:Wp1 + 1 + m1, :]
        y1 = jnp.maximum(acc1 * s1_ref[...] + b1_ref[...], 0.0)   # (m1, Cout) f32

        # ---- stride handling: zero junk cols (s=1) / MXU subsample (s>1) ----
        if stride == 1:
            col = jax.lax.broadcasted_iota(jnp.int32, (m1, 1), 0) % Wp1
            y1_body = jnp.where(col < W, y1, 0.0).astype(jnp.bfloat16)
            xs = x_center                                          # (m2, Cin), m2 == m1
        else:
            # TODO(synk): conv1 is computed densely then subsampled (stride^2
            # extra MXU work); a strided-output conv1 variant would remove it.
            sel = sel_ref[...]                                     # (m2, m1) 0/1 bf16
            y1_body = jnp.dot(sel, y1.astype(jnp.bfloat16),
                              preferred_element_type=jnp.float32).astype(jnp.bfloat16)
            xs = jnp.dot(sel, x_center,
                         preferred_element_type=jnp.float32).astype(jnp.bfloat16)

        # ---- stage y1 in VMEM (never touches HBM); halo rows = conv2 zero pad ----
        halo = jnp.zeros((pad0, Cout), jnp.bfloat16)
        y1s_ref[0:pad0, :] = halo
        y1s_ref[pad0 + m2:pad0 + m2 + pad0, :] = halo
        y1s_ref[pad0:pad0 + m2, :] = y1_body

        # ---- conv2 (3x3, pad 1) + BN2 ----
        acc2 = None
        for ki in range(3):
            for kj in range(3):
                start = ki * Wp2 + kj
                win = y1s_ref[start:start + m2, :]
                part = jnp.dot(win, w2_ref[ki * 3 + kj],
                               preferred_element_type=jnp.float32)
                acc2 = part if acc2 is None else acc2 + part
        main = acc2 * s2_ref[...] + b2_ref[...]

        # ---- shortcut + add + ReLU (output stays f32 to match the module) ----
        if projection:
            sc = jnp.dot(xs, wsc_ref[...], preferred_element_type=jnp.float32)
            sc = sc * ssc_ref[...] + bsc_ref[...]
        else:
            sc = xs.astype(jnp.float32)          # identity: Cin == Cout, pure VPU add
        o_ref[0] = jnp.maximum(main + sc, 0.0)

    return kernel


# ----------------------------- parameter / input prep -----------------------------

def _pack_w1_im2col(w):
    """(Cout, Cin, 3, 3) -> (9*Cin, Cout) bf16, K ordered as _TAP_ORDER."""
    t = jnp.transpose(w, (2, 3, 1, 0))                      # (kh, kw, Cin, Cout)
    slabs = [t[ki, kj] for (ki, kj) in _TAP_ORDER]
    return jnp.concatenate(slabs, axis=0).astype(jnp.bfloat16)


def _pack_w3x3_taps(w):
    """(Cout, Cin, 3, 3) -> (9, Cin, Cout) bf16 per-tap slabs, tap = ki*3 + kj."""
    Cout, Cin = w.shape[0], w.shape[1]
    return jnp.transpose(w, (2, 3, 1, 0)).reshape(9, Cin, Cout).astype(jnp.bfloat16)


def _fold_bn(bn_params):
    """Eval-mode BatchNorm folded to a per-channel (scale, bias) pair (f32)."""
    gamma, beta, mean, var = bn_params
    scale = gamma / jnp.sqrt(var + BN_EPS)
    bias = beta - mean * scale
    return (scale.reshape(1, -1).astype(jnp.float32),
            bias.reshape(1, -1).astype(jnp.float32))


def _subsample_matrix(H, W, stride):
    """0/1 matrix mapping the dense stride-1 flat layout to the strided output
    layout (applied on the MXU inside the kernel; it also zeroes the junk
    columns of the target layout)."""
    Wp1 = W + 2
    Ho = (H - 1) // stride + 1
    Wo = (W - 1) // stride + 1
    Wp2 = Wo + 2
    S = np.zeros((Ho * Wp2, H * Wp1), np.float32)
    ro = np.repeat(np.arange(Ho), Wo)
    co = np.tile(np.arange(Wo), Ho)
    S[ro * Wp2 + co, ro * stride * Wp1 + co * stride] = 1.0
    return jnp.asarray(S, dtype=jnp.bfloat16)


def _compiler_params(vmem_need_bytes):
    """Generation-aware scoped-VMEM budget with headroom for compiler scratch."""
    try:
        cap = int(pltpu.get_tpu_info().vmem_capacity_bytes)
    except Exception:
        cap = 64 << 20                     # conservative: v7x physical VMEM per TC
    limit = min(max(int(vmem_need_bytes), 16 << 20), cap - (12 << 20))
    return pltpu.CompilerParams(dimension_semantics=("parallel",),
                                vmem_limit_bytes=int(limit))


# ----------------------------- forward -----------------------------

def residual_block_forward(x_nchw, params, stride):
    """Equivalent of ResidualBlock.forward (eval-mode BN). Input/output: NCHW f32."""
    x = jnp.transpose(x_nchw, (0, 2, 3, 1)).astype(jnp.float32)   # NHWC (layout plumbing)
    N, H, W, Cin = x.shape
    Cout = params["w1"].shape[0]
    projection = params["wsc"] is not None
    if not projection and (stride != 1 or Cin != Cout):
        raise ValueError("identity shortcut requires stride == 1 and "
                         "inchannel == outchannel")

    Wp1 = W + 2
    Ho = (H - 1) // stride + 1
    Wo = (W - 1) // stride + 1
    Wp2 = Wo + 2
    m1 = H * Wp1
    m2 = Ho * Wp2
    rows1 = (H + 3) * Wp1
    rows2 = m2 + 2 * (Wp2 + 1)

    # bf16 MXU operands (f32 accumulation), width-padded row-major flat layout.
    x_bf = x.astype(jnp.bfloat16)
    xp1 = jnp.pad(x_bf, ((0, 0), (1, 2), (1, 1), (0, 0))).reshape(N, rows1, Cin)

    # Deep-K packing of conv1 only when it is bytes-cheap (tiny Cin); otherwise
    # keep the 1x layout and accumulate 9 shifted-window dots (K = Cin is deep).
    im2col = 9 * Cin <= 256
    if im2col:
        slabs = [jax.lax.slice_in_dim(xp1, ki * Wp1 + kj, ki * Wp1 + kj + m1, axis=1)
                 for (ki, kj) in _TAP_ORDER]
        x_in = jnp.concatenate(slabs, axis=-1)                    # (N, m1, 9*Cin)
        w1p = _pack_w1_im2col(params["w1"])                        # (9*Cin, Cout)
    else:
        x_in = xp1                                                 # (N, rows1, Cin)
        w1p = _pack_w3x3_taps(params["w1"])                        # (9, Cin, Cout)

    w2p = _pack_w3x3_taps(params["w2"])                            # (9, Cout, Cout)
    s1, b1 = _fold_bn(params["bn1"])
    s2, b2 = _fold_bn(params["bn2"])

    inputs = [x_in, w1p, s1, b1, w2p, s2, b2]
    in_specs = [pl.BlockSpec((1,) + tuple(x_in.shape[1:]), lambda n: (n, 0, 0))]
    if im2col:
        in_specs.append(pl.BlockSpec(tuple(w1p.shape), lambda n: (0, 0)))
    else:
        in_specs.append(pl.BlockSpec(tuple(w1p.shape), lambda n: (0, 0, 0)))
    in_specs += [
        pl.BlockSpec(tuple(s1.shape), lambda n: (0, 0)),
        pl.BlockSpec(tuple(b1.shape), lambda n: (0, 0)),
        pl.BlockSpec(tuple(w2p.shape), lambda n: (0, 0, 0)),
        pl.BlockSpec(tuple(s2.shape), lambda n: (0, 0)),
        pl.BlockSpec(tuple(b2.shape), lambda n: (0, 0)),
    ]

    flops = 2 * N * (m1 * 9 * Cin * Cout + m2 * 9 * Cout * Cout)
    const_bytes = (int(w1p.size) + int(w2p.size)) * 2 + 4 * Cout * 4 * 2
    bytes_accessed = int(np.prod(x_in.shape)) * 2 + N * m2 * Cout * 4 + const_bytes

    if stride > 1:
        sel = _subsample_matrix(H, W, stride)
        inputs.append(sel)
        in_specs.append(pl.BlockSpec(tuple(sel.shape), lambda n: (0, 0)))
        const_bytes += int(sel.size) * 2
        bytes_accessed += int(sel.size) * 2
        flops += 2 * N * m2 * m1 * (Cout + Cin)
    if projection:
        wsc = jnp.transpose(params["wsc"], (2, 3, 1, 0)).reshape(Cin, Cout)
        wsc = wsc.astype(jnp.bfloat16)
        ssc, bsc = _fold_bn(params["bnsc"])
        inputs += [wsc, ssc, bsc]
        in_specs += [pl.BlockSpec((Cin, Cout), lambda n: (0, 0)),
                     pl.BlockSpec(tuple(ssc.shape), lambda n: (0, 0)),
                     pl.BlockSpec(tuple(bsc.shape), lambda n: (0, 0))]
        const_bytes += Cin * Cout * 2 + 2 * Cout * 4
        bytes_accessed += Cin * Cout * 2 + 2 * Cout * 4
        flops += 2 * N * m2 * Cin * Cout

    in_blk_bytes = int(np.prod(x_in.shape[1:])) * 2
    out_blk_bytes = m2 * Cout * 4
    scratch_bytes = rows2 * Cout * 2
    vmem_need = (2 * (in_blk_bytes + out_blk_bytes) + 2 * const_bytes
                 + scratch_bytes + (8 << 20))

    kern = _make_block_kernel(H=H, W=W, Cin=Cin, Cout=Cout, stride=stride,
                              projection=projection, im2col=im2col)

    out = pl.pallas_call(
        kern,
        out_shape=jax.ShapeDtypeStruct((N, m2, Cout), jnp.float32),
        grid_spec=pltpu.PrefetchScalarGridSpec(
            num_scalar_prefetch=0,
            grid=(N,),
            in_specs=in_specs,
            out_specs=pl.BlockSpec((1, m2, Cout), lambda n: (n, 0, 0)),
            scratch_shapes=[pltpu.VMEM((rows2, Cout), jnp.bfloat16)],
        ),
        compiler_params=_compiler_params(vmem_need),
        cost_estimate=pl.CostEstimate(flops=int(flops), transcendentals=0,
                                      bytes_accessed=int(bytes_accessed)),
    )(*inputs)

    out = out.reshape(N, Ho, Wp2, Cout)[:, :, :Wo, :]
    return jnp.transpose(out, (0, 3, 1, 2))                         # back to NCHW


# ----------------------------- deterministic params -----------------------------

def init_params(key, inchannel, outchannel, use_shortcut):
    ks = jax.random.split(key, 8)

    def bn(k, c):
        kg, kb, km, kv = jax.random.split(k, 4)
        gamma = 1.0 + 0.1 * jax.random.normal(kg, (c,), jnp.float32)
        beta = 0.1 * jax.random.normal(kb, (c,), jnp.float32)
        mean = 0.1 * jax.random.normal(km, (c,), jnp.float32)
        var = 0.5 + 0.5 * jnp.abs(jax.random.normal(kv, (c,), jnp.float32))
        return (gamma, beta, mean, var)

    p = {
        "w1": 0.1 * jax.random.normal(ks[0], (outchannel, inchannel, 3, 3), jnp.float32),
        "bn1": bn(ks[1], outchannel),
        "w2": 0.1 * jax.random.normal(ks[2], (outchannel, outchannel, 3, 3), jnp.float32),
        "bn2": bn(ks[3], outchannel),
        "wsc": None,
        "bnsc": None,
    }
    if use_shortcut:
        p["wsc"] = 0.1 * jax.random.normal(ks[4], (outchannel, inchannel, 1, 1), jnp.float32)
        p["bnsc"] = bn(ks[5], outchannel)
    return p


# ----------------------------- pure-JAX reference -----------------------------

def _q(t):
    # bf16 operand/storage rounding, identical to what the Pallas path applies
    # (bf16 MXU inputs, f32 accumulation). Keeps the comparison tight.
    return t.astype(jnp.bfloat16).astype(jnp.float32)


def _conv_ref(x_nhwc, w_torch, stride, padding):
    w = jnp.transpose(w_torch, (2, 3, 1, 0))  # HWIO
    return jax.lax.conv_general_dilated(
        x_nhwc, w, (stride, stride), padding,
        dimension_numbers=("NHWC", "HWIO", "NHWC"))


def reference_forward(x_nchw, params, stride):
    x = _q(jnp.transpose(x_nchw, (0, 2, 3, 1)).astype(jnp.float32))

    def bn(y, bnp):
        g, b, m, v = bnp
        return (y - m) / jnp.sqrt(v + BN_EPS) * g + b

    y = _conv_ref(x, _q(params["w1"]), stride, ((1, 1), (1, 1)))
    y = _q(jnp.maximum(bn(y, params["bn1"]), 0.0))
    y = _conv_ref(y, _q(params["w2"]), 1, ((1, 1), (1, 1)))
    y = bn(y, params["bn2"])
    if params["wsc"] is not None:
        s = _conv_ref(x, _q(params["wsc"]), stride, ((0, 0), (0, 0)))
        s = bn(s, params["bnsc"])
    else:
        s = x
    out = jnp.maximum(y + s, 0.0)
    return jnp.transpose(out, (0, 3, 1, 2))


# ----------------------------- main -----------------------------

if __name__ == "__main__":
    root = jax.random.PRNGKey(0)
    fwd = jax.jit(residual_block_forward, static_argnums=2)

    configs = [
        # (N, Cin, Cout, H, W, stride)
        (2, 4, 8, 16, 16, 1),   # projection shortcut (Cin != Cout)
        (2, 8, 8, 16, 16, 1),   # identity shortcut (pure VPU add)
        (2, 4, 8, 16, 16, 2),   # strided projection shortcut
    ]
    for i, (N, Cin, Cout, H, W, stride) in enumerate(configs):
        kx, kp = jax.random.split(jax.random.fold_in(root, i))
        x = jax.random.normal(kx, (N, Cin, H, W), dtype=jnp.float32)
        params = init_params(kp, Cin, Cout,
                             use_shortcut=(stride != 1 or Cin != Cout))

        out = jax.block_until_ready(fwd(x, params, stride))
        ref = jax.block_until_ready(reference_forward(x, params, stride))
        assert out.shape == ref.shape, (out.shape, ref.shape)
        np.testing.assert_allclose(np.asarray(out), np.asarray(ref),
                                   rtol=5e-3, atol=5e-3)

    print("KERNEL_OK")
</pallas_src>

<mosaic_0001>
module attributes {stable_mosaic.version = 11 : i64} {
  func.func @kernel(%arg0: i32, %arg1: memref<1x288x36xbf16, #tpu.memory_space<vmem>>, %arg2: memref<36x8xbf16, #tpu.memory_space<vmem>>, %arg3: memref<1x8xf32, #tpu.memory_space<vmem>>, %arg4: memref<1x8xf32, #tpu.memory_space<vmem>>, %arg5: memref<9x8x8xbf16, #tpu.memory_space<vmem>>, %arg6: memref<1x8xf32, #tpu.memory_space<vmem>>, %arg7: memref<1x8xf32, #tpu.memory_space<vmem>>, %arg8: memref<4x8xbf16, #tpu.memory_space<vmem>>, %arg9: memref<1x8xf32, #tpu.memory_space<vmem>>, %arg10: memref<1x8xf32, #tpu.memory_space<vmem>>, %arg11: memref<1x288x8xf32, #tpu.memory_space<vmem>>, %arg12: memref<326x8xbf16, #tpu.memory_space<vmem>>) attributes {dimension_semantics = [#tpu.dimension_semantics<parallel>], iteration_bounds = array<i64: 2>, scalar_prefetch = 0 : i64, scratch_operands = 1 : i64, tpu.core_type = #tpu.core_type<tc>, window_params = [{transform_indices = @transform_0, window_bounds = array<i64: 1, 288, 36>}, {pipeline_mode = #tpu.pipeline_mode<synchronous>, transform_indices = @transform_1, window_bounds = array<i64: 36, 8>}, {pipeline_mode = #tpu.pipeline_mode<synchronous>, transform_indices = @transform_2, window_bounds = array<i64: 1, 8>}, {pipeline_mode = #tpu.pipeline_mode<synchronous>, transform_indices = @transform_3, window_bounds = array<i64: 1, 8>}, {pipeline_mode = #tpu.pipeline_mode<synchronous>, transform_indices = @transform_4, window_bounds = array<i64: 9, 8, 8>}, {pipeline_mode = #tpu.pipeline_mode<synchronous>, transform_indices = @transform_5, window_bounds = array<i64: 1, 8>}, {pipeline_mode = #tpu.pipeline_mode<synchronous>, transform_indices = @transform_6, window_bounds = array<i64: 1, 8>}, {pipeline_mode = #tpu.pipeline_mode<synchronous>, transform_indices = @transform_7, window_bounds = array<i64: 4, 8>}, {pipeline_mode = #tpu.pipeline_mode<synchronous>, transform_indices = @transform_8, window_bounds = array<i64: 1, 8>}, {pipeline_mode = #tpu.pipeline_mode<synchronous>, transform_indices = @transform_9, window_bounds = array<i64: 1, 8>}, {transform_indices = @transform_10, window_bounds = array<i64: 1, 288, 8>}]} {
    %c0 = arith.constant 0 : index
    %c0_0 = arith.constant 0 : index
    %c0_1 = arith.constant 0 : index
    %0 = vector.load %arg1[%c0, %c0_0, %c0_1] : memref<1x288x36xbf16, #tpu.memory_space<vmem>>, vector<1x288x36xbf16>
    %1 = vector.shape_cast %0 : vector<1x288x36xbf16> to vector<288x36xbf16>
    %c0_2 = arith.constant 0 : index
    %c0_3 = arith.constant 0 : index
    %2 = vector.load %arg2[%c0_2, %c0_3] : memref<36x8xbf16, #tpu.memory_space<vmem>>, vector<36x8xbf16>
    %cst = arith.constant dense<0.000000e+00> : vector<288x8xf32>
    %3 = tpu.matmul %1, %2, %cst {dimension_numbers = #tpu.dot_dimension_numbers<[1], [0], [0], [1], [0, 0, 1, 1], [], []>} : vector<288x36xbf16>, vector<36x8xbf16>, vector<288x8xf32> -> vector<288x8xf32>
    %4 = vector.extract_strided_slice %1 {offsets = [0, 0], sizes = [288, 4], strides = [1, 1]} : vector<288x36xbf16> to vector<288x4xbf16>
    %c0_4 = arith.constant 0 : index
    %c0_5 = arith.constant 0 : index
    %5 = vector.load %arg3[%c0_4, %c0_5] : memref<1x8xf32, #tpu.memory_space<vmem>>, vector<1x8xf32>
    %6 = vector.broadcast %5 : vector<1x8xf32> to vector<288x8xf32>
    %7 = arith.mulf %3, %6 : vector<288x8xf32>
    %c0_6 = arith.constant 0 : index
    %c0_7 = arith.constant 0 : index
    %8 = vector.load %arg4[%c0_6, %c0_7] : memref<1x8xf32, #tpu.memory_space<vmem>>, vector<1x8xf32>
    %9 = vector.broadcast %8 : vector<1x8xf32> to vector<288x8xf32>
    %10 = arith.addf %7, %9 : vector<288x8xf32>
    %cst_8 = arith.constant 0.000000e+00 : f32
    %11 = vector.broadcast %cst_8 : f32 to vector<288x8xf32>
    %12 = arith.maximumf %10, %11 : vector<288x8xf32>
    %13 = tpu.iota {dimensions = array<i32: 0>} : vector<288x1xi32>
    %c18_i32 = arith.constant 18 : i32
    %c0_i32 = arith.constant 0 : i32
    %14 = arith.cmpi eq, %c18_i32, %c0_i32 : i32
    %c1_i32 = arith.constant 1 : i32
    %15 = arith.select %14, %c1_i32, %c18_i32 : i32
    %16 = vector.broadcast %15 : i32 to vector<288x1xi32>
    %17 = arith.remsi %13, %16 : vector<288x1xi32>
    %c0_i32_9 = arith.constant 0 : i32
    %18 = vector.broadcast %c0_i32_9 : i32 to vector<288x1xi32>
    %19 = arith.cmpi ne, %17, %18 : vector<288x1xi32>
    %c0_i32_10 = arith.constant 0 : i32
    %20 = vector.broadcast %c0_i32_10 : i32 to vector<288x1xi32>
    %21 = arith.cmpi slt, %17, %20 : vector<288x1xi32>
    %c0_i32_11 = arith.constant 0 : i32
    %22 = arith.cmpi slt, %15, %c0_i32_11 : i32
    %23 = vector.broadcast %22 : i1 to vector<288x1xi1>
    %24 = vector.broadcast %23 : vector<288x1xi1> to vector<288x1xi1>
    %25 = arith.xori %21, %24 : vector<288x1xi1>
    %26 = arith.andi %25, %19 : vector<288x1xi1>
    %27 = vector.broadcast %15 : i32 to vector<288x1xi32>
    %28 = arith.addi %17, %27 : vector<288x1xi32>
    %29 = arith.select %26, %28, %17 : vector<288x1xi1>, vector<288x1xi32>
    %c16_i32 = arith.constant 16 : i32
    %30 = vector.broadcast %c16_i32 : i32 to vector<288x1xi32>
    %31 = arith.cmpi slt, %29, %30 : vector<288x1xi32>
    %cst_12 = arith.constant 0.000000e+00 : f32
    %32 = vector.shape_cast %31 : vector<288x1xi1> to vector<288x1xi1>
    %33 = vector.broadcast %32 : vector<288x1xi1> to vector<288x8xi1>
    %34 = vector.broadcast %cst_12 : f32 to vector<288x8xf32>
    %35 = arith.select %33, %12, %34 : vector<288x8xi1>, vector<288x8xf32>
    %36 = arith.truncf %35 : vector<288x8xf32> to vector<288x8xbf16>
    %cst_13 = arith.constant 0.000000e+00 : bf16
    %37 = vector.broadcast %cst_13 : bf16 to vector<19x8xbf16>
    %c0_14 = arith.constant 0 : index
    %c0_15 = arith.constant 0 : index
    %38 = vector.load %arg12[%c0_14, %c0_15] : memref<326x8xbf16, #tpu.memory_space<vmem>>, vector<19x8xbf16>
    tpu.vector_store %arg12[%c0_14, %c0_15], %37 {strides = array<i32>} : memref<326x8xbf16, #tpu.memory_space<vmem>>, vector<19x8xbf16>,
    %c307 = arith.constant 307 : index
    %c0_16 = arith.constant 0 : index
    %39 = vector.load %arg12[%c307, %c0_16] : memref<326x8xbf16, #tpu.memory_space<vmem>>, vector<19x8xbf16>
    tpu.vector_store %arg12[%c307, %c0_16], %37 {strides = array<i32>} : memref<326x8xbf16, #tpu.memory_space<vmem>>, vector<19x8xbf16>,
    %c19 = arith.constant 19 : index
    %c0_17 = arith.constant 0 : index
    %40 = vector.load %arg12[%c19, %c0_17] : memref<326x8xbf16, #tpu.memory_space<vmem>>, vector<288x8xbf16>
    tpu.vector_store %arg12[%c19, %c0_17], %36 {strides = array<i32>} : memref<326x8xbf16, #tpu.memory_space<vmem>>, vector<288x8xbf16>,
    %c0_18 = arith.constant 0 : index
    %c0_19 = arith.constant 0 : index
    %41 = vector.load %arg12[%c0_18, %c0_19] : memref<326x8xbf16, #tpu.memory_space<vmem>>, vector<288x8xbf16>
    %c0_20 = arith.constant 0 : index
    %c0_21 = arith.constant 0 : index
    %c0_22 = arith.constant 0 : index
    %42 = vector.load %arg5[%c0_20, %c0_21, %c0_22] : memref<9x8x8xbf16, #tpu.memory_space<vmem>>, vector<1x8x8xbf16>
    %43 = vector.shape_cast %42 : vector<1x8x8xbf16> to vector<8x8xbf16>
    %cst_23 = arith.constant dense<0.000000e+00> : vector<288x8xf32>
    %44 = tpu.matmul %41, %43, %cst_23 {dimension_numbers = #tpu.dot_dimension_numbers<[1], [0], [0], [1], [0, 0, 1, 1], [], []>} : vector<288x8xbf16>, vector<8x8xbf16>, vector<288x8xf32> -> vector<288x8xf32>
    %c1 = arith.constant 1 : index
    %c0_24 = arith.constant 0 : index
    %45 = vector.load %arg12[%c1, %c0_24] : memref<326x8xbf16, #tpu.memory_space<vmem>>, vector<288x8xbf16>
    %c1_25 = arith.constant 1 : index
    %c0_26 = arith.constant 0 : index
    %c0_27 = arith.constant 0 : index
    %46 = vector.load %arg5[%c1_25, %c0_26, %c0_27] : memref<9x8x8xbf16, #tpu.memory_space<vmem>>, vector<1x8x8xbf16>
    %47 = vector.shape_cast %46 : vector<1x8x8xbf16> to vector<8x8xbf16>
    %cst_28 = arith.constant dense<0.000000e+00> : vector<288x8xf32>
    %48 = tpu.matmul %45, %47, %cst_28 {dimension_numbers = #tpu.dot_dimension_numbers<[1], [0], [0], [1], [0, 0, 1, 1], [], []>} : vector<288x8xbf16>, vector<8x8xbf16>, vector<288x8xf32> -> vector<288x8xf32>
    %49 = arith.addf %44, %48 : vector<288x8xf32>
    %c2 = arith.constant 2 : index
    %c0_29 = arith.constant 0 : index
    %50 = vector.load %arg12[%c2, %c0_29] : memref<326x8xbf16, #tpu.memory_space<vmem>>, vector<288x8xbf16>
    %c2_30 = arith.constant 2 : index
    %c0_31 = arith.constant 0 : index
    %c0_32 = arith.constant 0 : index
    %51 = vector.load %arg5[%c2_30, %c0_31, %c0_32] : memref<9x8x8xbf16, #tpu.memory_space<vmem>>, vector<1x8x8xbf16>
    %52 = vector.shape_cast %51 : vector<1x8x8xbf16> to vector<8x8xbf16>
    %cst_33 = arith.constant dense<0.000000e+00> : vector<288x8xf32>
    %53 = tpu.matmul %50, %52, %cst_33 {dimension_numbers = #tpu.dot_dimension_numbers<[1], [0], [0], [1], [0, 0, 1, 1], [], []>} : vector<288x8xbf16>, vector<8x8xbf16>, vector<288x8xf32> -> vector<288x8xf32>
    %54 = arith.addf %49, %53 : vector<288x8xf32>
    %c18 = arith.constant 18 : index
    %c0_34 = arith.constant 0 : index
    %55 = vector.load %arg12[%c18, %c0_34] : memref<326x8xbf16, #tpu.memory_space<vmem>>, vector<288x8xbf16>
    %c3 = arith.constant 3 : index
    %c0_35 = arith.constant 0 : index
    %c0_36 = arith.constant 0 : index
    %56 = vector.load %arg5[%c3, %c0_35, %c0_36] : memref<9x8x8xbf16, #tpu.memory_space<vmem>>, vector<1x8x8xbf16>
    %57 = vector.shape_cast %56 : vector<1x8x8xbf16> to vector<8x8xbf16>
    %cst_37 = arith.constant dense<0.000000e+00> : vector<288x8xf32>
    %58 = tpu.matmul %55, %57, %cst_37 {dimension_numbers = #tpu.dot_dimension_numbers<[1], [0], [0], [1], [0, 0, 1, 1], [], []>} : vector<288x8xbf16>, vector<8x8xbf16>, vector<288x8xf32> -> vector<288x8xf32>
    %59 = arith.addf %54, %58 : vector<288x8xf32>
    %c19_38 = arith.constant 19 : index
    %c0_39 = arith.constant 0 : index
    %60 = vector.load %arg12[%c19_38, %c0_39] : memref<326x8xbf16, #tpu.memory_space<vmem>>, vector<288x8xbf16>
    %c4 = arith.constant 4 : index
    %c0_40 = arith.constant 0 : index
    %c0_41 = arith.constant 0 : index
    %61 = vector.load %arg5[%c4, %c0_40, %c0_41] : memref<9x8x8xbf16, #tpu.memory_space<vmem>>, vector<1x8x8xbf16>
    %62 = vector.shape_cast %61 : vector<1x8x8xbf16> to vector<8x8xbf16>
    %cst_42 = arith.constant dense<0.000000e+00> : vector<288x8xf32>
    %63 = tpu.matmul %60, %62, %cst_42 {dimension_numbers = #tpu.dot_dimension_numbers<[1], [0], [0], [1], [0, 0, 1, 1], [], []>} : vector<288x8xbf16>, vector<8x8xbf16>, vector<288x8xf32> -> vector<288x8xf32>
    %64 = arith.addf %59, %63 : vector<288x8xf32>
    %c20 = arith.constant 20 : index
    %c0_43 = arith.constant 0 : index
    %65 = vector.load %arg12[%c20, %c0_43] : memref<326x8xbf16, #tpu.memory_space<vmem>>, vector<288x8xbf16>
    %c5 = arith.constant 5 : index
    %c0_44 = arith.constant 0 : index
    %c0_45 = arith.constant 0 : index
    %66 = vector.load %arg5[%c5, %c0_44, %c0_45] : memref<9x8x8xbf16, #tpu.memory_space<vmem>>, vector<1x8x8xbf16>
    %67 = vector.shape_cast %66 : vector<1x8x8xbf16> to vector<8x8xbf16>
    %cst_46 = arith.constant dense<0.000000e+00> : vector<288x8xf32>
    %68 = tpu.matmul %65, %67, %cst_46 {dimension_numbers = #tpu.dot_dimension_numbers<[1], [0], [0], [1], [0, 0, 1, 1], [], []>} : vector<288x8xbf16>, vector<8x8xbf16>, vector<288x8xf32> -> vector<288x8xf32>
    %69 = arith.addf %64, %68 : vector<288x8xf32>
    %c36 = arith.constant 36 : index
    %c0_47 = arith.constant 0 : index
    %70 = vector.load %arg12[%c36, %c0_47] : memref<326x8xbf16, #tpu.memory_space<vmem>>, vector<288x8xbf16>
    %c6 = arith.constant 6 : index
    %c0_48 = arith.constant 0 : index
    %c0_49 = arith.constant 0 : index
    %71 = vector.load %arg5[%c6, %c0_48, %c0_49] : memref<9x8x8xbf16, #tpu.memory_space<vmem>>, vector<1x8x8xbf16>
    %72 = vector.shape_cast %71 : vector<1x8x8xbf16> to vector<8x8xbf16>
    %cst_50 = arith.constant dense<0.000000e+00> : vector<288x8xf32>
    %73 = tpu.matmul %70, %72, %cst_50 {dimension_numbers = #tpu.dot_dimension_numbers<[1], [0], [0], [1], [0, 0, 1, 1], [], []>} : vector<288x8xbf16>, vector<8x8xbf16>, vector<288x8xf32> -> vector<288x8xf32>
    %74 = arith.addf %69, %73 : vector<288x8xf32>
    %c37 = arith.constant 37 : index
    %c0_51 = arith.constant 0 : index
    %75 = vector.load %arg12[%c37, %c0_51] : memref<326x8xbf16, #tpu.memory_space<vmem>>, vector<288x8xbf16>
    %c7 = arith.constant 7 : index
    %c0_52 = arith.constant 0 : index
    %c0_53 = arith.constant 0 : index
    %76 = vector.load %arg5[%c7, %c0_52, %c0_53] : memref<9x8x8xbf16, #tpu.memory_space<vmem>>, vector<1x8x8xbf16>
    %77 = vector.shape_cast %76 : vector<1x8x8xbf16> to vector<8x8xbf16>
    %cst_54 = arith.constant dense<0.000000e+00> : vector<288x8xf32>
    %78 = tpu.matmul %75, %77, %cst_54 {dimension_numbers = #tpu.dot_dimension_numbers<[1], [0], [0], [1], [0, 0, 1, 1], [], []>} : vector<288x8xbf16>, vector<8x8xbf16>, vector<288x8xf32> -> vector<288x8xf32>
    %79 = arith.addf %74, %78 : vector<288x8xf32>
    %c38 = arith.constant 38 : index
    %c0_55 = arith.constant 0 : index
    %80 = vector.load %arg12[%c38, %c0_55] : memref<326x8xbf16, #tpu.memory_space<vmem>>, vector<288x8xbf16>
    %c8 = arith.constant 8 : index
    %c0_56 = arith.constant 0 : index
    %c0_57 = arith.constant 0 : index
    %81 = vector.load %arg5[%c8, %c0_56, %c0_57] : memref<9x8x8xbf16, #tpu.memory_space<vmem>>, vector<1x8x8xbf16>
    %82 = vector.shape_cast %81 : vector<1x8x8xbf16> to vector<8x8xbf16>
    %cst_58 = arith.constant dense<0.000000e+00> : vector<288x8xf32>
    %83 = tpu.matmul %80, %82, %cst_58 {dimension_numbers = #tpu.dot_dimension_numbers<[1], [0], [0], [1], [0, 0, 1, 1], [], []>} : vector<288x8xbf16>, vector<8x8xbf16>, vector<288x8xf32> -> vector<288x8xf32>
    %84 = arith.addf %79, %83 : vector<288x8xf32>
    %c0_59 = arith.constant 0 : index
    %c0_60 = arith.constant 0 : index
    %85 = vector.load %arg6[%c0_59, %c0_60] : memref<1x8xf32, #tpu.memory_space<vmem>>, vector<1x8xf32>
    %86 = vector.broadcast %85 : vector<1x8xf32> to vector<288x8xf32>
    %87 = arith.mulf %84, %86 : vector<288x8xf32>
    %c0_61 = arith.constant 0 : index
    %c0_62 = arith.constant 0 : index
    %88 = vector.load %arg7[%c0_61, %c0_62] : memref<1x8xf32, #tpu.memory_space<vmem>>, vector<1x8xf32>
    %89 = vector.broadcast %88 : vector<1x8xf32> to vector<288x8xf32>
    %90 = arith.addf %87, %89 : vector<288x8xf32>
    %c0_63 = arith.constant 0 : index
    %c0_64 = arith.constant 0 : index
    %91 = vector.load %arg8[%c0_63, %c0_64] : memref<4x8xbf16, #tpu.memory_space<vmem>>, vector<4x8xbf16>
    %cst_65 = arith.constant dense<0.000000e+00> : vector<288x8xf32>
    %92 = tpu.matmul %4, %91, %cst_65 {dimension_numbers = #tpu.dot_dimension_numbers<[1], [0], [0], [1], [0, 0, 1, 1], [], []>} : vector<288x4xbf16>, vector<4x8xbf16>, vector<288x8xf32> -> vector<288x8xf32>
    %c0_66 = arith.constant 0 : index
    %c0_67 = arith.constant 0 : index
    %93 = vector.load %arg9[%c0_66, %c0_67] : memref<1x8xf32, #tpu.memory_space<vmem>>, vector<1x8xf32>
    %94 = vector.broadcast %93 : vector<1x8xf32> to vector<288x8xf32>
    %95 = arith.mulf %92, %94 : vector<288x8xf32>
    %c0_68 = arith.constant 0 : index
    %c0_69 = arith.constant 0 : index
    %96 = vector.load %arg10[%c0_68, %c0_69] : memref<1x8xf32, #tpu.memory_space<vmem>>, vector<1x8xf32>
    %97 = vector.broadcast %96 : vector<1x8xf32> to vector<288x8xf32>
    %98 = arith.addf %95, %97 : vector<288x8xf32>
    %99 = arith.addf %90, %98 : vector<288x8xf32>
    %cst_70 = arith.constant 0.000000e+00 : f32
    %100 = vector.broadcast %cst_70 : f32 to vector<288x8xf32>
    %101 = arith.maximumf %99, %100 : vector<288x8xf32>
    %c0_71 = arith.constant 0 : index
    %c0_72 = arith.constant 0 : index
    %c0_73 = arith.constant 0 : index
    %102 = vector.load %arg11[%c0_71, %c0_72, %c0_73] : memref<1x288x8xf32, #tpu.memory_space<vmem>>, vector<1x288x8xf32>
    %103 = vector.shape_cast %102 : vector<1x288x8xf32> to vector<288x8xf32>
    %104 = vector.shape_cast %101 : vector<288x8xf32> to vector<1x288x8xf32>
    tpu.vector_store %arg11[%c0_71, %c0_72, %c0_73], %104 {strides = array<i32>} : memref<1x288x8xf32, #tpu.memory_space<vmem>>, vector<1x288x8xf32>,
    return
  }
  func.func @transform_0(%arg0: i32) -> (i32, i32, i32) {
    %c0_i32 = arith.constant 0 : i32
    %c0_i32_0 = arith.constant 0 : i32
    %c0_i32_1 = arith.constant 0 : i32
    return %arg0, %c0_i32, %c0_i32_0 : i32, i32, i32
  }
  func.func @transform_1(%arg0: i32) -> (i32, i32) {
    %c0_i32 = arith.constant 0 : i32
    %c0_i32_0 = arith.constant 0 : i32
    %c0_i32_1 = arith.constant 0 : i32
    return %c0_i32, %c0_i32_0 : i32, i32
  }
  func.func @transform_2(%arg0: i32) -> (i32, i32) {
    %c0_i32 = arith.constant 0 : i32
    %c0_i32_0 = arith.constant 0 : i32
    %c0_i32_1 = arith.constant 0 : i32
    return %c0_i32, %c0_i32_0 : i32, i32
  }
  func.func @transform_3(%arg0: i32) -> (i32, i32) {
    %c0_i32 = arith.constant 0 : i32
    %c0_i32_0 = arith.constant 0 : i32
    %c0_i32_1 = arith.constant 0 : i32
    return %c0_i32, %c0_i32_0 : i32, i32
  }
  func.func @transform_4(%arg0: i32) -> (i32, i32, i32) {
    %c0_i32 = arith.constant 0 : i32
    %c0_i32_0 = arith.constant 0 : i32
    %c0_i32_1 = arith.constant 0 : i32
    %c0_i32_2 = arith.constant 0 : i32
    return %c0_i32, %c0_i32_0, %c0_i32_1 : i32, i32, i32
  }
  func.func @transform_5(%arg0: i32) -> (i32, i32) {
    %c0_i32 = arith.constant 0 : i32
    %c0_i32_0 = arith.constant 0 : i32
    %c0_i32_1 = arith.constant 0 : i32
    return %c0_i32, %c0_i32_0 : i32, i32
  }
  func.func @transform_6(%arg0: i32) -> (i32, i32) {
    %c0_i32 = arith.constant 0 : i32
    %c0_i32_0 = arith.constant 0 : i32
    %c0_i32_1 = arith.constant 0 : i32
    return %c0_i32, %c0_i32_0 : i32, i32
  }
  func.func @transform_7(%arg0: i32) -> (i32, i32) {
    %c0_i32 = arith.constant 0 : i32
    %c0_i32_0 = arith.constant 0 : i32
    %c0_i32_1 = arith.constant 0 : i32
    return %c0_i32, %c0_i32_0 : i32, i32
  }
  func.func @transform_8(%arg0: i32) -> (i32, i32) {
    %c0_i32 = arith.constant 0 : i32
    %c0_i32_0 = arith.constant 0 : i32
    %c0_i32_1 = arith.constant 0 : i32
    return %c0_i32, %c0_i32_0 : i32, i32
  }
  func.func @transform_9(%arg0: i32) -> (i32, i32) {
    %c0_i32 = arith.constant 0 : i32
    %c0_i32_0 = arith.constant 0 : i32
    %c0_i32_1 = arith.constant 0 : i32
    return %c0_i32, %c0_i32_0 : i32, i32
  }
  func.func @transform_10(%arg0: i32) -> (i32, i32, i32) {
    %c0_i32 = arith.constant 0 : i32
    %c0_i32_0 = arith.constant 0 : i32
    %c0_i32_1 = arith.constant 0 : i32
    return %arg0, %c0_i32, %c0_i32_0 : i32, i32, i32
  }
}

</mosaic_0001>

<bundles_post_ra>
// kernel: residual_block_forward.1
= control target key start
LH: loop header
LB: loop body
LE: loop exit
PB: predicated region body
PF: predicated region fallthrough
CT: control target
= control target key end

     0   :  { %s7767_s13 = smov 0   ;;  %s11012_s0 = inlined_call_operand.vmem [shape: bf16[2,288,36], index: 0, kind: input, shape index: {}]   ;;  %s11013_s1 = inlined_call_operand.vmem [shape: bf16[36,8], index: 1, kind: input, shape index: {}]   ;;  %s11014_s2 = inlined_call_operand.vmem [shape: f32[1,8], index: 2, kind: input, shape index: {}]   ;;  %s11015_s3 = inlined_call_operand.vmem [shape: f32[1,8], index: 3, kind: input, shape index: {}]   ;;  %s11016_s4 = inlined_call_operand.vmem [shape: bf16[9,8,8], index: 4, kind: input, shape index: {}]   ;;  %s11017_s5 = inlined_call_operand.vmem [shape: f32[1,8], index: 5, kind: input, shape index: {}]   ;;  %s11018_s6 = inlined_call_operand.vmem [shape: f32[1,8], index: 6, kind: input, shape index: {}]   ;;  %s11019_s7 = inlined_call_operand.vmem [shape: bf16[4,8], index: 7, kind: input, shape index: {}]   ;;  %s11020_s8 = inlined_call_operand.vmem [shape: f32[1,8], index: 8, kind: input, shape index: {}]   ;;  %s11021_s9 = inlined_call_operand.vmem [shape: f32[1,8], index: 9, kind: input, shape index: {}]   ;;  %s11022_s10 = inlined_call_operand.vmem [shape: f32[2,288,8], index: 10, kind: output, shape index: {}]  }
   0x1 LB: > { %s6188_s14 = sadd.s32 4294967295, %s7709_s13   ;;  %p6192_p0 = scmp.ge.s32.totalorder %s7709_s13, 1  ;;  %s7709_s13 = sphi %s7767_s13, %s20_s13  }
   0x2   : > { %p312_p1 = scmp.lt.s32.totalorder %s7709_s13, 3 }
   0x4   : > { %p313_p2 = pnand %p6192_p0, %p312_p1 }
   0x6   : > { %316 = sbr.rel (%p313_p2) target bundleno = 1004 (0x3ec), region = 60 }
   0xd   : > { %v7582_v0 = vld [vmem:[%s11013_s1] sm:$0xff]   ;;  %v7583_v1 = vld [vmem:[%s11013_s1 + $0x8] sm:$0xff]   ;;  %p350_p3 = scmp.lt.s32.totalorder %s6188_s14, 1  ;;  %v7584_v2 = vld [vmem:[%s11013_s1 + $0x10] ss:$0 sps:$4 sm:$0x33]   ;;  %v865_v28 = vlaneseq }
   0xe   : > { %6775 = vmatprep.subr.bf16.mxu0 %v7582_v0  ;;  %vm11023_vm0 = vcmask 1041408   ;;  %vm507_vm1 = vcmask 293888   ;;  %vm1643_vm2 = vcmask 58368   ;;  %vm11025_vm3 = vsmask.f32 1280 }
   0xf   : > { %6776 = vmatpush3.bf16.msra.mxu0 %v7582_v0  ;;  %s11678_s14 = smov (!%p350_p3, %s6188_s14), 1  ;;  %v564_v3 = vsel %vm11023_vm0, %v7584_v2, 0  ;;  %vm7831_vm4 = vmand %vm1643_vm2, %vm11025_vm3  ;;  %v11126_v22 = vmov 0  ;;  %v1646_v23 = vld [vmem:[#allocation2 + $0x8] sm:$0x3]  ;;  %vm1649_vm5 = vcmask 60417  }
  0x10   : > { %6777 = vmatprep.subr.bf16.mxu0 %v7583_v1  ;;  %s7499_s21 = smul.u32 144, %s11678_s14  ;;  %v11127_v22 = vsel %vm7831_vm4, 4294967295, %v11126_v22  ;;  %v1647_v24 = vsel %vm7831_vm4, 0, %v1646_v23  ;;  %vm1650_vm6 = vsmask.f32 7942  ;;  %v11129_v25 = vmov 0 }
  0x11   : > { %11128 = vst [vmem:[#allocation3_spill] sm:$0xff] %v11127_v22  ;;  %1648 = vst [vmem:[#allocation2 + $0x8] sm:$0x3] %v1647_v24  ;;  %v1652_v26 = vld [vmem:[#allocation2 + $0x98] sm:$0xe]  ;;  %v7843_v29 = vshrl.u32 %v865_v28, 7 }
  0x12   : > { %s7790_s24 = scalar_lea.vmem %s11012_s0, %s7499_s21  ;;  %vm7837_vm7 = vmand %vm1649_vm5, %vm1650_vm6  ;;  %vm11024_vm8 = vcmask 60416   ;;  %v11027_v39 = vmov 0   ;;  %vm11026_vm11 = vcmask 1043456   ;;  %s7500_s30 = smul.u32 288, %s11678_s14 }
  0x13   : > { %6778 = vmatpush3.bf16.msra.mxu0 %v7583_v1  ;;  %v7585_v4 = vld [vmem:[%s7790_s24] sm:$0xff]   ;;  %v7586_v5 = vld [vmem:[%s7790_s24 + $0x8] sm:$0xff]   ;;  %v7587_v6 = vld [vmem:[%s7790_s24 + $0x10] sm:$0xff]   ;;  %v11130_v25 = vsel %vm7837_vm7, 4294967295, %v11129_v25  ;;  %v1653_v27 = vsel %vm7837_vm7, 0, %v1652_v26  ;;  %v868_v30 = vadd.s32 16, %v7843_v29 }
  0x14   : > { %7487 = vmatprep.subr.msk.bf16.mxu0 %vm11023_vm0, %v7584_v2  ;;  %6781 = vmatprep.mubr.msk.bf16.mxu0 %vm507_vm1, %v7585_v4  ;;  %v7588_v7 = vld [vmem:[%s7790_s24 + $0x18] sm:$0xff]   ;;  %v7589_v8 = vld [vmem:[%s7790_s24 + $0x20] sm:$0xff]   ;;  %v7590_v9 = vld [vmem:[%s7790_s24 + $0x28] sm:$0xff]   ;;  %11131 = vst [vmem:[#allocation4_spill] sm:$0xff] %v11130_v25  ;;  %v869_v33 = vadd.s32 24, %v7843_v29  ;;  %v867_v36 = vadd.s32 8, %v7843_v29  ;;  %s10745_s12 = scalar_lea.vmem %s11022_s10, %s7500_s30 }
  0x15   : > { %v7591_v10 = vld [vmem:[%s7790_s24 + $0x30] sm:$0xff]   ;;  %v7592_v11 = vld [vmem:[%s7790_s24 + $0x38] sm:$0xff]   ;;  %v7593_v12 = vld [vmem:[%s7790_s24 + $0x40] sm:$0xff]   ;;  %1654 = vst [vmem:[#allocation2 + $0x98] sm:$0xe] %v1653_v27  ;;  %v872_v43 = vadd.s32 48, %v7843_v29 }
  0x16   : > { %v7594_v13 = vld [vmem:[%s7790_s24 + $0x48] sm:$0xff]   ;;  %v7595_v14 = vld [vmem:[%s7790_s24 + $0x50] sm:$0xff]   ;;  %v7596_v15 = vld [vmem:[%s7790_s24 + $0x58] sm:$0xff]   ;;  %v7846_v31 = vmul.u32.u64.low 3817748708, %v868_v30  ;;  %v7847_v32 = vmul.u32.u64.high 3817748708, %v868_v30, %v7846_v31  ;;  %v7870_v44 = vadd.s32 32, %v7843_v29 }
  0x17   : > { %6780 = vmatpush3.bf16.msra.mxu0 %v564_v3  ;;  %v7597_v16 = vld [vmem:[%s7790_s24 + $0x60] sm:$0xff]   ;;  %v7598_v17 = vld [vmem:[%s7790_s24 + $0x68] sm:$0xff]   ;;  %v7599_v18 = vld [vmem:[%s7790_s24 + $0x70] sm:$0xff]   ;;  %v7851_v34 = vmul.u32.u64.low 3817748708, %v7843_v29  ;;  %v7852_v35 = vmul.u32.u64.high 3817748708, %v7843_v29, %v7851_v34  ;;  %v7873_v45 = vadd.s32 56, %v7843_v29 }
  0x18   : > { %v7600_v19 = vld [vmem:[%s7790_s24 + $0x78] sm:$0xff]   ;;  %v7601_v20 = vld [vmem:[%s7790_s24 + $0x80] sm:$0xff]   ;;  %v7602_v21 = vld [vmem:[%s7790_s24 + $0x88] sm:$0xff]   ;;  %v7855_v37 = vmul.u32.u64.low 3817748708, %v869_v33  ;;  %v7856_v38 = vmul.u32.u64.high 3817748708, %v869_v33, %v7855_v37  ;;  %v930_v40 = vshrl.u32 %v7847_v32, 4 }
  0x19   : > { %1641 = vst.msk [vmem:[#allocation2] sm:$0xf] %vm11024_vm8, %v11027_v39  ;;  %1642 = vst.msk [vmem:[#allocation2 + $0x4] sm:$0xf] %vm11024_vm8, %v11027_v39  ;;  %v7865_v41 = vmul.u32.u64.low 3817748708, %v867_v36  ;;  %v7866_v42 = vmul.u32.u64.high 3817748708, %v867_v36, %v7865_v41 }
  0x1a   : > { %6782 = vmatmul.mubr.msk.bf16.vlgmr.msra.gmra.mrb[0].mxu0 %vm507_vm1, %v7586_v5  ;;  %1655 = vst.msk [vmem:[#allocation2 + $0x9c] sm:$0xf] %vm11024_vm8, %v11027_v39  ;;  %v7876_v46 = vadd.s32 40, %v7843_v29  ;;  %v908_v47 = vshrl.u32 %v7852_v35, 4  ;;  %v7880_v48 = vadd.s32 80, %v7843_v29  ;;  %v931_v49 = vmul.u32 18, %v930_v40 }
  0x1b   : > { %6785 = vmatprep.mubr.msk.bf16.mxu0 %vm507_vm1, %v7587_v6  ;;  %v7882_v50 = vmul.u32.u64.low 3817748708, %v872_v43  ;;  %v7883_v51 = vmul.u32.u64.high 3817748708, %v872_v43, %v7882_v50  ;;  %v7886_v52 = vmul.u32.u64.low 3817748708, %v7870_v44  ;;  %v7887_v53 = vmul.u32.u64.high 3817748708, %v7870_v44, %v7886_v52  ;;  %v6272_v4 = vld [vmem:[%s11016_s4 + $0x4] sm:$0xf] }
  0x1c   : > { %v7890_v54 = vmul.u32.u64.low 3817748708, %v7873_v45  ;;  %v7891_v55 = vmul.u32.u64.high 3817748708, %v7873_v45, %v7890_v54  ;;  %v941_v56 = vshrl.u32 %v7856_v38, 4  ;;  %v909_v59 = vmul.u32 18, %v908_v47  ;;  %7488 = vmatprep.subr.msk.bf16.mxu0 %vm11026_vm11, %v6272_v4 }
  0x1d   : > { %v7895_v57 = vmul.u32.u64.low 3817748708, %v7876_v46  ;;  %v7896_v58 = vmul.u32.u64.high 3817748708, %v7876_v46, %v7895_v57  ;;  %v7899_v60 = vmul.u32.u64.low 3817748708, %v7880_v48  ;;  %v7900_v61 = vmul.u32.u64.high 3817748708, %v7880_v48, %v7899_v60 }
  0x1e   : > { %v919_v62 = vshrl.u32 %v7866_v42, 4  ;;  %v7903_v63 = vsub.s32 %v868_v30, %v931_v49  ;;  %v942_v0 = vmul.u32 18, %v941_v56  ;;  %v7906_v1 = vsub.s32 %v7843_v29, %v909_v59 }
  0x1f   : > { %v974_v3 = vshrl.u32 %v7883_v51, 4  ;;  %v952_v6 = vshrl.u32 %v7887_v53, 4  ;;  %v7959_v32 = vadd.s32 96, %v7843_v29  ;;  %v7991_v47 = vadd.s32 104, %v7843_v29 }
  0x20   : > { %v920_v2 = vmul.u32 18, %v919_v62  ;;  %vm1300_vm9 = vcmp.ne.s32.totalorder %v7903_v63, 0  ;;  %vm1336_vm10 = vcmp.lt.s32.totalorder %v7903_v63, 0  ;;  %v7915_v5 = vadd.s32 18, %v7903_v63 }
  0x21   : > { %vm1298_vm12 = vcmp.ne.s32.totalorder %v7906_v1, 0  ;;  %vm1334_vm13 = vcmp.lt.s32.totalorder %v7906_v1, 0  ;;  %vm7997_vm5 = vmand %vm1336_vm10, %vm1300_vm9  ;;  %v8023_v52 = vadd.s32 144, %v7843_v29  ;;  %v11141_v54 = vmov 0 }
  0x22   : > { %6786 = vmatmul.mubr.msk.bf16.gmra.mrb[4].mxu0 %vm507_vm1, %v7588_v7  ;;  %v985_v7 = vshrl.u32 %v7891_v55, 4  ;;  %vm8013_vm6 = vmand %vm1334_vm13, %vm1298_vm12  ;;  %v8048_v56 = vmul.u32.u64.low 3817748708, %v7991_v47  ;;  %v8049_v57 = vmul.u32.u64.high 3817748708, %v7991_v47, %v8048_v56 }
  0x23   : > { %6789 = vmatprep.mubr.msk.bf16.mxu0 %vm507_vm1, %v7589_v8  ;;  %v7919_v8 = vsub.s32 %v869_v33, %v942_v0  ;;  %v7962_v33 = vadd.s32 120, %v7843_v29 }
  0x25   : > { %vm1301_vm14 = vcmp.ne.s32.totalorder %v7919_v8, 0  ;;  %vm1337_vm15 = vcmp.lt.s32.totalorder %v7919_v8, 0  ;;  %v7965_v34 = vadd.s32 18, %v7919_v8 }
  0x26   : > { %vm8029_vm0 = vmand %vm1337_vm15, %vm1301_vm14 }
  0x2a   : > { %6790 = vmatmul.mubr.msk.bf16.gmra.mrb[8].mxu0 %vm507_vm1, %v7590_v9  ;;  %v963_v9 = vshrl.u32 %v7896_v58, 4  ;;  %v11143_v58 = vmov 0 }
  0x2b   : > { %6793 = vmatprep.mubr.msk.bf16.mxu0 %vm507_vm1, %v7591_v10  ;;  %v7923_v10 = vadd.s32 64, %v7843_v29 }
  0x2d   : > { %v7946_v23 = vmul.u32.u64.low 3817748708, %v7923_v10  ;;  %v7947_v24 = vmul.u32.u64.high 3817748708, %v7923_v10, %v7946_v23 }
  0x2f   : > { %v996_v55 = vshrl.u32 %v7947_v24, 4 }
  0x32   : > { %6794 = vmatmul.mubr.msk.bf16.gmra.mrb[12].mxu0 %vm507_vm1, %v7592_v11  ;;  %v1018_v11 = vshrl.u32 %v7900_v61, 4  ;;  %v11145_v61 = vmov 0 }
  0x33   : > { %6797 = vmatprep.mubr.msk.bf16.mxu0 %vm507_vm1, %v7593_v12  ;;  %v7928_v12 = vadd.s32 88, %v7843_v29 }
  0x34   : > { %v1019_v26 = vmul.u32 18, %v1018_v11 }
  0x35   : > { %v7951_v27 = vmul.u32.u64.low 3817748708, %v7928_v12  ;;  %v7952_v28 = vmul.u32.u64.high 3817748708, %v7928_v12, %v7951_v27 }
  0x37   : > { %v1029_v59 = vshrl.u32 %v7952_v28, 4 }
  0x39   : > { %v1030_v23 = vmul.u32 18, %v1029_v59  ;;  %v1051_v59 = vshrl.u32 %v8049_v57, 4 }
  0x3a   : > { %6798 = vmatmul.mubr.msk.bf16.gmra.mrb[16].mxu0 %vm507_vm1, %v7594_v13  ;;  %v2526_v13 = vsel %vm11026_vm11, %v6272_v4, 0 }
  0x3b   : > { %6801 = vmatprep.mubr.msk.bf16.mxu0 %vm507_vm1, %v7595_v14  ;;  %v7934_v14 = vadd.s32 18, %v7906_v1  ;;  %6818 = vmatpush3.bf16.msra.mxu0 %v2526_v13  ;;  %v11151_v13 = vmov 0 }
  0x42   : > { %6802 = vmatmul.mubr.msk.bf16.gmra.mrb[20].mxu0 %vm507_vm1, %v7596_v15  ;;  %v975_v15 = vmul.u32 18, %v974_v3 }
  0x43   : > { %6805 = vmatprep.mubr.msk.bf16.mxu0 %vm507_vm1, %v7597_v16  ;;  %v7937_v16 = vadd.s32 72, %v7843_v29 }
  0x44   : > { %v7967_v35 = vsub.s32 %v872_v43, %v975_v15  ;;  %v7988_v43 = vsub.s32 %v7880_v48, %v1019_v26 }
  0x45   : > { %v7955_v30 = vmul.u32.u64.low 3817748708, %v7937_v16  ;;  %v7956_v31 = vmul.u32.u64.high 3817748708, %v7937_v16, %v7955_v30 }
  0x46   : > { %11134 = vst [vmem:[#allocation7_spill] sm:$0xff] %v7988_v43  ;;  %vm1304_vm9 = vcmp.ne.s32.totalorder %v7967_v35, 0  ;;  %vm1340_vm10 = vcmp.lt.s32.totalorder %v7967_v35, 0  ;;  %v8020_v51 = vadd.s32 18, %v7967_v35  ;;  %vm1308_vm8 = vcmp.ne.s32.totalorder %v7988_v43, 0 }
  0x47   : > { %vm8051_vm15 = vmand %vm1340_vm10, %vm1304_vm9  ;;  %v1007_v60 = vshrl.u32 %v7956_v31, 4  ;;  %v11176_v30 = vmov 0 }
  0x48   : > { %v11144_v58 = vsel %vm8051_vm15, 4294967295, %v11143_v58 }
  0x49   : > { %v1008_v24 = vmul.u32 18, %v1007_v60  ;;  %v8157_v60 = vsub.s32 %v7928_v12, %v1030_v23 }
  0x4a   : > { %6806 = vmatmul.mubr.msk.bf16.gmra.mrb[24].mxu0 %vm507_vm1, %v7598_v17  ;;  %v7939_v17 = vsub.s32 %v867_v36, %v920_v2  ;;  %v8068_v0 = vmul.u32.u64.low 3817748708, %v8023_v52  ;;  %v8069_v2 = vmul.u32.u64.high 3817748708, %v8023_v52, %v8068_v0 }
  0x4b   : > { %6809 = vmatprep.mubr.msk.bf16.mxu0 %vm507_vm1, %v7599_v18  ;;  %v953_v18 = vmul.u32 18, %v952_v6  ;;  %vm11169_vm7 = vcmp.ne.s32.totalorder %v8157_v60, 0 }
  0x4c   : > { %vm1335_vm2 = vcmp.lt.s32.totalorder %v7939_v17, 0  ;;  %v7982_v41 = vadd.s32 18, %v7939_v17 }
  0x4d   : > { %v7976_v38 = vsub.s32 %v7870_v44, %v953_v18  ;;  %v8109_v18 = vadd.s32 18, %v7988_v43  ;;  %v11262_v44 = vsel %vm8013_vm6, %v7934_v14, %v7906_v1  ;;  %v8706_v1 = vld [vmem:[%s11014_s2] ss:$0 sm:$0xff]  ;;  %v11269_v14 = vsel %vm8029_vm0, %v7965_v34, %v7919_v8 }
  0x4e   : > { %vm8713_vm6 = vcmp.lt.s32.totalorder %v11269_v14, 16  ;;  %v8738_v34 = vld [vmem:[%s11015_s3] ss:$0 sm:$0xff] }
  0x4f   : > { %vm1302_vm12 = vcmp.ne.s32.totalorder %v7976_v38, 0  ;;  %vm1338_vm13 = vcmp.lt.s32.totalorder %v7976_v38, 0  ;;  %v8080_v6 = vadd.s32 18, %v7976_v38  ;;  %11155 = vst [vmem:[#allocation10_spill] sm:$0xff] %v8109_v18 }
  0x52   : > { %6810 = vmatmul.mubr.msk.bf16.gmra.mrb[28].mxu0 %vm507_vm1, %v7600_v19  ;;  %v986_v19 = vmul.u32 18, %v985_v7  ;;  %v11149_v7 = vmov 0 }
  0x53   : > { %6813 = vmatprep.mubr.msk.bf16.mxu0 %vm507_vm1, %v7601_v20  ;;  %v7942_v20 = vadd.s32 112, %v7843_v29 }
  0x54   : > { %v7979_v40 = vsub.s32 %v7873_v45, %v986_v19  ;;  %v8002_v45 = vmul.u32.u64.low 3817748708, %v7959_v32  ;;  %v8003_v49 = vmul.u32.u64.high 3817748708, %v7959_v32, %v8002_v45  ;;  %v997_v19 = vmul.u32 18, %v996_v55 }
  0x55   : > { %v7970_v36 = vmul.u32.u64.low 3817748708, %v7942_v20  ;;  %v7971_v37 = vmul.u32.u64.high 3817748708, %v7942_v20, %v7970_v36  ;;  %v1106_v45 = vshrl.u32 %v8069_v2, 4 }
  0x56   : > { %11132 = vst [vmem:[#allocation5_spill] sm:$0xff] %v7979_v40  ;;  %vm11147_vm9 = vcmp.ne.s32.totalorder %v7979_v40, 0  ;;  %vm11148_vm10 = vcmp.lt.s32.totalorder %v7979_v40, 0  ;;  %v1040_v26 = vshrl.u32 %v8003_v49, 4  ;;  %v8128_v36 = vadd.s32 128, %v7843_v29 }
  0x57   : > { %v1062_v62 = vshrl.u32 %v7971_v37, 4  ;;  %v8139_v49 = vadd.s32 152, %v7843_v29  ;;  %v8153_v56 = vsub.s32 %v7923_v10, %v997_v19 }
  0x58   : > { %v1041_v0 = vmul.u32 18, %v1040_v26  ;;  %v8167_v55 = vmul.u32.u64.low 3817748708, %v8128_v36  ;;  %v8168_v37 = vmul.u32.u64.high 3817748708, %v8128_v36, %v8167_v55  ;;  %v8195_v26 = vadd.s32 18, %v8157_v60 }
  0x59   : > { %v1063_v31 = vmul.u32 18, %v1062_v62  ;;  %v8160_v62 = vsub.s32 %v7937_v16, %v1008_v24  ;;  %v8171_v10 = vmul.u32.u64.low 3817748708, %v8139_v49  ;;  %v8172_v57 = vmul.u32.u64.high 3817748708, %v8139_v49, %v8171_v10 }
  0x5a   : > { %6814 = vmatmul.mubr.msk.bf16.gmra.mrb[32].mxu0 %vm507_vm1, %v7602_v21  ;;  %v964_v21 = vmul.u32 18, %v963_v9  ;;  %vm1299_vm1 = vcmp.ne.s32.totalorder %v7939_v17, 0  ;;  %v8091_v9 = vadd.s32 18, %v7979_v40  ;;  %v1052_v16 = vmul.u32 18, %v1051_v59 }
  0x5b   : > { %vm8041_vm11 = vmand %vm1335_vm2, %vm1299_vm1  ;;  %vm1344_vm2 = vcmp.lt.s32.totalorder %v7988_v43, 0  ;;  %11159 = vst [vmem:[#allocation12_spill] sm:$0xff] %v8160_v62  ;;  %v8184_v2 = vadd.s32 18, %v8153_v56  ;;  %v8188_v23 = vsub.s32 %v7959_v32, %v1041_v0  ;;  %v8204_v32 = vadd.s32 160, %v7843_v29 }
  0x5c   : > { %v7985_v42 = vsub.s32 %v7876_v46, %v964_v21  ;;  %v8006_v46 = vmul.u32.u64.low 3817748708, %v7962_v33  ;;  %v8007_v50 = vmul.u32.u64.high 3817748708, %v7962_v33, %v8006_v46  ;;  %v11142_v54 = vsel %vm8041_vm11, 4294967295, %v11141_v54  ;;  %vm8061_vm1 = vmand %vm1338_vm13, %vm1302_vm12 }
  0x5d   : > { %v11146_v61 = vsel %vm8061_vm1, 4294967295, %v11145_v61  ;;  %vm8086_vm12 = vmand %vm11148_vm10, %vm11147_vm9  ;;  %v11156_v21 = vmov 0  ;;  %v8142_v46 = vadd.s32 136, %v7843_v29  ;;  %11161 = vst [vmem:[#allocation14_spill] sm:$0xff] %v8188_v23  ;;  %vm11165_vm10 = vcmp.ne.s32.totalorder %v8153_v56, 0 }
  0x5e   : > { %11133 = vst [vmem:[#allocation6_spill] sm:$0xff] %v7985_v42  ;;  %vm1303_vm14 = vcmp.ne.s32.totalorder %v7985_v42, 0  ;;  %vm1339_vm3 = vcmp.lt.s32.totalorder %v7985_v42, 0  ;;  %v11150_v7 = vsel %vm8086_vm12, 4294967295, %v11149_v7  ;;  %v8106_v15 = vadd.s32 18, %v7985_v42  ;;  %vm8113_vm9 = vmand %vm1344_vm2, %vm1308_vm8 }
  0x5f   : > { %vm8101_vm13 = vmand %vm1339_vm3, %vm1303_vm14  ;;  %v11157_v21 = vsel %vm8113_vm9, 4294967295, %v11156_v21  ;;  %v1073_v27 = vshrl.u32 %v8007_v50, 4  ;;  %v8163_v50 = vsub.s32 %v7942_v20, %v1063_v31  ;;  %v8181_v20 = vadd.s32 176, %v7843_v29 }
  0x60   : > { %v11152_v13 = vsel %vm8101_vm13, 4294967295, %v11151_v13  ;;  %11154 = vst [vmem:[#allocation9_spill] sm:$0xff] %v8106_v15  ;;  %11158 = vst [vmem:[#allocation11_spill] sm:$0xff] %v11157_v21  ;;  %v8175_v12 = vmul.u32.u64.low 3817748708, %v8142_v46  ;;  %v8176_v19 = vmul.u32.u64.high 3817748708, %v8142_v46, %v8175_v12  ;;  %v8200_v31 = vadd.s32 18, %v8160_v62 }
  0x61   : > { %11153 = vst [vmem:[#allocation8_spill] sm:$0xff] %v11152_v13  ;;  %v1074_v39 = vmul.u32 18, %v1073_v27  ;;  %11160 = vst [vmem:[#allocation13_spill] sm:$0xff] %v8163_v50  ;;  %v1107_v27 = vmul.u32 18, %v1106_v45  ;;  %vm11166_vm8 = vcmp.lt.s32.totalorder %v8153_v56, 0  ;;  %vm1310_vm14 = vcmp.ne.s32.totalorder %v8188_v23, 0 }
  0x62   : > { %11163 = vst [vmem:[#allocation16_spill] sm:$0xff] %v8200_v31  ;;  %vm8218_vm2 = vmand %vm11166_vm8, %vm11165_vm10  ;;  %v8226_v59 = vadd.s32 184, %v7843_v29  ;;  %vm11170_vm9 = vcmp.lt.s32.totalorder %v8157_v60, 0  ;;  %v11171_v0 = vmov 0  ;;  %v1084_v12 = vshrl.u32 %v8168_v37, 4 }
  0x63   : > { %v8191_v24 = vsub.s32 %v7962_v33, %v1074_v39  ;;  %v8208_v39 = vsub.s32 %v7991_v47, %v1052_v16  ;;  %v8211_v33 = vmul.u32.u64.low 3817748708, %v8181_v20  ;;  %v8212_v55 = vmul.u32.u64.high 3817748708, %v8181_v20, %v8211_v33  ;;  %v2187_v47 = vld [vmem:[#allocation2] sm:$0xf]  ;;  %vm8232_vm13 = vmand %vm11170_vm9, %vm11169_vm7  ;;  %v2188_v16 = vld [vmem:[#allocation2 + $0x4] sm:$0xf] }
  0x64   : > { %v11172_v0 = vsel %vm8232_vm13, 4294967295, %v11171_v0  ;;  %v8238_v10 = vsub.s32 %v8023_v52, %v1107_v27  ;;  %v8242_v33 = vadd.s32 168, %v7843_v29  ;;  %vm11174_vm10 = vcmp.ne.s32.totalorder %v8160_v62, 0 }
  0x65   : > { %11162 = vst [vmem:[#allocation15_spill] sm:$0xff] %v8191_v24  ;;  %11164 = vst [vmem:[#allocation17_spill] sm:$0xff] %v8208_v39  ;;  %vm11175_vm3 = vcmp.lt.s32.totalorder %v8160_v62, 0  ;;  %v1117_v28 = vshrl.u32 %v8172_v57, 4  ;;  %v1095_v11 = vshrl.u32 %v8176_v19, 4  ;;  %vm11178_vm7 = vcmp.ne.s32.totalorder %v8163_v50, 0 }
  0x66   : > { %11173 = vst [vmem:[#allocation18_spill] sm:$0xff] %v8238_v10  ;;  %vm8248_vm4 = vmand %vm11175_vm3, %vm11174_vm10  ;;  %v8255_v52 = vmul.u32.u64.low 3817748708, %v8204_v32  ;;  %v8256_v27 = vmul.u32.u64.high 3817748708, %v8204_v32, %v8255_v52  ;;  %vm11179_vm9 = vcmp.lt.s32.totalorder %v8163_v50, 0  ;;  %v11180_v37 = vmov 0 }
  0x67   : > { %v11177_v30 = vsel %vm8248_vm4, 4294967295, %v11176_v30  ;;  %vm8262_vm8 = vmand %vm11179_vm9, %vm11178_vm7  ;;  %v8267_v4 = vadd.s32 18, %v8163_v50  ;;  %v8270_v3 = vadd.s32 18, %v8188_v23  ;;  %vm1311_vm3 = vcmp.ne.s32.totalorder %v8208_v39, 0 }
  0x68   : > { %v11181_v37 = vsel %vm8262_vm8, 4294967295, %v11180_v37  ;;  %vm1347_vm10 = vcmp.lt.s32.totalorder %v8208_v39, 0  ;;  %vm11185_vm12 = vcmp.lt.s32.totalorder %v8188_v23, 0  ;;  %v11186_v57 = vmov 0 }
  0x69   : > { %11182 = vst [vmem:[#allocation19_spill] sm:$0xff] %v11181_v37  ;;  %11183 = vst [vmem:[#allocation20_spill] sm:$0xff] %v8267_v4  ;;  %v8283_v19 = vadd.s32 18, %v8191_v24  ;;  %v8285_v52 = vcombine.low %v2187_v47, %v2188_v16  ;;  %v8288_v22 = vmul.u32.u64.low 3817748708, %v8226_v59  ;;  %v8289_v25 = vmul.u32.u64.high 3817748708, %v8226_v59, %v8288_v22 }
  0x6a   : > { %11184 = vst [vmem:[#allocation21_spill] sm:$0xff] %v8270_v3  ;;  %vm8278_vm1 = vmand %vm11185_vm12, %vm1310_vm14  ;;  %vm11191_vm7 = vcmp.ne.s32.totalorder %v8191_v24, 0  ;;  %vm11192_vm9 = vcmp.lt.s32.totalorder %v8191_v24, 0  ;;  %v11193_v43 = vmov 0  ;;  %v8300_v18 = vadd.s32 18, %v8208_v39 }
  0x6b   : > { %v11187_v57 = vsel %vm8278_vm1, 4294967295, %v11186_v57  ;;  %11189 = vst [vmem:[#allocation23_spill] sm:$0xff] %v8283_v19  ;;  %11190 = vst [vmem:[#allocation24_spill] sm:$0xff] %v8285_v52  ;;  %v1085_v21 = vmul.u32 18, %v1084_v12  ;;  %v8303_v42 = vmul.u32.u64.low 3817748708, %v8242_v33  ;;  %v8304_v47 = vmul.u32.u64.high 3817748708, %v8242_v33, %v8303_v42 }
  0x6c   : > { %11188 = vst [vmem:[#allocation22_spill] sm:$0xff] %v11187_v57  ;;  %vm8295_vm15 = vmand %vm11192_vm9, %vm11191_vm7  ;;  %v11197_v16 = vmov 0  ;;  %vm1316_vm14 = vcmp.ne.s32.totalorder %v8238_v10, 0  ;;  %vm1352_vm11 = vcmp.lt.s32.totalorder %v8238_v10, 0  ;;  %v1118_v22 = vmul.u32 18, %v1117_v28 }
  0x6d   : > { %v11194_v43 = vsel %vm8295_vm15, 4294967295, %v11193_v43  ;;  %11196 = vst [vmem:[#allocation26_spill] sm:$0xff] %v8300_v18  ;;  %vm8306_vm12 = vmand %vm1347_vm10, %vm1311_vm3  ;;  %v1096_v15 = vmul.u32 18, %v1095_v11  ;;  %v1150_v12 = vshrl.u32 %v8212_v55, 4  ;;  %v8322_v40 = vadd.s32 208, %v7843_v29 }
  0x6e   : > { %11195 = vst [vmem:[#allocation25_spill] sm:$0xff] %v11194_v43  ;;  %v11198_v16 = vsel %vm8306_vm12, 4294967295, %v11197_v16  ;;  %v8333_v13 = vadd.s32 18, %v8238_v10  ;;  %v2324_v42 = vshll.u32 %v8285_v52, 16  ;;  %vm8352_vm3 = vmand %vm1352_vm11, %vm1316_vm14  ;;  %v11201_v50 = vmov 0 }
  0x6f   : > { %11199 = vst [vmem:[#allocation27_spill] sm:$0xff] %v11198_v16  ;;  %v11202_v50 = vsel %vm8352_vm3, 4294967295, %v11201_v50  ;;  %v8357_v55 = vsub.s32 %v8128_v36, %v1085_v21  ;;  %v8360_v23 = vsub.s32 %v8139_v49, %v1118_v22  ;;  %v8363_v11 = vsub.s32 %v8142_v46, %v1096_v15 }
  0x70   : > { %11200 = vst [vmem:[#allocation28_spill] sm:$0xff] %v8333_v13  ;;  %11203 = vst [vmem:[#allocation29_spill] sm:$0xff] %v11202_v50  ;;  %v2322_v16 = vshrl.u32 %v8285_v52, 16  ;;  %v1128_v28 = vshrl.u32 %v8256_v27, 4  ;;  %v1151_v39 = vmul.u32 18, %v1150_v12  ;;  %v8372_v19 = vadd.s32 192, %v7843_v29 }
  0x71   : > { %11204 = vst [vmem:[#allocation30_spill] sm:$0xff] %v8357_v55  ;;  %11205 = vst [vmem:[#allocation31_spill] sm:$0xff] %v8360_v23  ;;  %v8368_v18 = vmul.u32.u64.low 3817748708, %v8322_v40  ;;  %v8369_v24 = vmul.u32.u64.high 3817748708, %v8322_v40, %v8368_v18  ;;  %v2326_v36 = vrot.slane %v2324_v42, 1  ;;  %v1161_v15 = vshrl.u32 %v8289_v25, 4 }
  0x72   : > { %11206 = vst [vmem:[#allocation32_spill] sm:$0xff] %v8363_v11  ;;  %v8380_v49 = vadd.s32 216, %v7843_v29  ;;  %vm1350_vm10 = vcmp.lt.s32.totalorder %v8357_v55, 0  ;;  %v1139_v18 = vshrl.u32 %v8304_v47, 4  ;;  %v8386_v46 = vadd.s32 200, %v7843_v29 }
  0x73   : > { %v8389_v27 = vadd.s32 18, %v8357_v55  ;;  %v8395_v25 = vsub.s32 %v8181_v20, %v1151_v39  ;;  %v1129_v22 = vmul.u32 18, %v1128_v28  ;;  %v1162_v47 = vmul.u32 18, %v1161_v15 }
  0x74   : > { %v8398_v42 = vmul.u32.u64.low 3817748708, %v8372_v19  ;;  %v8399_v12 = vmul.u32.u64.high 3817748708, %v8372_v19, %v8398_v42  ;;  %v8403_v21 = vmul.u32.u64.low 3817748708, %v8380_v49  ;;  %v8404_v52 = vmul.u32.u64.high 3817748708, %v8380_v49, %v8403_v21 }
  0x75   : > { %11207 = vst [vmem:[#allocation33_spill] sm:$0xff] %v8389_v27  ;;  %11208 = vst [vmem:[#allocation34_spill] sm:$0xff] %v8395_v25  ;;  %vm11209_vm7 = vcmp.ne.s32.totalorder %v8357_v55, 0  ;;  %v11210_v10 = vmov 0  ;;  %v1140_v20 = vmul.u32 18, %v1139_v18  ;;  %v8417_v42 = vadd.s32 240, %v7843_v29 }
  0x76   : > { %vm8408_vm9 = vmand %vm1350_vm10, %vm11209_vm7  ;;  %v8413_v39 = vmul.u32.u64.low 3817748708, %v8386_v46  ;;  %v8414_v28 = vmul.u32.u64.high 3817748708, %v8386_v46, %v8413_v39  ;;  %v8420_v15 = vadd.s32 18, %v8360_v23  ;;  %v8422_v13 = vor.u32 %v2326_v36, %v2322_v16 }
  0x77   : > { %v11211_v10 = vsel %vm8408_vm9, 4294967295, %v11210_v10  ;;  %v8425_v21 = vadd.s32 224, %v7843_v29  ;;  %v8428_v50 = vadd.s32 248, %v7843_v29  ;;  %vm11215_vm10 = vcmp.ne.s32.totalorder %v8360_v23, 0 }
  0x78   : > { %11212 = vst [vmem:[#allocation35_spill] sm:$0xff] %v11211_v10  ;;  %11213 = vst [vmem:[#allocation36_spill] sm:$0xff] %v8420_v15  ;;  %vm11216_vm7 = vcmp.lt.s32.totalorder %v8360_v23, 0  ;;  %v11217_v18 = vmov 0  ;;  %v8439_v39 = vadd.s32 18, %v8363_v11  ;;  %vm1320_vm14 = vcmp.ne.s32.totalorder %v8395_v25, 0 }
  0x79   : > { %11214 = vst [vmem:[#allocation37_spill] sm:$0xff] %v8422_v13  ;;  %vm8434_vm11 = vmand %vm11216_vm7, %vm11215_vm10  ;;  %vm1356_vm3 = vcmp.lt.s32.totalorder %v8395_v25, 0  ;;  %v1194_v16 = vshrl.u32 %v8369_v24, 4  ;;  %vm11221_vm12 = vcmp.ne.s32.totalorder %v8363_v11, 0  ;;  %vm11222_vm10 = vcmp.lt.s32.totalorder %v8363_v11, 0 }
  0x7a   : > { %v11218_v18 = vsel %vm8434_vm11, 4294967295, %v11217_v18  ;;  %11220 = vst [vmem:[#allocation39_spill] sm:$0xff] %v8439_v39  ;;  %vm8452_vm7 = vmand %vm11222_vm10, %vm11221_vm12  ;;  %v11223_v13 = vmov 0  ;;  %v8457_v43 = vadd.s32 18, %v8395_v25  ;;  %v8460_v3 = vsub.s32 %v8204_v32, %v1129_v22 }
  0x7b   : > { %11219 = vst [vmem:[#allocation38_spill] sm:$0xff] %v11218_v18  ;;  %v11224_v13 = vsel %vm8452_vm7, 4294967295, %v11223_v13  ;;  %v8463_v24 = vadd.s32 232, %v7843_v29  ;;  %v8466_v10 = vsub.s32 %v8226_v59, %v1162_v47  ;;  %v8469_v36 = vsub.s32 %v8242_v33, %v1140_v20  ;;  %vm8475_vm12 = vmand %vm1356_vm3, %vm1320_vm14 }
  0x7c   : > { %11225 = vst [vmem:[#allocation40_spill] sm:$0xff] %v11224_v13  ;;  %11226 = vst [vmem:[#allocation41_spill] sm:$0xff] %v8457_v43  ;;  %v8472_v55 = vmul.u32.u64.low 3817748708, %v8417_v42  ;;  %v8473_v27 = vmul.u32.u64.high 3817748708, %v8417_v42, %v8472_v55  ;;  %v11228_v57 = vmov 0  ;;  %v1172_v47 = vshrl.u32 %v8399_v12, 4 }
  0x7d   : > { %11227 = vst [vmem:[#allocation42_spill] sm:$0xff] %v8466_v10  ;;  %v11229_v57 = vsel %vm8475_vm12, 4294967295, %v11228_v57  ;;  %v8480_v32 = vmul.u32.u64.low 3817748708, %v8425_v21  ;;  %v8481_v22 = vmul.u32.u64.high 3817748708, %v8425_v21, %v8480_v32  ;;  %v1195_v55 = vmul.u32 18, %v1194_v16 }
  0x7e   : > { %11230 = vst [vmem:[#allocation43_spill] sm:$0xff] %v11229_v57  ;;  %v8484_v4 = vmul.u32.u64.low 3817748708, %v8428_v50  ;;  %v8485_v37 = vmul.u32.u64.high 3817748708, %v8428_v50, %v8484_v4  ;;  %v1205_v20 = vshrl.u32 %v8404_v52, 4  ;;  %vm1354_vm14 = vcmp.lt.s32.totalorder %v8460_v3, 0 }
  0x7f   : > { %v8499_v32 = vmul.u32.u64.low 3817748708, %v8463_v24  ;;  %v8500_v4 = vmul.u32.u64.high 3817748708, %v8463_v24, %v8499_v32  ;;  %v8508_v33 = vadd.s32 18, %v8460_v3  ;;  %v1183_v12 = vshrl.u32 %v8414_v28, 4 }
  0x80   : > { %vm1321_vm10 = vcmp.ne.s32.totalorder %v8466_v10, 0  ;;  %vm1357_vm3 = vcmp.lt.s32.totalorder %v8466_v10, 0  ;;  %v8514_v52 = vadd.s32 18, %v8466_v10  ;;  %vm1319_vm7 = vcmp.ne.s32.totalorder %v8469_v36, 0 }
  0x81   : > { %v8519_v16 = vsub.s32 %v8322_v40, %v1195_v55  ;;  %v1173_v32 = vmul.u32 18, %v1172_v47  ;;  %v8522_v59 = vadd.s32 272, %v7843_v29  ;;  %vm11232_vm12 = vcmp.ne.s32.totalorder %v8460_v3, 0  ;;  %vm8543_vm11 = vmand %vm1357_vm3, %vm1321_vm10 }
  0x82   : > { %11231 = vst [vmem:[#allocation44_spill] sm:$0xff] %v8514_v52  ;;  %vm8526_vm9 = vmand %vm1354_vm14, %vm11232_vm12  ;;  %v11233_v28 = vmov 0  ;;  %v1206_v25 = vmul.u32 18, %v1205_v20  ;;  %v8531_v43 = vadd.s32 256, %v7843_v29  ;;  %v8534_v57 = vadd.s32 280, %v7843_v29 }
  0x83   : > { %v11234_v28 = vsel %vm8526_vm9, 4294967295, %v11233_v28  ;;  %v8537_v40 = vadd.s32 264, %v7843_v29  ;;  %v11235_v55 = vmov 0  ;;  %v1184_v47 = vmul.u32 18, %v1183_v12 }
  0x84   : > { %v11236_v55 = vsel %vm8543_vm11, 4294967295, %v11235_v55  ;;  %v1238_v20 = vshrl.u32 %v8473_v27, 4  ;;  %v8549_v11 = vmul.u32.u64.low 3817748708, %v8522_v59  ;;  %v8550_v39 = vmul.u32.u64.high 3817748708, %v8522_v59, %v8549_v11 }
  0x85   : > { %v1216_v13 = vshrl.u32 %v8481_v22, 4  ;;  %v1249_v29 = vshrl.u32 %v8485_v37, 4  ;;  %v8555_v23 = vmul.u32.u64.low 3817748708, %v8531_v43  ;;  %v8556_v15 = vmul.u32.u64.high 3817748708, %v8531_v43, %v8555_v23 }
  0x86   : > { %v8559_v18 = vmul.u32.u64.low 3817748708, %v8534_v57  ;;  %v8560_v62 = vmul.u32.u64.high 3817748708, %v8534_v57, %v8559_v18  ;;  %v8563_v12 = vmul.u32.u64.low 3817748708, %v8537_v40  ;;  %v8564_v31 = vmul.u32.u64.high 3817748708, %v8537_v40, %v8563_v12 }
  0x87   : > { %v8575_v23 = vsub.s32 %v8372_v19, %v1173_v32  ;;  %v1227_v27 = vshrl.u32 %v8500_v4, 4  ;;  %v8579_v18 = vadd.s32 18, %v8469_v36  ;;  %vm1324_vm12 = vcmp.ne.s32.totalorder %v8519_v16, 0 }
  0x88   : > { %v1239_v22 = vmul.u32 18, %v1238_v20  ;;  %v1282_v12 = vshrl.u32 %v8550_v39, 4  ;;  %vm11238_vm3 = vcmp.lt.s32.totalorder %v8469_v36, 0  ;;  %v11239_v11 = vmov 0 }
  0x89   : > { %11237 = vst [vmem:[#allocation45_spill] sm:$0xff] %v8575_v23  ;;  %vm8587_vm14 = vmand %vm11238_vm3, %vm1319_vm7  ;;  %vm1360_vm10 = vcmp.lt.s32.totalorder %v8519_v16, 0  ;;  %v8593_v19 = vsub.s32 %v8380_v49, %v1206_v25  ;;  %v1217_v4 = vmul.u32 18, %v1216_v13  ;;  %v1260_v32 = vshrl.u32 %v8556_v15, 4 }
  0x8a   : > { %v11240_v11 = vsel %vm8587_vm14, 4294967295, %v11239_v11  ;;  %v8597_v20 = vadd.s32 18, %v8519_v16  ;;  %v8600_v39 = vsub.s32 %v8386_v46, %v1184_v47  ;;  %v1250_v37 = vmul.u32 18, %v1249_v29  ;;  %vm8612_vm11 = vmand %vm1360_vm10, %vm1324_vm12 }
  0x8b   : > { %11241 = vst [vmem:[#allocation46_spill] sm:$0xff] %v8593_v19  ;;  %v1293_v10 = vshrl.u32 %v8560_v62, 4  ;;  %vm1322_vm7 = vcmp.ne.s32.totalorder %v8575_v23, 0  ;;  %vm1358_vm3 = vcmp.lt.s32.totalorder %v8575_v23, 0  ;;  %v1228_v52 = vmul.u32 18, %v1227_v27 }
  0x8c   : > { %11242 = vst [vmem:[#allocation47_spill] sm:$0xff] %v8600_v39  ;;  %v1271_v49 = vshrl.u32 %v8564_v31, 4  ;;  %v11243_v46 = vmov 0  ;;  %v8617_v62 = vadd.s32 18, %v8575_v23  ;;  %v8620_v25 = vsub.s32 %v8417_v42, %v1239_v22  ;;  %vm8627_vm14 = vmand %vm1358_vm3, %vm1322_vm7 }
  0x8d   : > { %v11244_v46 = vsel %vm8612_vm11, 4294967295, %v11243_v46  ;;  %v1283_v15 = vmul.u32 18, %v1282_v12  ;;  %vm1325_vm9 = vcmp.ne.s32.totalorder %v8593_v19, 0  ;;  %vm1361_vm15 = vcmp.lt.s32.totalorder %v8593_v19, 0 }
  0x8e   : > { %11245 = vst [vmem:[#allocation48_spill] sm:$0xff] %v8620_v25  ;;  %v8625_v31 = vsub.s32 %v8425_v21, %v1217_v4  ;;  %v1261_v47 = vmul.u32 18, %v1260_v32  ;;  %v11246_v29 = vmov 0  ;;  %vm1359_vm10 = vcmp.lt.s32.totalorder %v8600_v39, 0  ;;  %vm8646_vm7 = vmand %vm1361_vm15, %vm1325_vm9 }
  0x8f   : > { %v11247_v29 = vsel %vm8627_vm14, 4294967295, %v11246_v29  ;;  %v8634_v42 = vsub.s32 %v8428_v50, %v1250_v37  ;;  %v1294_v27 = vmul.u32 18, %v1293_v10  ;;  %v8641_v21 = vadd.s32 18, %v8593_v19 }
  0x90   : > { %v8644_v12 = vsub.s32 %v8463_v24, %v1228_v52  ;;  %v1272_v4 = vmul.u32 18, %v1271_v49  ;;  %v11250_v32 = vmov 0  ;;  %v8651_v50 = vadd.s32 18, %v8600_v39 }
  0x91   : > { %11248 = vst [vmem:[#allocation49_spill] sm:$0xff] %v8641_v21  ;;  %v11251_v32 = vsel %vm8646_vm7, 4294967295, %v11250_v32  ;;  %v8656_v10 = vsub.s32 %v8522_v59, %v1283_v15  ;;  %v11254_v24 = vsel %vm7997_vm5, %v7915_v5, %v7903_v63  ;;  %vm11257_vm15 = vcmp.ne.s32.totalorder %v8600_v39, 0  ;;  %v6348_v5 = vld [vmem:[%s11016_s4 + $0xc] sm:$0xf] }
  0x92   : > { %11249 = vst [vmem:[#allocation50_spill] sm:$0xff] %v8644_v12  ;;  %11252 = vst [vmem:[#allocation51_spill] sm:$0xff] %v11251_v32  ;;  %vm8663_vm11 = vcmp.lt.s32.totalorder %v11254_v24, 16  ;;  %v11258_v49 = vmov 0  ;;  %v8680_v63 = vsub.s32 %v8531_v43, %v1261_v47  ;;  %vm8690_vm5 = vcmp.lt.s32.totalorder %v11262_v44, 16 }
  0x93   : > { %11253 = vst [vmem:[#allocation52_spill] sm:$0xff] %v8651_v50  ;;  %vm8673_vm9 = vmand %vm1359_vm10, %vm11257_vm15  ;;  %v8697_v43 = vsub.s32 %v8534_v57, %v1294_v27  ;;  %vm11266_vm3 = vcmask 1043456   ;;  %v11274_v47 = vmov 0  ;;  %v8732_v8 = vsub.s32 %v8537_v40, %v1272_v4  ;;  %v11328_v27 = vld [vmem:[#allocation5_spill] sm:$0xff] }
  0x94   : > { %v11259_v49 = vsel %vm8673_vm9, 4294967295, %v11258_v49  ;;  %11261 = vst [vmem:[#allocation54_spill] sm:$0xff] %v8680_v63  ;;  %7492 = vmatprep.subr.msk.bf16.mxu1 %vm11266_vm3, %v6348_v5  ;;  %vm11267_vm12 = vmmov %vm11266_vm3  ;;  %vm11273_vm3 = vcmp.lt.s32.totalorder %v8620_v25, 0  ;;  %vm11277_vm7 = vnez %v11142_v54  ;;  %v8754_v4 = vadd.s32 18, %v8620_v25 }
  0x95   : > { %11260 = vst [vmem:[#allocation53_spill] sm:$0xff] %v11259_v49  ;;  %11265 = vst [vmem:[#allocation55_spill] sm:$0xff] %v8697_v43  ;;  %v8701_v15 = vsel %vm11267_vm12, %v6348_v5, 0  ;;  %vm11272_vm12 = vcmp.ne.s32.totalorder %v8620_v25, 0  ;;  %v11278_v53 = vsel %vm11277_vm7, %v7982_v41, %v7939_v17  ;;  %vm11283_vm0 = vcmp.lt.s32.totalorder %v8625_v31, 0 }
  0x96   : > { %11268 = vst [vmem:[#allocation56_spill] sm:$0xff] %v8701_v15  ;;  %vm8725_vm15 = vmand %vm11273_vm3, %vm11272_vm12  ;;  %7198 = vmatpush3.bf16.msra.mxu1 %v8701_v15  ;;  %vm8745_vm12 = vcmp.lt.s32.totalorder %v11278_v53, 16  ;;  %vm11282_vm3 = vcmp.ne.s32.totalorder %v8625_v31, 0  ;;  %v8767_v41 = vadd.s32 18, %v8625_v31  ;;  %vm11286_vm9 = vcmp.ne.s32.totalorder %v8634_v42, 0 }
  0x97   : > { %v11275_v47 = vsel %vm8725_vm15, 4294967295, %v11274_v47  ;;  %11276 = vst [vmem:[#allocation57_spill] sm:$0xff] %v8732_v8  ;;  %11281 = vst [vmem:[#allocation58_spill] sm:$0xff] %v8754_v4  ;;  %vm11287_vm1 = vcmp.lt.s32.totalorder %v8634_v42, 0  ;;  %v8778_v5 = vadd.s32 18, %v8634_v42  ;;  %vm11290_vm14 = vcmp.ne.s32.totalorder %v8644_v12, 0 }
  0x98   : > { %vm8760_vm10 = vmand %vm11283_vm0, %vm11282_vm3  ;;  %vm11291_vm7 = vcmp.lt.s32.totalorder %v8644_v12, 0  ;;  %v8792_v40 = vadd.s32 18, %v8644_v12  ;;  %vm11294_vm3 = vcmp.ne.s32.totalorder %v8656_v10, 0  ;;  %vm11295_vm0 = vcmp.lt.s32.totalorder %v8656_v10, 0 }
  0x99   : > { %vm8773_vm8 = vmand %vm11287_vm1, %vm11286_vm9  ;;  %v8806_v22 = vadd.s32 18, %v8656_v10  ;;  %vm11299_vm9 = vcmp.ne.s32.totalorder %v8680_v63, 0  ;;  %vm11300_vm1 = vcmp.lt.s32.totalorder %v8680_v63, 0  ;;  %v8821_v50 = vadd.s32 18, %v8680_v63 }
  0x9a   : > { %vm8787_vm4 = vmand %vm11291_vm7, %vm11290_vm14  ;;  %v8824_v49 = vadd.s32 18, %v8697_v43  ;;  %v11307_v32 = vmov 0  ;;  %v8844_v23 = vadd.s32 18, %v8732_v8  ;;  %vm11311_vm14 = vcmask 1043456  }
  0x9b   : > { %vm8801_vm13 = vmand %vm11295_vm0, %vm11294_vm3  ;;  %11303 = vst [vmem:[#allocation60_spill] sm:$0xff] %v8821_v50  ;;  %vm11312_vm3 = vnez %v11144_v58 }
  0x9c   : > { %vm8816_vm0 = vmand %vm11300_vm1, %vm11299_vm9  ;;  %11304 = vst [vmem:[#allocation61_spill] sm:$0xff] %v8824_v49  ;;  %vm11305_vm1 = vcmp.ne.s32.totalorder %v8697_v43, 0  ;;  %vm11306_vm9 = vcmp.lt.s32.totalorder %v8697_v43, 0  ;;  %v11313_v21 = vsel %vm11312_vm3, %v8020_v51, %v7967_v35  ;;  %v11318_v35 = vmov 0 }
  0x9d   : > { %vm8839_vm7 = vmand %vm11306_vm9, %vm11305_vm1  ;;  %11310 = vst [vmem:[#allocation63_spill] sm:$0xff] %v8844_v23  ;;  %vm8853_vm15 = vcmp.lt.s32.totalorder %v11313_v21, 16  ;;  %vm11317_vm1 = vcmp.lt.s32.totalorder %v8732_v8, 0  ;;  %vm11327_vm3 = vnez %v11150_v7 }
  0x9e   : > { %v11308_v32 = vsel %vm8839_vm7, 4294967295, %v11307_v32 }
  0x9f   : > { %11309 = vst [vmem:[#allocation62_spill] sm:$0xff] %v11308_v32 }
  0xed   : > { %v6783_v17 = vpop.f32.mrb[0].mxu0 }
  0xee   : > { %v752_v44 = vmul.f32 %v6783_v17, %v8706_v1  ;;  %v600_v14 = vpop.f32.mrb[1].mxu0  ;;  %v11296_v17 = vmov 0 }
  0xef   : > { %v750_v57 = vmul.f32 %v8706_v1, %v600_v14  ;;  %v6784_v37 = vpop.f32.mrb[2].mxu0  ;;  %v11297_v17 = vsel %vm8801_vm13, 4294967295, %v11296_v17 }
  0xf0   : > { %11298 = vst [vmem:[#allocation59_spill] sm:$0xff] %v11297_v17  ;;  %v795_v13 = vadd.f32 %v8738_v34, %v752_v44  ;;  %v753_v14 = vmul.f32 %v6784_v37, %v8706_v1  ;;  %v603_v15 = vpop.f32.mrb[3].mxu0  ;;  %v6386_v44 = vld [vmem:[%s11016_s4 + $0x10] sm:$0xf] }
  0xf1   : > { %v793_v37 = vadd.f32 %v8738_v34, %v750_v57  ;;  %v751_v19 = vmul.f32 %v8706_v1, %v603_v15  ;;  %7493 = vmatprep.subr.msk.bf16.mxu1 %vm11311_vm14, %v6386_v44  ;;  %vm11316_vm14 = vcmp.ne.s32.totalorder %v8732_v8, 0 }
  0xf2   : > { %v831_v57 = vmax.f32 %v795_v13, 0.0  ;;  %v796_v15 = vadd.f32 %v8738_v34, %v753_v14  ;;  %vm8869_vm9 = vmand %vm11317_vm1, %vm11316_vm14  ;;  %vm11332_vm14 = vsmask.f32 5392  ;;  %vm11333_vm1 = vsmask.f32 1280 }
  0xf3   : > { %v11319_v35 = vsel %vm8869_vm9, 4294967295, %v11318_v35  ;;  %v829_v51 = vmax.f32 %v793_v37, 0.0  ;;  %v794_v58 = vadd.f32 %v8738_v34, %v751_v19 }
  0xf4   : > { %11320 = vst [vmem:[#allocation64_spill] sm:$0xff] %v11319_v35  ;;  %v1588_v13 = vsel %vm8663_vm11, %v831_v57, 0.0  ;;  %v832_v4 = vmax.f32 %v796_v15, 0.0  ;;  %vm11321_vm11 = vcmask 1043456  }
  0xf5   : > { %v6530_v21 = vpack.c.bf16 %v1588_v13, %v1588_v13  ;;  %v1586_v12 = vsel %vm8690_vm5, %v829_v51, 0.0  ;;  %v830_v17 = vmax.f32 %v794_v58, 0.0  ;;  %v6787_v14 = vpop.f32.mrb[4].mxu0  ;;  %v8902_v19 = vsel %vm11321_vm11, %v6386_v44, 0  ;;  %vm8927_vm11 = vmor %vm11333_vm1, %vm11332_vm14 }
  0xf6   : > { %v6528_v57 = vpack.c.bf16 %v1586_v12, %v1586_v12  ;;  %v1589_v15 = vsel %vm8713_vm6, %v832_v4, 0.0  ;;  %v756_v37 = vmul.f32 %v6787_v14, %v8706_v1  ;;  %v616_v63 = vpop.f32.mrb[5].mxu0  ;;  %11322 = vst [vmem:[#allocation65_spill] sm:$0xff] %v8902_v19  ;;  %vm11323_vm5 = vnez %v11146_v61  ;;  %v2146_v19 = vld [vmem:[#allocation2 + $0x8] sm:$0xe] }
  0xf7   : > { %v1770_v13 = vshrl.u32 %v6530_v21, 16  ;;  %v1773_v59 = vshll.u32 %v6530_v21, 16  ;;  %v6531_v51 = vpack.c.bf16 %v1589_v15, %v1589_v15  ;;  %v1587_v58 = vsel %vm8745_vm12, %v830_v17, 0.0  ;;  %v6788_v43 = vpop.f32.mrb[6].mxu0 }
  0xf8   : > { %v1751_v49 = vshrl.u32 %v6528_v57, 16  ;;  %v1754_v35 = vshll.u32 %v6528_v57, 16  ;;  %v6529_v52 = vpack.c.bf16 %v1587_v58, %v1587_v58  ;;  %v799_v12 = vadd.f32 %v8738_v34, %v756_v37  ;;  %v619_v21 = vpop.f32.mrb[7].mxu0 }
  0xf9   : > { %v11324_v48 = vsel %vm11323_vm5, %v8080_v6, %v7976_v38  ;;  %v11329_v17 = vsel %vm11327_vm3, %v8091_v9, %v11328_v27  ;;  %v1772_v14 = vrot.slane %v1770_v13, 6  ;;  %v1775_v37 = vrot.slane %v1773_v59, 7 }
  0xfa   : > { %vm8912_vm6 = vcmp.lt.s32.totalorder %v11324_v48, 16  ;;  %vm8921_vm12 = vcmp.lt.s32.totalorder %v11329_v17, 16  ;;  %v1780_v61 = vshrl.u32 %v6531_v51, 16  ;;  %v1783_v57 = vshll.u32 %v6531_v51, 16 }
  0xfb   : > { %v1753_v15 = vrot.slane %v1751_v49, 6  ;;  %v1756_v38 = vrot.slane %v1754_v35, 7  ;;  %v1760_v6 = vshrl.u32 %v6529_v52, 16  ;;  %v1763_v58 = vshll.u32 %v6529_v52, 16  ;;  %v11336_v49 = vld [vmem:[#allocation8_spill] sm:$0xff]  ;;  %v11338_v35 = vld [vmem:[#allocation9_spill] sm:$0xff] }
  0xfc   : > { %v1776_v48 = vor.u32 %v1775_v37, %v1772_v14  ;;  %v1782_v8 = vrot.slane %v1780_v61, 6  ;;  %v1785_v7 = vrot.slane %v1783_v57, 7  ;;  %v835_v23 = vmax.f32 %v799_v12, 0.0  ;;  %v11339_v52 = vld [vmem:[#allocation6_spill] sm:$0xff]  ;;  %v11343_v12 = vld [vmem:[#allocation11_spill] sm:$0xff] }
  0xfd   : > { %v1757_v27 = vor.u32 %v1756_v38, %v1753_v15  ;;  %v1762_v13 = vrot.slane %v1760_v6, 6  ;;  %v1765_v59 = vrot.slane %v1763_v58, 7  ;;  %v754_v51 = vmul.f32 %v8706_v1, %v616_v63  ;;  %v11345_v37 = vld [vmem:[#allocation10_spill] sm:$0xff]  ;;  %v11346_v61 = vld [vmem:[#allocation7_spill] sm:$0xff] }
  0xfe   : > { %vm11337_vm5 = vnez %v11336_v49  ;;  %vm11344_vm9 = vnez %v11343_v12  ;;  %v1778_v38 = vrot.slane %v1776_v48, 4  ;;  %v8950_v63 = vor.u32 %v1785_v7, %v1782_v8  ;;  %v6791_v49 = vpop.f32.mrb[8].mxu0  ;;  %v2223_v8 = vld [vmem:[%s11016_s4] sm:$0xf] }
  0xff   : > { %v11340_v17 = vsel %vm11337_vm5, %v11338_v35, %v11339_v52  ;;  %v11347_v57 = vsel %vm11344_vm9, %v11345_v37, %v11346_v61  ;;  %v1592_v6 = vsel %vm8853_vm15, %v835_v23, 0.0  ;;  %v757_v58 = vmul.f32 %v6788_v43, %v8706_v1  ;;  %v11350_v52 = vld [vmem:[#allocation4_spill] sm:$0xff]  ;;  %v632_v37 = vpop.f32.mrb[9].mxu0 }
 0x100   : > { %vm8937_vm3 = vcmp.lt.s32.totalorder %v11340_v17, 16  ;;  %vm8946_vm14 = vcmp.lt.s32.totalorder %v11347_v57, 16  ;;  %v1758_v35 = vrot.slane %v1757_v27, 4  ;;  %vm11351_vm1 = vnez %v11350_v52  ;;  %v6792_v7 = vpop.f32.mrb[10].mxu0 }
 0x101   : > { %v2147_v17 = vsel %vm11351_vm1, %v1757_v27, %v2146_v19  ;;  %v1766_v12 = vor.u32 %v1765_v59, %v1762_v13  ;;  %v6534_v32 = vpack.c.bf16 %v1592_v6, %v1592_v6  ;;  %v11352_v61 = vsel %vm8218_vm2, %v8184_v2, %v8153_v56  ;;  %v635_v13 = vpop.f32.mrb[11].mxu0 }
 0x102   : > { %vm8962_vm9 = vcmp.lt.s32.totalorder %v11352_v61, 16  ;;  %2148 = vst [vmem:[#allocation2 + $0x8] sm:$0xe] %v2147_v17  ;;  %v1787_v23 = vsel %vm8927_vm11, %v1778_v38, %v8950_v63  ;;  %v1788_v25 = vrot.slane %v8950_v63, 4  ;;  %v797_v43 = vadd.f32 %v8738_v34, %v754_v51 }
 0x103   : > { %v800_v19 = vadd.f32 %v8738_v34, %v757_v58  ;;  %vm11355_vm15 = vcmask 60416   ;;  %v1767_v56 = vsel %vm8927_vm11, %v1758_v35, %v1766_v12  ;;  %v1768_v2 = vrot.slane %v1766_v12, 4 }
 0x104   : > { %2151 = vst.msk [vmem:[#allocation2 + $0x14] sm:$0xf] %vm11355_vm15, %v1787_v23  ;;  %v1810_v45 = vshrl.u32 %v6534_v32, 16  ;;  %v1813_v27 = vshll.u32 %v6534_v32, 16  ;;  %vm11356_vm2 = vmmov %vm11355_vm15  ;;  %v833_v59 = vmax.f32 %v797_v43, 0.0  ;;  %v755_v38 = vmul.f32 %v8706_v1, %v619_v21 }
 0x105   : > { %2149 = vst.msk [vmem:[#allocation2 + $0xc] sm:$0xf] %vm11356_vm2, %v1767_v56  ;;  %v836_v57 = vmax.f32 %v800_v19, 0.0  ;;  %v760_v51 = vmul.f32 %v6791_v49, %v8706_v1  ;;  %v1777_v6 = vsel %vm8927_vm11, %v1768_v2, %v1776_v48  ;;  %v758_v17 = vmul.f32 %v8706_v1, %v632_v37  ;;  %vm11357_vm5 = vmmov %vm11356_vm2  ;;  %v11384_v49 = vld [vmem:[#allocation25_spill] sm:$0xff] }
 0x106   : > { %v1812_v58 = vrot.slane %v1810_v45, 6  ;;  %v1815_v52 = vrot.slane %v1813_v27, 7  ;;  %2150 = vst.msk [vmem:[#allocation2 + $0x10] sm:$0xf] %vm11357_vm5, %v1777_v6  ;;  %v1590_v32 = vsel %vm8912_vm6, %v833_v59, 0.0  ;;  %v798_v12 = vadd.f32 %v8738_v34, %v755_v38  ;;  %vm11376_vm5 = vmmov %vm11356_vm2 }
 0x107   : > { %v1593_v35 = vsel %vm8921_vm12, %v836_v57, 0.0  ;;  %v803_v21 = vadd.f32 %v8738_v34, %v760_v51  ;;  %vm11358_vm1 = vnez %v11172_v0  ;;  %v6532_v4 = vpack.c.bf16 %v1590_v32, %v1590_v32  ;;  %v6795_v0 = vpop.f32.mrb[12].mxu0  ;;  %v11364_v32 = vld [vmem:[#allocation12_spill] sm:$0xff] }
 0x108   : > { %v11359_v48 = vsel %vm11358_vm1, %v8195_v26, %v8157_v60  ;;  %v8997_v37 = vor.u32 %v1815_v52, %v1812_v58  ;;  %v6535_v61 = vpack.c.bf16 %v1593_v35, %v1593_v35  ;;  %v801_v44 = vadd.f32 %v8738_v34, %v758_v17  ;;  %v9003_v27 = vpop.f32.mrb[13].mxu0  ;;  %v11363_v17 = vld [vmem:[#allocation16_spill] sm:$0xff] }
 0x109   : > { %vm8993_vm15 = vcmp.lt.s32.totalorder %v11359_v48, 16  ;;  %v834_v23 = vmax.f32 %v798_v12, 0.0  ;;  %v839_v43 = vmax.f32 %v803_v21, 0.0  ;;  %v761_v19 = vmul.f32 %v6792_v7, %v8706_v1  ;;  %v9009_v6 = vpop.f32.mrb[14].mxu0 }
 0x10a   : > { %v759_v56 = vmul.f32 %v8706_v1, %v635_v13  ;;  %v1818_v2 = vrot.slane %v8997_v37, 4  ;;  %v1790_v60 = vshrl.u32 %v6532_v4, 16  ;;  %v1793_v26 = vshll.u32 %v6532_v4, 16  ;;  %v9020_v14 = vpop.f32.mrb[15].mxu0 }
 0x10b   : > { %v1820_v45 = vshrl.u32 %v6535_v61, 16  ;;  %v1823_v59 = vshll.u32 %v6535_v61, 16  ;;  %v1591_v57 = vsel %vm8937_vm3, %v834_v23, 0.0  ;;  %v1596_v38 = vsel %vm8946_vm14, %v839_v43, 0.0 }
 0x10c   : > { %v837_v51 = vmax.f32 %v801_v44, 0.0  ;;  %v1792_v7 = vrot.slane %v1790_v60, 6  ;;  %v1795_v13 = vrot.slane %v1793_v26, 7  ;;  %v6533_v52 = vpack.c.bf16 %v1591_v57, %v1591_v57  ;;  %v11368_v57 = vld [vmem:[#allocation19_spill] sm:$0xff] }
 0x10d   : > { %v1822_v58 = vrot.slane %v1820_v45, 6  ;;  %vm11362_vm6 = vnez %v11177_v30  ;;  %v1825_v15 = vrot.slane %v1823_v59, 7  ;;  %v6538_v21 = vpack.c.bf16 %v1596_v38, %v1596_v38 }
 0x10e   : > { %v11365_v35 = vsel %vm11362_vm6, %v11363_v17, %v11364_v32  ;;  %v1594_v48 = vsel %vm8962_vm9, %v837_v51, 0.0  ;;  %v804_v4 = vadd.f32 %v8738_v34, %v761_v19  ;;  %v1796_v61 = vor.u32 %v1795_v13, %v1792_v7  ;;  %v11370_v17 = vld [vmem:[#allocation20_spill] sm:$0xff]  ;;  %v11371_v32 = vld [vmem:[#allocation13_spill] sm:$0xff] }
 0x10f   : > { %vm9016_vm12 = vcmp.lt.s32.totalorder %v11365_v35, 16  ;;  %v1800_v44 = vshrl.u32 %v6533_v52, 16  ;;  %v1803_v23 = vshll.u32 %v6533_v52, 16  ;;  %v6536_v30 = vpack.c.bf16 %v1594_v48, %v1594_v48 }
 0x110   : > { %v1826_v43 = vor.u32 %v1825_v15, %v1822_v58  ;;  %v1850_v60 = vshrl.u32 %v6538_v21, 16  ;;  %v1853_v26 = vshll.u32 %v6538_v21, 16  ;;  %v840_v45 = vmax.f32 %v804_v4, 0.0  ;;  %v6799_v21 = vpop.f32.mrb[16].mxu0 }
 0x111   : > { %vm11369_vm3 = vnez %v11368_v57  ;;  %v1797_v19 = vsel %vm8927_vm11, %v1788_v25, %v1796_v61  ;;  %v1798_v38 = vrot.slane %v1796_v61, 4  ;;  %v1802_v51 = vrot.slane %v1800_v44, 6  ;;  %v11377_v61 = vld [vmem:[#allocation22_spill] sm:$0xff]  ;;  %v11379_v44 = vld [vmem:[#allocation21_spill] sm:$0xff] }
 0x112   : > { %v11372_v35 = vsel %vm11369_vm3, %v11370_v17, %v11371_v32  ;;  %v1805_v7 = vrot.slane %v1803_v23, 7  ;;  %vm11375_vm9 = vcmask 1043456   ;;  %2152 = vst.msk [vmem:[#allocation2 + $0x18] sm:$0xf] %vm11356_vm2, %v1797_v19  ;;  %v1827_v13 = vsel %vm8927_vm11, %v1818_v2, %v1826_v43  ;;  %v11380_v23 = vld [vmem:[#allocation14_spill] sm:$0xff]  ;;  %v9057_v2 = vpop.f32.mrb[17].mxu0 }
 0x113   : > { %vm9030_vm14 = vcmp.lt.s32.totalorder %v11372_v35, 16  ;;  %7489 = vmatprep.subr.msk.bf16.mxu0 %vm11375_vm9, %v2223_v8  ;;  %v1828_v58 = vrot.slane %v1826_v43, 4  ;;  %v1852_v52 = vrot.slane %v1850_v60, 6  ;;  %v1855_v15 = vrot.slane %v1853_v26, 7  ;;  %2155 = vst.msk [vmem:[#allocation2 + $0x24] sm:$0xf] %vm11376_vm5, %v1827_v13  ;;  %vm11391_vm9 = vmmov %vm11356_vm2 }
 0x114   : > { %v1806_v63 = vor.u32 %v1805_v7, %v1802_v51  ;;  %v1830_v48 = vshrl.u32 %v6536_v30, 16  ;;  %v1833_v4 = vshll.u32 %v6536_v30, 16  ;;  %v1597_v25 = vsel %vm8993_vm15, %v840_v45, 0.0  ;;  %v11386_v45 = vld [vmem:[#allocation23_spill] sm:$0xff]  ;;  %v9072_v19 = vpop.f32.mrb[18].mxu0 }
 0x115   : > { %vm11378_vm1 = vnez %v11377_v61  ;;  %v9059_v43 = vor.u32 %v1855_v15, %v1852_v52  ;;  %v6539_v60 = vpack.c.bf16 %v1597_v25, %v1597_v25  ;;  %v802_v26 = vadd.f32 %v8738_v34, %v759_v56  ;;  %v11387_v32 = vld [vmem:[#allocation15_spill] sm:$0xff]  ;;  %v9076_v56 = vpop.f32.mrb[19].mxu0 }
 0x116   : > { %v11381_v57 = vsel %vm11378_vm1, %v11379_v44, %v11380_v23  ;;  %v764_v30 = vmul.f32 %v6795_v0, %v8706_v1  ;;  %vm11385_vm15 = vnez %v11384_v49  ;;  %v1807_v51 = vsel %vm8927_vm11, %v1798_v38, %v1806_v63  ;;  %vm11399_vm1 = vmmov %vm11391_vm9 }
 0x117   : > { %vm9053_vm6 = vcmp.lt.s32.totalorder %v11381_v57, 16  ;;  %v11388_v35 = vsel %vm11385_vm15, %v11386_v45, %v11387_v32  ;;  %v1808_v7 = vrot.slane %v1806_v63, 4  ;;  %v1832_v13 = vrot.slane %v1830_v48, 6  ;;  %2153 = vst.msk [vmem:[#allocation2 + $0x1c] sm:$0xf] %vm11391_vm9, %v1807_v51  ;;  %v11392_v63 = vld [vmem:[#allocation27_spill] sm:$0xff] }
 0x118   : > { %vm9068_vm3 = vcmp.lt.s32.totalorder %v11388_v35, 16  ;;  %v1835_v52 = vrot.slane %v1833_v4, 7  ;;  %v1858_v0 = vrot.slane %v9059_v43, 4  ;;  %v1860_v15 = vshrl.u32 %v6539_v60, 16  ;;  %v11394_v48 = vld [vmem:[#allocation26_spill] sm:$0xff]  ;;  %v11395_v4 = vld [vmem:[#allocation17_spill] sm:$0xff] }
 0x119   : > { %v1863_v25 = vshll.u32 %v6539_v60, 16  ;;  %v838_v61 = vmax.f32 %v802_v26, 0.0  ;;  %v1817_v44 = vsel %vm8927_vm11, %v1808_v7, %v8997_v37  ;;  %v807_v57 = vadd.f32 %v8738_v34, %v764_v30  ;;  %v11400_v7 = vld [vmem:[#allocation29_spill] sm:$0xff] }
 0x11a   : > { %v1836_v23 = vor.u32 %v1835_v52, %v1832_v13  ;;  %v762_v38 = vmul.f32 %v8706_v1, %v9003_v27  ;;  %vm11393_vm2 = vnez %v11392_v63  ;;  %2154 = vst.msk [vmem:[#allocation2 + $0x20] sm:$0xf] %vm11399_vm1, %v1817_v44  ;;  %v1862_v60 = vrot.slane %v1860_v15, 6  ;;  %v11402_v13 = vld [vmem:[#allocation28_spill] sm:$0xff]  ;;  %v11403_v52 = vld [vmem:[#allocation18_spill] sm:$0xff] }
 0x11b   : > { %v11396_v49 = vsel %vm11393_vm2, %v11394_v48, %v11395_v4  ;;  %v1865_v26 = vrot.slane %v1863_v25, 7  ;;  %v1595_v37 = vsel %vm9016_vm12, %v838_v61, 0.0  ;;  %v765_v30 = vmul.f32 %v9009_v6, %v8706_v1  ;;  %vm11407_vm2 = vmmov %vm11399_vm1  ;;  %v9118_v61 = vpop.f32.mrb[20].mxu0 }
 0x11c   : > { %vm9091_vm5 = vcmp.lt.s32.totalorder %v11396_v49, 16  ;;  %v1837_v27 = vsel %vm8927_vm11, %v1828_v58, %v1836_v23  ;;  %v1838_v32 = vrot.slane %v1836_v23, 4  ;;  %v6537_v35 = vpack.c.bf16 %v1595_v37, %v1595_v37  ;;  %v9123_v4 = vpop.f32.mrb[21].mxu0  ;;  %vm11408_vm12 = vmmov %vm11399_vm1 }
 0x11d   : > { %v843_v51 = vmax.f32 %v807_v57, 0.0  ;;  %vm11401_vm15 = vnez %v11400_v7  ;;  %2156 = vst.msk [vmem:[#allocation2 + $0x28] sm:$0xf] %vm11407_vm2, %v1837_v27  ;;  %v9112_v12 = vor.u32 %v1865_v26, %v1862_v60  ;;  %v805_v6 = vadd.f32 %v8738_v34, %v762_v38 }
 0x11e   : > { %v11404_v63 = vsel %vm11401_vm15, %v11402_v13, %v11403_v52  ;;  %v808_v58 = vadd.f32 %v8738_v34, %v765_v30  ;;  %v763_v25 = vmul.f32 %v8706_v1, %v9020_v14  ;;  %v1840_v44 = vshrl.u32 %v6537_v35, 16  ;;  %v9129_v14 = vpop.f32.mrb[22].mxu0 }
 0x11f   : > { %vm9107_vm9 = vcmp.lt.s32.totalorder %v11404_v63, 16  ;;  %v1843_v23 = vshll.u32 %v6537_v35, 16  ;;  %v1600_v57 = vsel %vm9030_vm14, %v843_v51, 0.0  ;;  %v768_v48 = vmul.f32 %v6799_v21, %v8706_v1  ;;  %v9133_v21 = vpop.f32.mrb[23].mxu0  ;;  %vm11409_vm14 = vmmov %vm11399_vm1 }
 0x120   : > { %v1867_v38 = vsel %vm8927_vm11, %v1858_v0, %v9112_v12  ;;  %v1868_v49 = vrot.slane %v9112_v12, 4  ;;  %v6542_v60 = vpack.c.bf16 %v1600_v57, %v1600_v57  ;;  %v841_v26 = vmax.f32 %v805_v6, 0.0  ;;  %v9165_v45 = vpop.f32.mrb[24].mxu0 }
 0x121   : > { %2159 = vst.msk [vmem:[#allocation2 + $0x34] sm:$0xf] %vm11408_vm12, %v1867_v38  ;;  %v1842_v37 = vrot.slane %v1840_v44, 6  ;;  %v1845_v30 = vrot.slane %v1843_v23, 7  ;;  %v844_v59 = vmax.f32 %v808_v58, 0.0  ;;  %v806_v27 = vadd.f32 %v8738_v34, %v763_v25 }
 0x122   : > { %v1890_v35 = vshrl.u32 %v6542_v60, 16  ;;  %v1893_v51 = vshll.u32 %v6542_v60, 16  ;;  %v1598_v0 = vsel %vm9053_vm6, %v841_v26, 0.0  ;;  %v811_v7 = vadd.f32 %v8738_v34, %v768_v48 }
 0x123   : > { %v1846_v13 = vor.u32 %v1845_v30, %v1842_v37  ;;  %v6540_v52 = vpack.c.bf16 %v1598_v0, %v1598_v0  ;;  %v1601_v63 = vsel %vm9068_vm3, %v844_v59, 0.0  ;;  %v842_v12 = vmax.f32 %v806_v27, 0.0  ;;  %v11410_v37 = vld [vmem:[#allocation35_spill] sm:$0xff]  ;;  %v11412_v30 = vld [vmem:[#allocation33_spill] sm:$0xff]  ;;  %v11413_v59 = vld [vmem:[#allocation30_spill] sm:$0xff] }
 0x124   : > { %v1892_v6 = vrot.slane %v1890_v35, 6  ;;  %v1895_v44 = vrot.slane %v1893_v51, 7  ;;  %v6543_v58 = vpack.c.bf16 %v1601_v63, %v1601_v63  ;;  %v847_v23 = vmax.f32 %v811_v7, 0.0  ;;  %v11419_v51 = vld [vmem:[#allocation36_spill] sm:$0xff]  ;;  %v11420_v0 = vld [vmem:[#allocation31_spill] sm:$0xff] }
 0x125   : > { %v1847_v25 = vsel %vm8927_vm11, %v1838_v32, %v1846_v13  ;;  %v1848_v57 = vrot.slane %v1846_v13, 4  ;;  %v1870_v38 = vshrl.u32 %v6540_v52, 16  ;;  %v1873_v60 = vshll.u32 %v6540_v52, 16  ;;  %v11417_v32 = vld [vmem:[#allocation38_spill] sm:$0xff] }
 0x126   : > { %2157 = vst.msk [vmem:[#allocation2 + $0x2c] sm:$0xf] %vm11409_vm14, %v1847_v25  ;;  %v9143_v17 = vor.u32 %v1895_v44, %v1892_v6  ;;  %v1900_v48 = vshrl.u32 %v6543_v58, 16  ;;  %v1903_v26 = vshll.u32 %v6543_v58, 16  ;;  %v1599_v8 = vsel %vm9091_vm5, %v842_v12, 0.0  ;;  %v11424_v44 = vld [vmem:[#allocation40_spill] sm:$0xff] }
 0x127   : > { %vm11411_vm6 = vnez %v11410_v37  ;;  %vm11418_vm1 = vnez %v11417_v32  ;;  %v1857_v52 = vsel %vm8927_vm11, %v1848_v57, %v9059_v43  ;;  %v1872_v63 = vrot.slane %v1870_v38, 6  ;;  %v11426_v58 = vld [vmem:[#allocation39_spill] sm:$0xff]  ;;  %v11427_v25 = vld [vmem:[#allocation32_spill] sm:$0xff] }
 0x128   : > { %v11414_v27 = vsel %vm11411_vm6, %v11412_v30, %v11413_v59  ;;  %v11421_v7 = vsel %vm11418_vm1, %v11419_v51, %v11420_v0  ;;  %v1875_v12 = vrot.slane %v1873_v60, 7  ;;  %v6541_v6 = vpack.c.bf16 %v1599_v8, %v1599_v8  ;;  %v9179_v59 = vpop.f32.mrb[25].mxu0  ;;  %2158 = vst.msk [vmem:[#allocation2 + $0x30] sm:$0xf] %vm11408_vm12, %v1857_v52 }
 0x129   : > { %vm9152_vm3 = vcmp.lt.s32.totalorder %v11414_v27, 16  ;;  %vm9161_vm15 = vcmp.lt.s32.totalorder %v11421_v7, 16  ;;  %vm11425_vm5 = vnez %v11424_v44  ;;  %v1898_v27 = vrot.slane %v9143_v17, 4  ;;  %v9185_v38 = vpop.f32.mrb[26].mxu0  ;;  %v7604_v7 = vld [vmem:[#allocation2 + $0x8] sm:$0xff]  }
 0x12a   : > { %v11428_v37 = vsel %vm11425_vm5, %v11426_v58, %v11427_v25  ;;  %v1902_v32 = vrot.slane %v1900_v48, 6  ;;  %v1905_v43 = vrot.slane %v1903_v26, 7  ;;  %v1604_v57 = vsel %vm9107_vm9, %v847_v23, 0.0  ;;  %v9187_v44 = vpop.f32.mrb[27].mxu0  ;;  %vm11431_vm9 = vmmov %vm11408_vm12 }
 0x12b   : > { %vm9175_vm2 = vcmp.lt.s32.totalorder %v11428_v37, 16  ;;  %vm2320_vm14 = vsmask.f32 7424  ;;  %v1876_v60 = vor.u32 %v1875_v12, %v1872_v63  ;;  %v1880_v8 = vshrl.u32 %v6541_v6, 16  ;;  %vm11432_vm1 = vmmov %vm11431_vm9 }
 0x12c   : > { %v1883_v51 = vshll.u32 %v6541_v6, 16  ;;  %v6546_v0 = vpack.c.bf16 %v1604_v57, %v1604_v57  ;;  %vm2469_vm6 = vcmask 64512   ;;  %v9189_v58 = vor.u32 %v1905_v43, %v1902_v32 }
 0x12d   : > { %v766_v48 = vmul.f32 %v8706_v1, %v9057_v2  ;;  %v769_v15 = vmul.f32 %v9072_v19, %v8706_v1  ;;  %v767_v23 = vmul.f32 %v8706_v1, %v9076_v56  ;;  %v1877_v26 = vsel %vm8927_vm11, %v1868_v49, %v1876_v60  ;;  %v9204_v19 = vld [vmem:[#allocation2 + $0x10] sm:$0xff]   ;;  %v11436_v2 = vld [vmem:[#allocation34_spill] sm:$0xff] }
 0x12e   : > { %v1878_v52 = vrot.slane %v1876_v60, 4  ;;  %v1882_v63 = vrot.slane %v1880_v8, 6  ;;  %v1885_v12 = vrot.slane %v1883_v51, 7  ;;  %2160 = vst.msk [vmem:[#allocation2 + $0x38] sm:$0xf] %vm11431_vm9, %v1877_v26  ;;  %v1907_v6 = vsel %vm8927_vm11, %v1898_v27, %v9189_v58  ;;  %v11433_v27 = vld [vmem:[#allocation43_spill] sm:$0xff]  ;;  %vm11440_vm9 = vmmov %vm11432_vm1 }
 0x12f   : > { %v1930_v25 = vshrl.u32 %v6546_v0, 16  ;;  %v1933_v37 = vshll.u32 %v6546_v0, 16  ;;  %2163 = vst.msk [vmem:[#allocation2 + $0x44] sm:$0xf] %vm11432_vm1, %v1907_v6  ;;  %v809_v49 = vadd.f32 %v8738_v34, %v766_v48  ;;  %v812_v32 = vadd.f32 %v8738_v34, %v769_v15  ;;  %v11435_v26 = vld [vmem:[#allocation41_spill] sm:$0xff] }
 0x130   : > { %v1886_v56 = vor.u32 %v1885_v12, %v1882_v63  ;;  %v810_v43 = vadd.f32 %v8738_v34, %v767_v23  ;;  %v2329_v8 = vshll.u32 %v7604_v7, 16  ;;  %v2333_v51 = vshrl.u32 %v7604_v7, 16  ;;  %v9219_v63 = vpop.f32.mrb[28].mxu0 }
 0x131   : > { %v1932_v57 = vrot.slane %v1930_v25, 6  ;;  %v1935_v60 = vrot.slane %v1933_v37, 7  ;;  %vm11434_vm5 = vnez %v11433_v27  ;;  %v845_v23 = vmax.f32 %v809_v49, 0.0  ;;  %v9227_v37 = vpop.f32.mrb[29].mxu0 }
 0x132   : > { %v11437_v0 = vsel %vm11434_vm5, %v11435_v26, %v11436_v2  ;;  %v1887_v48 = vsel %vm8927_vm11, %v1878_v52, %v1886_v56  ;;  %v1888_v15 = vrot.slane %v1886_v56, 4  ;;  %v848_v12 = vmax.f32 %v812_v32, 0.0  ;;  %v9238_v32 = vpop.f32.mrb[30].mxu0  ;;  %v11445_v26 = vld [vmem:[#allocation37_spill] sm:$0xff] }
 0x133   : > { %vm9215_vm12 = vcmp.lt.s32.totalorder %v11437_v0, 16  ;;  %2161 = vst.msk [vmem:[#allocation2 + $0x3c] sm:$0xf] %vm11440_vm9, %v1887_v48  ;;  %v9224_v7 = vor.u32 %v1935_v60, %v1932_v57  ;;  %v846_v6 = vmax.f32 %v810_v43, 0.0  ;;  %v2331_v25 = vrot.slane %v2329_v8, 1 }
 0x134   : > { %v2337_v2 = vshll.u32 %v9204_v19, 16  ;;  %v1897_v27 = vsel %vm8927_vm11, %v1888_v15, %v9143_v17  ;;  %v1602_v52 = vsel %vm9152_vm3, %v845_v23, 0.0  ;;  %v1605_v56 = vsel %vm9161_vm15, %v848_v12, 0.0 }
 0x135   : > { %v772_v49 = vmul.f32 %v9118_v61, %v8706_v1  ;;  %2162 = vst.msk [vmem:[#allocation2 + $0x40] sm:$0xf] %vm11432_vm1, %v1897_v27  ;;  %v1938_v43 = vrot.slane %v9224_v7, 4  ;;  %v6544_v57 = vpack.c.bf16 %v1602_v52, %v1602_v52  ;;  %v6547_v60 = vpack.c.bf16 %v1605_v56, %v1605_v56  ;;  %v9253_v61 = vpop.f32.mrb[31].mxu0  ;;  %v11447_v52 = vld [vmem:[#allocation44_spill] sm:$0xff]  ;;  %v11448_v56 = vld [vmem:[#allocation42_spill] sm:$0xff] }
 0x136   : > { %v1603_v17 = vsel %vm9175_vm2, %v846_v6, 0.0  ;;  %vm11441_vm5 = vnez %v11234_v28  ;;  %v2332_v0 = vsel %vm2320_vm14, %v11445_v26, %v2331_v25  ;;  %v2335_v48 = vor.u32 %v2333_v51, %v2331_v25 }
 0x137   : > { %v11442_v35 = vsel %vm11441_vm5, %v8508_v33, %v8460_v3  ;;  %v6545_v8 = vpack.c.bf16 %v1603_v17, %v1603_v17  ;;  %v2339_v15 = vrot.slane %v2337_v2, 1  ;;  %v1910_v23 = vshrl.u32 %v6544_v57, 16  ;;  %6819 = vmatprep.mubr.msk.bf16.mxu0 %vm2469_vm6, %v2332_v0 }
 0x138   : > { %vm9249_vm3 = vcmp.lt.s32.totalorder %v11442_v35, 16  ;;  %v1913_v30 = vshll.u32 %v6544_v57, 16  ;;  %v1940_v12 = vshrl.u32 %v6547_v60, 16  ;;  %v1943_v6 = vshll.u32 %v6547_v60, 16  ;;  %v9279_v35 = vpop.f32.mrb[32].mxu0 }
 0x139   : > { %v1920_v28 = vshrl.u32 %v6545_v8, 16  ;;  %v1923_v3 = vshll.u32 %v6545_v8, 16  ;;  %v2340_v33 = vsel %vm2320_vm14, %v2335_v48, %v2339_v15  ;;  %v815_v27 = vadd.f32 %v8738_v34, %v772_v49 }
 0x13a   : > { %vm11446_vm15 = vnez %v11236_v55  ;;  %vm11452_vm9 = vnez %v11240_v11  ;;  %v1912_v57 = vrot.slane %v1910_v23, 6  ;;  %v1915_v49 = vrot.slane %v1913_v30, 7  ;;  %6820 = vmatmul.mubr.msk.bf16.vlgmr.msra.gmra.mrb[36].mxu0 %vm2469_vm6, %v2340_v33  ;;  %v7606_v30 = vld [vmem:[#allocation2 + $0x18] sm:$0xff]  }
 0x13b   : > { %v11449_v17 = vsel %vm11446_vm15, %v11447_v52, %v11448_v56  ;;  %v11453_v25 = vsel %vm11452_vm9, %v8579_v18, %v8469_v36  ;;  %v1942_v60 = vrot.slane %v1940_v12, 6  ;;  %v1945_v55 = vrot.slane %v1943_v6, 7  ;;  %v9289_v12 = vpop.f32.mrb[33].mxu0 }
 0x13c   : > { %vm9265_vm2 = vcmp.lt.s32.totalorder %v11449_v17, 16  ;;  %vm9274_vm1 = vcmp.lt.s32.totalorder %v11453_v25, 16  ;;  %v1922_v8 = vrot.slane %v1920_v28, 6  ;;  %v1925_v26 = vrot.slane %v1923_v3, 7  ;;  %v9295_v33 = vpop.f32.mrb[34].mxu0 }
 0x13d   : > { %v851_v0 = vmax.f32 %v815_v27, 0.0  ;;  %v770_v11 = vmul.f32 %v8706_v1, %v9123_v4  ;;  %v1916_v48 = vor.u32 %v1915_v49, %v1912_v57  ;;  %v9283_v36 = vor.u32 %v1945_v55, %v1942_v60  ;;  %v9305_v50 = vpop.f32.mrb[35].mxu0  ;;  %v9310_v57 = vld [vmem:[#allocation2 + $0x20] sm:$0xff]  }
 0x13e   : > { %v773_v18 = vmul.f32 %v9129_v14, %v8706_v1  ;;  %v771_v23 = vmul.f32 %v8706_v1, %v9133_v21  ;;  %v1926_v6 = vor.u32 %v1925_v26, %v1922_v8  ;;  %v2341_v4 = vshrl.u32 %v9204_v19, 16 }
 0x13f   : > { %v1608_v28 = vsel %vm9215_vm12, %v851_v0, 0.0  ;;  %v813_v3 = vadd.f32 %v8738_v34, %v770_v11  ;;  %v11456_v27 = vrot.slane %v9189_v58, 4  ;;  %v1918_v52 = vrot.slane %v1916_v48, 4 }
 0x140   : > { %v1947_v21 = vsel %vm8927_vm11, %v1938_v43, %v9283_v36  ;;  %v1948_v56 = vrot.slane %v9283_v36, 4  ;;  %vm11457_vm12 = vcmask 60416   ;;  %v1928_v19 = vrot.slane %v1926_v6, 4 }
 0x141   : > { %v1917_v14 = vsel %vm8927_vm11, %v11456_v27, %v1916_v48  ;;  %vm11458_vm5 = vmmov %vm11457_vm12  ;;  %v6550_v17 = vpack.c.bf16 %v1608_v28, %v1608_v28  ;;  %v849_v25 = vmax.f32 %v813_v3, 0.0  ;;  %v816_v58 = vadd.f32 %v8738_v34, %v773_v18 }
 0x142   : > { %2164 = vst.msk [vmem:[#allocation2 + $0x48] sm:$0xf] %vm11457_vm12, %v1917_v14  ;;  %v1927_v49 = vsel %vm8927_vm11, %v1918_v52, %v1926_v6  ;;  %v814_v43 = vadd.f32 %v8738_v34, %v771_v23  ;;  %v2343_v60 = vor.u32 %v2341_v4, %v2339_v15  ;;  %v2345_v55 = vshll.u32 %v7606_v30, 16  ;;  %vm11459_vm15 = vmmov %vm11458_vm5 }
 0x143   : > { %2167 = vst.msk [vmem:[#allocation2 + $0x54] sm:$0xf] %vm11458_vm5, %v1947_v21  ;;  %v1937_v8 = vsel %vm8927_vm11, %v1928_v19, %v9224_v7  ;;  %v1970_v26 = vshrl.u32 %v6550_v17, 16  ;;  %v1973_v0 = vshll.u32 %v6550_v17, 16  ;;  %v1606_v11 = vsel %vm9249_vm3, %v849_v25, 0.0  ;;  %vm11460_vm9 = vmmov %vm11458_vm5 }
 0x144   : > { %2165 = vst.msk [vmem:[#allocation2 + $0x4c] sm:$0xf] %vm11459_vm15, %v1927_v49  ;;  %v6548_v48 = vpack.c.bf16 %v1606_v11, %v1606_v11  ;;  %v852_v36 = vmax.f32 %v816_v58, 0.0  ;;  %v850_v18 = vmax.f32 %v814_v43, 0.0  ;;  %v2347_v6 = vrot.slane %v2345_v55, 1  ;;  %v11470_v49 = vld [vmem:[#allocation51_spill] sm:$0xff] }
 0x145   : > { %2166 = vst.msk [vmem:[#allocation2 + $0x50] sm:$0xf] %vm11460_vm9, %v1937_v8  ;;  %v1972_v23 = vrot.slane %v1970_v26, 6  ;;  %v1975_v15 = vrot.slane %v1973_v0, 7  ;;  %v2349_v28 = vshrl.u32 %v7606_v30, 16  ;;  %v2353_v3 = vshll.u32 %v9310_v57, 16 }
 0x146   : > { %vm11461_vm12 = vnez %v11244_v46  ;;  %v1950_v13 = vshrl.u32 %v6548_v48, 16  ;;  %v1953_v27 = vshll.u32 %v6548_v48, 16  ;;  %v1609_v14 = vsel %vm9265_vm2, %v852_v36, 0.0  ;;  %v11466_v30 = vld [vmem:[#allocation45_spill] sm:$0xff]  ;;  %v11473_v43 = vld [vmem:[#allocation46_spill] sm:$0xff]  ;;  %v11479_v48 = vld [vmem:[#allocation52_spill] sm:$0xff] }
 0x147   : > { %v11462_v7 = vsel %vm11461_vm12, %v8597_v20, %v8519_v16  ;;  %v1607_v52 = vsel %vm9274_vm1, %v850_v18, 0.0  ;;  %vm11465_vm3 = vnez %v11247_v29  ;;  %v1976_v16 = vor.u32 %v1975_v15, %v1972_v23  ;;  %v11472_v29 = vld [vmem:[#allocation49_spill] sm:$0xff]  ;;  %v11480_v36 = vld [vmem:[#allocation47_spill] sm:$0xff] }
 0x148   : > { %vm9328_vm5 = vcmp.lt.s32.totalorder %v11462_v7, 16  ;;  %v11467_v46 = vsel %vm11465_vm3, %v8617_v62, %v11466_v30  ;;  %v6551_v20 = vpack.c.bf16 %v1609_v14, %v1609_v14  ;;  %v6549_v19 = vpack.c.bf16 %v1607_v52, %v1607_v52  ;;  %v7608_v7 = vld [vmem:[#allocation2 + $0x28] sm:$0xff]  }
 0x149   : > { %vm9341_vm15 = vcmp.lt.s32.totalorder %v11467_v46, 16  ;;  %v2348_v17 = vsel %vm2320_vm14, %v2343_v60, %v2347_v6  ;;  %v1952_v25 = vrot.slane %v1950_v13, 6  ;;  %v1955_v51 = vrot.slane %v1953_v27, 7  ;;  %v11477_v60 = vld [vmem:[#allocation53_spill] sm:$0xff] }
 0x14a   : > { %6823 = vmatprep.mubr.msk.bf16.mxu0 %vm2469_vm6, %v2348_v17  ;;  %v2351_v2 = vor.u32 %v2349_v28, %v2347_v6  ;;  %v2355_v58 = vrot.slane %v2353_v3, 1  ;;  %vm11471_vm2 = vnez %v11470_v49  ;;  %v1978_v8 = vrot.slane %v1976_v16, 4 }
 0x14b   : > { %v11474_v62 = vsel %vm11471_vm2, %v11472_v29, %v11473_v43  ;;  %v1980_v26 = vshrl.u32 %v6551_v20, 16  ;;  %v1983_v0 = vshll.u32 %v6551_v20, 16  ;;  %v1960_v11 = vshrl.u32 %v6549_v19, 16 }
 0x14c   : > { %vm9352_vm1 = vcmp.lt.s32.totalorder %v11474_v62, 16  ;;  %vm11478_vm9 = vnez %v11477_v60  ;;  %v1956_v23 = vor.u32 %v1955_v51, %v1952_v25  ;;  %v1963_v15 = vshll.u32 %v6549_v19, 16 }
 0x14d   : > { %v11481_v18 = vsel %vm11478_vm9, %v11479_v48, %v11480_v36  ;;  %v2356_v28 = vsel %vm2320_vm14, %v2351_v2, %v2355_v58  ;;  %v776_v3 = vmul.f32 %v9165_v45, %v8706_v1  ;;  %v1982_v13 = vrot.slane %v1980_v26, 6 }
 0x14e   : > { %vm9361_vm12 = vcmp.lt.s32.totalorder %v11481_v18, 16  ;;  %v1985_v27 = vrot.slane %v1983_v0, 7  ;;  %v1962_v14 = vrot.slane %v1960_v11, 6  ;;  %6824 = vmatmul.mubr.msk.bf16.gmra.mrb[40].mxu0 %vm2469_vm6, %v2356_v28  ;;  %v774_v52 = vmul.f32 %v8706_v1, %v9179_v59 }
 0x14f   : > { %v1957_v30 = vsel %vm8927_vm11, %v1948_v56, %v1956_v23  ;;  %v1958_v46 = vrot.slane %v1956_v23, 4  ;;  %v1965_v20 = vrot.slane %v1963_v15, 7  ;;  %v819_v19 = vadd.f32 %v8738_v34, %v776_v3 }
 0x150   : > { %vm11484_vm3 = vcmask 60416   ;;  %v9375_v17 = vor.u32 %v1985_v27, %v1982_v13  ;;  %v817_v45 = vadd.f32 %v8738_v34, %v774_v52  ;;  %v777_v25 = vmul.f32 %v9185_v38, %v8706_v1  ;;  %v9404_v27 = vld [vmem:[#allocation2 + $0x30] sm:$0xff]  }
 0x151   : > { %2168 = vst.msk [vmem:[#allocation2 + $0x58] sm:$0xf] %vm11484_vm3, %v1957_v30  ;;  %v775_v51 = vmul.f32 %v8706_v1, %v9187_v44  ;;  %v1966_v59 = vor.u32 %v1965_v20, %v1962_v14  ;;  %v855_v2 = vmax.f32 %v819_v19, 0.0  ;;  %v2357_v56 = vshrl.u32 %v9310_v57, 16  ;;  %vm11485_vm2 = vmmov %vm11484_vm3  ;;  %v11490_v14 = vld [vmem:[#allocation48_spill] sm:$0xff] }
 0x152   : > { %v2361_v49 = vshll.u32 %v7608_v7, 16  ;;  %v1987_v29 = vsel %vm8927_vm11, %v1978_v8, %v9375_v17  ;;  %v1988_v43 = vrot.slane %v9375_v17, 4  ;;  %v853_v62 = vmax.f32 %v817_v45, 0.0  ;;  %vm11486_vm9 = vmmov %vm11485_vm2 }
 0x153   : > { %v820_v26 = vadd.f32 %v8738_v34, %v777_v25  ;;  %2171 = vst.msk [vmem:[#allocation2 + $0x64] sm:$0xf] %vm11485_vm2, %v1987_v29  ;;  %v1967_v38 = vsel %vm8927_vm11, %v1958_v46, %v1966_v59  ;;  %v1968_v1 = vrot.slane %v1966_v59, 4  ;;  %v1612_v44 = vsel %vm9328_vm5, %v855_v2, 0.0  ;;  %vm11487_vm3 = vmmov %vm11485_vm2  ;;  %v11511_v29 = vld [vmem:[#allocation60_spill] sm:$0xff] }
 0x154   : > { %v818_v57 = vadd.f32 %v8738_v34, %v775_v51  ;;  %2169 = vst.msk [vmem:[#allocation2 + $0x5c] sm:$0xf] %vm11486_vm9, %v1967_v38  ;;  %v6554_v0 = vpack.c.bf16 %v1612_v44, %v1612_v44  ;;  %v1610_v8 = vsel %vm9341_vm15, %v853_v62, 0.0  ;;  %v2359_v60 = vor.u32 %v2357_v56, %v2355_v58  ;;  %v9448_v44 = vld [vmem:[%s11014_s2] ss:$0 sm:$0xff] }
 0x155   : > { %v856_v11 = vmax.f32 %v820_v26, 0.0  ;;  %v1977_v48 = vsel %vm8927_vm11, %v1968_v1, %v1976_v16  ;;  %v6552_v36 = vpack.c.bf16 %v1610_v8, %v1610_v8  ;;  %v2363_v23 = vrot.slane %v2361_v49, 1  ;;  %v11489_v16 = vld [vmem:[#allocation58_spill] sm:$0xff] }
 0x156   : > { %v854_v18 = vmax.f32 %v818_v57, 0.0  ;;  %2170 = vst.msk [vmem:[#allocation2 + $0x60] sm:$0xf] %vm11487_vm3, %v1977_v48  ;;  %v2010_v4 = vshrl.u32 %v6554_v0, 16  ;;  %v2013_v15 = vshll.u32 %v6554_v0, 16  ;;  %v2365_v28 = vshrl.u32 %v7608_v7, 16  ;;  %vm11510_vm3 = vmmov %vm11485_vm2 }
 0x157   : > { %v1613_v34 = vsel %vm9352_vm1, %v856_v11, 0.0  ;;  %v1990_v3 = vshrl.u32 %v6552_v36, 16  ;;  %v1993_v13 = vshll.u32 %v6552_v36, 16  ;;  %vm11488_vm5 = vnez %v11275_v47  ;;  %v11500_v26 = vld [vmem:[#allocation50_spill] sm:$0xff] }
 0x158   : > { %v6555_v21 = vpack.c.bf16 %v1613_v34, %v1613_v34  ;;  %v1611_v58 = vsel %vm9361_vm12, %v854_v18, 0.0  ;;  %v11491_v52 = vsel %vm11488_vm5, %v11489_v16, %v11490_v14  ;;  %v2012_v55 = vrot.slane %v2010_v4, 6  ;;  %v9456_v11 = vld [vmem:[#allocation2 + $0x38] sm:$0xff]   ;;  %v9462_v48 = vld [vmem:[%s11015_s3] ss:$0 sm:$0xff] }
 0x159   : > { %vm9411_vm15 = vcmp.lt.s32.totalorder %v11491_v52, 16  ;;  %v2015_v46 = vrot.slane %v2013_v15, 7  ;;  %v6553_v7 = vpack.c.bf16 %v1611_v58, %v1611_v58  ;;  %v2364_v20 = vsel %vm2320_vm14, %v2359_v60, %v2363_v23 }
 0x15a   : > { %v1992_v19 = vrot.slane %v1990_v3, 6  ;;  %v1995_v17 = vrot.slane %v1993_v13, 7  ;;  %v2020_v6 = vshrl.u32 %v6555_v21, 16  ;;  %v2023_v45 = vshll.u32 %v6555_v21, 16  ;;  %6827 = vmatprep.mubr.msk.bf16.mxu0 %vm2469_vm6, %v2364_v20  ;;  %v9481_v3 = vld [vmem:[#allocation2 + $0x40] sm:$0xff]  }
 0x15b   : > { %v11494_v47 = vsel %vm8760_vm10, %v8767_v41, %v8625_v31  ;;  %v2016_v51 = vor.u32 %v2015_v46, %v2012_v55  ;;  %v2000_v59 = vshrl.u32 %v6553_v7, 16  ;;  %v2003_v2 = vshll.u32 %v6553_v7, 16 }
 0x15c   : > { %vm9422_vm1 = vcmp.lt.s32.totalorder %v11494_v47, 16  ;;  %v2367_v56 = vor.u32 %v2365_v28, %v2363_v23  ;;  %v11497_v49 = vsel %vm8773_vm8, %v8778_v5, %v8634_v42  ;;  %v1996_v54 = vor.u32 %v1995_v17, %v1992_v19  ;;  %vm11505_vm8 = vmmov %vm11485_vm2 }
 0x15d   : > { %vm9431_vm12 = vcmp.lt.s32.totalorder %v11497_v49, 16  ;;  %v2022_v62 = vrot.slane %v2020_v6, 6  ;;  %v2025_v31 = vrot.slane %v2023_v45, 7  ;;  %v2369_v41 = vshll.u32 %v9404_v27, 16 }
 0x15e   : > { %v11501_v38 = vsel %vm8787_vm4, %v8792_v40, %v11500_v26  ;;  %v2018_v24 = vrot.slane %v2016_v51, 4  ;;  %v2002_v42 = vrot.slane %v2000_v59, 6  ;;  %v2005_v5 = vrot.slane %v2003_v2, 7  ;;  %vm11504_vm4 = vmmov %vm11485_vm2 }
 0x15f   : > { %vm9441_vm10 = vcmp.lt.s32.totalorder %v11501_v38, 16  ;;  %v780_v57 = vmul.f32 %v9448_v44, %v9219_v63  ;;  %v1997_v53 = vsel %vm8927_vm11, %v1988_v43, %v1996_v54  ;;  %v1998_v0 = vrot.slane %v1996_v54, 4 }
 0x160   : > { %v9454_v40 = vor.u32 %v2025_v31, %v2022_v62  ;;  %v2371_v8 = vrot.slane %v2369_v41, 1  ;;  %2172 = vst.msk [vmem:[#allocation2 + $0x68] sm:$0xf] %vm11504_vm4, %v1997_v53  ;;  %v2006_v60 = vor.u32 %v2005_v5, %v2002_v42  ;;  %v778_v63 = vmul.f32 %v9448_v44, %v9227_v37  ;;  %vm11533_vm4 = vmmov %vm11485_vm2 }
 0x161   : > { %v823_v36 = vadd.f32 %v9462_v48, %v780_v57  ;;  %v781_v43 = vmul.f32 %v9448_v44, %v9238_v32  ;;  %v779_v15 = vmul.f32 %v9448_v44, %v9253_v61  ;;  %v2373_v61 = vshrl.u32 %v9404_v27, 16  ;;  %v11512_v57 = vld [vmem:[#allocation54_spill] sm:$0xff] }
 0x162   : > { %v2027_v18 = vsel %vm8927_vm11, %v2018_v24, %v9454_v40  ;;  %v2028_v23 = vrot.slane %v9454_v40, 4  ;;  %v2372_v4 = vsel %vm2320_vm14, %v2367_v56, %v2371_v8  ;;  %v2007_v34 = vsel %vm8927_vm11, %v1998_v0, %v2006_v60 }
 0x163   : > { %2175 = vst.msk [vmem:[#allocation2 + $0x74] sm:$0xf] %vm11505_vm8, %v2027_v18  ;;  %v2008_v37 = vrot.slane %v2006_v60, 4  ;;  %6828 = vmatmul.mubr.msk.bf16.gmra.mrb[44].mxu0 %vm2469_vm6, %v2372_v4  ;;  %v859_v32 = vmax.f32 %v823_v36, 0.0  ;;  %v821_v28 = vadd.f32 %v9462_v48, %v778_v63  ;;  %v824_v13 = vadd.f32 %v9462_v48, %v781_v43  ;;  %v11518_v60 = vld [vmem:[#allocation55_spill] sm:$0xff]  ;;  %vm11534_vm8 = vmmov %vm11485_vm2 }
 0x164   : > { %2173 = vst.msk [vmem:[#allocation2 + $0x6c] sm:$0xf] %vm11485_vm2, %v2007_v34  ;;  %v822_v21 = vadd.f32 %v9462_v48, %v779_v15  ;;  %v2377_v58 = vshll.u32 %v9456_v11, 16  ;;  %v2381_v55 = vshrl.u32 %v9456_v11, 16  ;;  %v11507_v7 = vsel %vm8801_vm13, %v8806_v22, %v8656_v10 }
 0x165   : > { %v2017_v16 = vsel %vm8927_vm11, %v2008_v37, %v2016_v51  ;;  %v1616_v14 = vsel %vm9411_vm15, %v859_v32, 0.0  ;;  %v857_v52 = vmax.f32 %v821_v28, 0.0  ;;  %vm9498_vm9 = vcmp.lt.s32.totalorder %v11507_v7, 16  ;;  %v11522_v28 = vld [vmem:[#allocation64_spill] sm:$0xff] }
 0x166   : > { %2174 = vst.msk [vmem:[#allocation2 + $0x70] sm:$0xf] %vm11510_vm3, %v2017_v16  ;;  %v6558_v19 = vpack.c.bf16 %v1616_v14, %v1616_v14  ;;  %v860_v17 = vmax.f32 %v824_v13, 0.0  ;;  %v858_v6 = vmax.f32 %v822_v21, 0.0  ;;  %v2375_v45 = vor.u32 %v2373_v61, %v2371_v8  ;;  %v11517_v8 = vld [vmem:[#allocation61_spill] sm:$0xff]  ;;  %v11524_v13 = vld [vmem:[#allocation63_spill] sm:$0xff] }
 0x167   : > { %v1614_v30 = vsel %vm9422_vm1, %v857_v52, 0.0  ;;  %v2379_v47 = vrot.slane %v2377_v58, 1  ;;  %v2385_v51 = vshll.u32 %v9481_v3, 16  ;;  %v784_v59 = vmul.f32 %v9448_v44, %v9279_v35  ;;  %v11525_v21 = vld [vmem:[#allocation57_spill] sm:$0xff] }
 0x168   : > { %v2050_v22 = vshrl.u32 %v6558_v19, 16  ;;  %v2053_v10 = vshll.u32 %v6558_v19, 16  ;;  %v6556_v2 = vpack.c.bf16 %v1614_v30, %v1614_v30  ;;  %v1617_v56 = vsel %vm9431_vm12, %v860_v17, 0.0  ;;  %vm11530_vm12 = vmmov %vm11485_vm2 }
 0x169   : > { %v6559_v49 = vpack.c.bf16 %v1617_v56, %v1617_v56  ;;  %v1615_v54 = vsel %vm9441_vm10, %v858_v6, 0.0  ;;  %v2380_v62 = vsel %vm2320_vm14, %v2375_v45, %v2379_v47  ;;  %v2383_v25 = vor.u32 %v2381_v55, %v2379_v47  ;;  %vm11532_vm10 = vmmov %vm11485_vm2 }
 0x16a   : > { %v2052_v31 = vrot.slane %v2050_v22, 6  ;;  %v2055_v41 = vrot.slane %v2053_v10, 7  ;;  %v2030_v26 = vshrl.u32 %v6556_v2, 16  ;;  %v2033_v38 = vshll.u32 %v6556_v2, 16  ;;  %6831 = vmatprep.mubr.msk.bf16.mxu0 %vm2469_vm6, %v2380_v62  ;;  %v9561_v22 = vld [vmem:[#allocation2 + $0x48] sm:$0xff]  }
 0x16b   : > { %v2060_v35 = vshrl.u32 %v6559_v49, 16  ;;  %v2063_v24 = vshll.u32 %v6559_v49, 16  ;;  %v6557_v42 = vpack.c.bf16 %v1615_v54, %v1615_v54  ;;  %v2387_v5 = vrot.slane %v2385_v51, 1  ;;  %v9569_v2 = vld [vmem:[#allocation2 + $0x48] sm:$0xff]  }
 0x16c   : > { %v11513_v53 = vsel %vm8816_vm0, %v11511_v29, %v11512_v57  ;;  %v11519_v36 = vsel %vm8839_vm7, %v11517_v8, %v11518_v60  ;;  %v2056_v43 = vor.u32 %v2055_v41, %v2052_v31  ;;  %v2032_v18 = vrot.slane %v2030_v26, 6  ;;  %vm11529_vm7 = vmmov %vm11485_vm2  ;;  %11531 = vst [vmem:[#allocation5_spill] sm:$0xff] %v9569_v2 }
 0x16d   : > { %vm9519_vm13 = vcmp.lt.s32.totalorder %v11513_v53, 16  ;;  %vm9528_vm5 = vcmp.lt.s32.totalorder %v11519_v36, 16  ;;  %v2035_v4 = vrot.slane %v2033_v38, 7  ;;  %v827_v39 = vadd.f32 %v9462_v48, %v784_v59  ;;  %v9575_v38 = vld [vmem:[#allocation2 + $0x50] sm:$0xff]   ;;  %v9590_v36 = vld [vmem:[#allocation2 + $0x58] sm:$0xff]  }
 0x16e   : > { %v2062_v15 = vrot.slane %v2060_v35, 6  ;;  %v2065_v34 = vrot.slane %v2063_v24, 7  ;;  %v2040_v37 = vshrl.u32 %v6557_v42, 16  ;;  %v2043_v32 = vshll.u32 %v6557_v42, 16 }
 0x16f   : > { %vm11523_vm0 = vnez %v11522_v28  ;;  %v2058_v16 = vrot.slane %v2056_v43, 4  ;;  %v2036_v14 = vor.u32 %v2035_v4, %v2032_v18  ;;  %v2388_v52 = vsel %vm2320_vm14, %v2383_v25, %v2387_v5 }
 0x170   : > { %v11526_v61 = vsel %vm11523_vm0, %v11524_v13, %v11525_v21  ;;  %v863_v55 = vmax.f32 %v827_v39, 0.0  ;;  %v9543_v46 = vor.u32 %v2065_v34, %v2062_v15  ;;  %v2042_v7 = vrot.slane %v2040_v37, 6  ;;  %6832 = vmatmul.mubr.msk.bf16.gmra.mrb[48].mxu0 %vm2469_vm6, %v2388_v52  ;;  %v9606_v52 = vld [vmem:[#allocation2 + $0x60] sm:$0xff]  }
 0x171   : > { %vm9538_vm15 = vcmp.lt.s32.totalorder %v11526_v61, 16  ;;  %v2045_v19 = vrot.slane %v2043_v32, 7  ;;  %v782_v17 = vmul.f32 %v9448_v44, %v9289_v12  ;;  %v2037_v6 = vsel %vm8927_vm11, %v2028_v23, %v2036_v14 }
 0x172   : > { %v2038_v45 = vrot.slane %v2036_v14, 4  ;;  %v1620_v30 = vsel %vm9498_vm9, %v863_v55, 0.0  ;;  %v785_v47 = vmul.f32 %v9448_v44, %v9295_v33  ;;  %2176 = vst.msk [vmem:[#allocation2 + $0x78] sm:$0xf] %vm11529_vm7, %v2037_v6  ;;  %v2067_v51 = vsel %vm8927_vm11, %v2058_v16, %v9543_v46  ;;  %v9608_v55 = vld [vmem:[#allocation2 + $0x60] sm:$0xff]  }
 0x173   : > { %v2068_v12 = vrot.slane %v9543_v46, 4  ;;  %v2046_v59 = vor.u32 %v2045_v19, %v2042_v7  ;;  %v6562_v40 = vpack.c.bf16 %v1620_v30, %v1620_v30  ;;  %vm2927_vm1 = vcmask 1046528   ;;  %2179 = vst.msk [vmem:[#allocation2 + $0x84] sm:$0xf] %vm11530_vm12, %v2067_v51  ;;  %v2184_v30 = vld [vmem:[#allocation2 + $0x98] sm:$0x3] }
 0x174   : > { %v825_v23 = vadd.f32 %v9462_v48, %v782_v17  ;;  %v828_v20 = vadd.f32 %v9462_v48, %v785_v47  ;;  %v783_v33 = vmul.f32 %v9448_v44, %v9305_v50  ;;  %v2389_v10 = vshrl.u32 %v9481_v3, 16  ;;  %v9577_v50 = vld [vmem:[#allocation2 + $0x50] sm:$0xff]  }
 0x175   : > { %v2047_v56 = vsel %vm8927_vm11, %v2038_v45, %v2046_v59  ;;  %v2048_v49 = vrot.slane %v2046_v59, 4  ;;  %v2090_v54 = vshrl.u32 %v6562_v40, 16  ;;  %v2093_v62 = vshll.u32 %v6562_v40, 16  ;;  %v9613_v40 = vld [vmem:[#allocation2 + $0x68] sm:$0xff]  }
 0x176   : > { %2177 = vst.msk [vmem:[#allocation2 + $0x7c] sm:$0xf] %vm11532_vm10, %v2047_v56  ;;  %v861_v25 = vmax.f32 %v825_v23, 0.0  ;;  %v864_v31 = vmax.f32 %v828_v20, 0.0  ;;  %v826_v41 = vadd.f32 %v9462_v48, %v783_v33  ;;  %v2391_v26 = vor.u32 %v2389_v10, %v2387_v5  ;;  %v9618_v23 = vld [vmem:[%s11016_s4 + $0x14] sm:$0xf] }
 0x177   : > { %v2057_v44 = vsel %vm8927_vm11, %v2048_v49, %v2056_v43  ;;  %v2092_v35 = vrot.slane %v2090_v54, 6  ;;  %v2095_v24 = vrot.slane %v2093_v62, 7  ;;  %v2393_v42 = vshll.u32 %v9561_v22, 16  ;;  %v9592_v43 = vld [vmem:[#allocation2 + $0x58] sm:$0xff]   ;;  %v9621_v49 = vld [vmem:[#allocation2 + $0x68] sm:$0xff]  }
 0x178   : > { %2178 = vst.msk [vmem:[#allocation2 + $0x80] sm:$0xf] %vm11533_vm4, %v2057_v44  ;;  %v1618_v29 = vsel %vm9519_vm13, %v861_v25, 0.0  ;;  %v1621_v48 = vsel %vm9528_vm5, %v864_v31, 0.0  ;;  %v862_v5 = vmax.f32 %v826_v41, 0.0  ;;  %v11117_v57 = vrot.slane %v9569_v2, 1  ;;  %vm11539_vm13 = vmmov %vm11485_vm2 }
 0x179   : > { %v9588_v53 = vor.u32 %v2095_v24, %v2092_v35  ;;  %v6560_v0 = vpack.c.bf16 %v1618_v29, %v1618_v29  ;;  %v6563_v8 = vpack.c.bf16 %v1621_v48, %v1621_v48  ;;  %v2395_v60 = vrot.slane %v2393_v42, 1  ;;  %v9629_v41 = vld [vmem:[#allocation2 + $0x70] sm:$0xff]   ;;  %vm11541_vm5 = vmmov %vm11485_vm2 }
 0x17a   : > { %v1619_v18 = vsel %vm9538_vm15, %v862_v5, 0.0  ;;  %v3384_v1 = vrot.slane %v9575_v38, 1  ;;  %v2397_v63 = vshrl.u32 %v9561_v22, 16  ;;  %v2401_v4 = vshll.u32 %v9577_v50, 16  ;;  %v9641_v5 = vld [vmem:[#allocation2 + $0x70] sm:$0xff]  }
 0x17b   : > { %v2098_v39 = vrot.slane %v9588_v53, 4  ;;  %v2070_v15 = vshrl.u32 %v6560_v0, 16  ;;  %v2073_v34 = vshll.u32 %v6560_v0, 16  ;;  %v2100_v37 = vshrl.u32 %v6563_v8, 16  ;;  %v11536_v0 = vld [vmem:[#allocation3_spill] sm:$0xff] }
 0x17c   : > { %v2103_v32 = vshll.u32 %v6563_v8, 16  ;;  %v6561_v28 = vpack.c.bf16 %v1619_v18, %v1619_v18  ;;  %v2396_v13 = vsel %vm2320_vm14, %v2391_v26, %v2395_v60  ;;  %v3385_v21 = vsel %vm2927_vm1, %v11117_v57, %v3384_v1 }
 0x17d   : > { %v2072_v61 = vrot.slane %v2070_v15, 6  ;;  %v2075_v58 = vrot.slane %v2073_v34, 7  ;;  %v2102_v16 = vrot.slane %v2100_v37, 6  ;;  %6835 = vmatprep.mubr.msk.bf16.mxu0 %vm2469_vm6, %v2396_v13  ;;  %6949 = vmatprep.mubr.msk.bf16.mxu1 %vm2469_vm6, %v3385_v21  ;;  %v2399_v14 = vor.u32 %v2397_v63, %v2395_v60  ;;  %v9653_v15 = vld [vmem:[#allocation2 + $0x78] sm:$0xff]  }
 0x17e   : > { %v2105_v7 = vrot.slane %v2103_v32, 7  ;;  %v2080_v19 = vshrl.u32 %v6561_v28, 16  ;;  %v2083_v17 = vshll.u32 %v6561_v28, 16  ;;  %v2403_v6 = vrot.slane %v2401_v4, 1  ;;  %11540 = vst [vmem:[#allocation8_spill] sm:$0xff] %v9653_v15  ;;  %v9662_v13 = vld [vmem:[#allocation2 + $0x78] sm:$0xff]  }
 0x17f   : > { %v2076_v45 = vor.u32 %v2075_v58, %v2072_v61  ;;  %v3386_v47 = vrot.slane %v9590_v36, 1  ;;  %v2405_v51 = vshrl.u32 %v9577_v50, 16  ;;  %v2409_v59 = vshll.u32 %v9592_v43, 16  ;;  %v9668_v9 = vld [vmem:[#allocation2 + $0x80] sm:$0xff]  }
 0x180   : > { %v2106_v20 = vor.u32 %v2105_v7, %v2102_v16  ;;  %v2082_v33 = vrot.slane %v2080_v19, 6  ;;  %v2085_v10 = vrot.slane %v2083_v17, 7  ;;  %v2404_v56 = vsel %vm2320_vm14, %v2399_v14, %v2403_v6  ;;  %11542 = vst [vmem:[#allocation9_spill] sm:$0xff] %v9668_v9  ;;  %v9672_v19 = vld [vmem:[#allocation2 + $0x80] sm:$0xff]  }
 0x181   : > { %v2077_v54 = vsel %vm8927_vm11, %v2068_v12, %v2076_v45  ;;  %v2078_v62 = vrot.slane %v2076_v45, 4  ;;  %6836 = vmatmul.mubr.msk.bf16.gmra.mrb[52].mxu0 %vm2469_vm6, %v2404_v56  ;;  %v3387_v25 = vsel %vm2927_vm1, %v3384_v1, %v3386_v47  ;;  %v2407_v31 = vor.u32 %v2405_v51, %v2403_v6  ;;  %v11535_v12 = vld [vmem:[#allocation65_spill] sm:$0xff]  ;;  %v9676_v45 = vld [vmem:[#allocation2 + $0xc] sm:$0xf] }
 0x182   : > { %2180 = vst.msk [vmem:[#allocation2 + $0x88] sm:$0xf] %vm11534_vm8, %v2077_v54  ;;  %v2107_v26 = vsel %vm8927_vm11, %v2098_v39, %v2106_v20  ;;  %v2108_v44 = vrot.slane %v2106_v20, 4  ;;  %v2086_v35 = vor.u32 %v2085_v10, %v2082_v33  ;;  %6950 = vmatmul.mubr.msk.bf16.vlgmr.msra.gmra.mrb[0].mxu1 %vm2469_vm6, %v3387_v25  ;;  %v2411_v46 = vrot.slane %v2409_v59, 1  ;;  %v3235_v20 = vld [vmem:[#allocation2 + $0x8] sm:$0xe] }
 0x183   : > { %2183 = vst.msk [vmem:[#allocation2 + $0x94] sm:$0xf] %vm11485_vm2, %v2107_v26  ;;  %6970 = vmatpush3.bf16.msra.mxu1 %v11535_v12  ;;  %v3388_v24 = vrot.slane %v9606_v52, 1  ;;  %v2413_v42 = vshrl.u32 %v9592_v43, 16  ;;  %v2417_v29 = vshll.u32 %v9608_v55, 16  ;;  %v3390_v48 = vrot.slane %v9613_v40, 1 }
 0x184   : > { %vm11537_vm9 = vnez %v11536_v0  ;;  %v2087_v60 = vsel %vm8927_vm11, %v2078_v62, %v2086_v35  ;;  %v2088_v18 = vrot.slane %v2086_v35, 4  ;;  %v2412_v1 = vsel %vm2320_vm14, %v2407_v31, %v2411_v46  ;;  %v9686_v54 = vld [vmem:[#allocation2 + $0x10] sm:$0xff]  }
 0x185   : > { %v2185_v8 = vsel %vm11537_vm9, %v2108_v44, %v2184_v30  ;;  %vm11538_vm3 = vcmask 1043456   ;;  %2181 = vst.msk [vmem:[#allocation2 + $0x8c] sm:$0xf] %vm11539_vm13, %v2087_v60  ;;  %6839 = vmatprep.mubr.msk.bf16.mxu0 %vm2469_vm6, %v2412_v1  ;;  %v3389_v63 = vsel %vm2927_vm1, %v3386_v47, %v3388_v24  ;;  %v2415_v4 = vor.u32 %v2413_v42, %v2411_v46  ;;  %v9706_v60 = vld [vmem:[#allocation2 + $0x20] sm:$0xff]  }
 0x186   : > { %7494 = vmatprep.subr.msk.bf16.mxu1 %vm11538_vm3, %v9618_v23  ;;  %2186 = vst [vmem:[#allocation2 + $0x98] sm:$0x3] %v2185_v8  ;;  %v2419_v39 = vrot.slane %v2417_v29, 1  ;;  %v2097_v34 = vsel %vm8927_vm11, %v2088_v18, %v9588_v53  ;;  %6953 = vmatprep.mubr.msk.bf16.mxu1 %vm2469_vm6, %v3389_v63  ;;  %v2421_v37 = vshrl.u32 %v9608_v55, 16  ;;  %v2425_v32 = vshll.u32 %v9621_v49, 16  ;;  %vm11545_vm11 = vmmov %vm11538_vm3 }
 0x187   : > { %v3392_v28 = vrot.slane %v9629_v41, 1  ;;  %2182 = vst.msk [vmem:[#allocation2 + $0x90] sm:$0xf] %vm11541_vm5, %v2097_v34  ;;  %v3391_v61 = vsel %vm2927_vm1, %v3388_v24, %v3390_v48  ;;  %v2433_v58 = vshll.u32 %v9641_v5, 16  ;;  %v2429_v7 = vshrl.u32 %v9621_v49, 16  ;;  %v9700_v24 = vld [vmem:[#allocation2 + $0x18] sm:$0xff]   ;;  %vm11546_vm0 = vmmov %vm11538_vm3 }
 0x188   : > { %v2420_v21 = vsel %vm2320_vm14, %v2415_v4, %v2419_v39  ;;  %v2423_v53 = vor.u32 %v2421_v37, %v2419_v39  ;;  %v2427_v16 = vrot.slane %v2425_v32, 1  ;;  %v2441_v6 = vshll.u32 %v9653_v15, 16  ;;  %v9711_v18 = vld [vmem:[%s11016_s4 + $0x8] sm:$0xf]  ;;  %v7665_v4 = vld [vmem:[%s11016_s4] sm:$0xf]  ;;  %vm11547_vm7 = vmmov %vm11546_vm0 }
 0x189   : > { %v3393_v14 = vsel %vm2927_vm1, %v3390_v48, %v3392_v28  ;;  %6840 = vmatmul.mubr.msk.bf16.gmra.mrb[56].mxu0 %vm2469_vm6, %v2420_v21  ;;  %v2435_v17 = vrot.slane %v2433_v58, 1  ;;  %v3394_v51 = vrot.slane %v9662_v13, 1  ;;  %v2437_v59 = vshrl.u32 %v9641_v5, 16  ;;  %vm11551_vm12 = vmmov %vm11546_vm0 }
 0x18a   : > { %6954 = vmatmul.mubr.msk.bf16.gmra.mrb[4].mxu1 %vm2469_vm6, %v3391_v61  ;;  %v2428_v30 = vsel %vm2320_vm14, %v2423_v53, %v2427_v16  ;;  %v2431_v47 = vor.u32 %v2429_v7, %v2427_v16  ;;  %v2443_v33 = vrot.slane %v2441_v6, 1  ;;  %v2449_v10 = vshll.u32 %v9668_v9, 16  ;;  %v9731_v6 = vld [vmem:[#allocation2 + $0x28] sm:$0xff]   ;;  %vm11554_vm4 = vmmov %vm11546_vm0 }
 0x18b   : > { %6843 = vmatprep.mubr.msk.bf16.mxu0 %vm2469_vm6, %v2428_v30  ;;  %6957 = vmatprep.mubr.msk.bf16.mxu1 %vm2469_vm6, %v3393_v14  ;;  %v3396_v56 = vrot.slane %v9672_v19, 1  ;;  %v2439_v62 = vor.u32 %v2437_v59, %v2435_v17  ;;  %v2445_v25 = vshrl.u32 %v9653_v15, 16  ;;  %v9694_v44 = vcombine.low %v3235_v20, %v9676_v45  ;;  %vm11566_vm8 = vmmov %vm11546_vm0 }
 0x18c   : > { %v9689_v31 = vld [vmem:[#allocation2 + $0x88] sm:$0xff]   ;;  %v2436_v35 = vsel %vm2320_vm14, %v2431_v47, %v2435_v17  ;;  %v3395_v46 = vsel %vm2927_vm1, %v3392_v28, %v3394_v51  ;;  %v2451_v48 = vrot.slane %v2449_v10, 1  ;;  %v2742_v39 = vsel %vm11545_vm11, %v7665_v4, 0  ;;  %vm11586_vm13 = vmmov %vm11546_vm0 }
 0x18d   : > { %v9691_v26 = vld [vmem:[#allocation2 + $0x88] sm:$0xff]   ;;  %v2444_v42 = vsel %vm2320_vm14, %v2439_v62, %v2443_v33  ;;  %v2447_v29 = vor.u32 %v2445_v25, %v2443_v33  ;;  %v3397_v1 = vsel %vm2927_vm1, %v3394_v51, %v3396_v56  ;;  %v7632_v63 = vld [vmem:[#allocation2 + $0x98] ss:$0 sps:$4 sm:$0x11]   ;;  %v3398_v34 = vrot.slane %v9689_v31, 1  ;;  %6856 = vmatpush3.bf16.msra.mxu0 %v2742_v39  ;;  %vm11601_vm11 = vmmov %vm11546_vm0 }
 0x18e   : > { %11543 = vst [vmem:[#allocation6_spill] sm:$0xff] %v9691_v26  ;;  %v9698_v12 = vld [vmem:[#allocation2 + $0x90] sm:$0xff]   ;;  %v2457_v0 = vshll.u32 %v9691_v26, 16  ;;  %v2453_v37 = vshrl.u32 %v9668_v9, 16  ;;  %v3682_v32 = vshrl.u32 %v9694_v44, 16  ;;  %v3685_v28 = vshll.u32 %v9694_v44, 16  ;;  %7490 = vmatprep.subr.msk.bf16.mxu0 %vm11546_vm0, %v9711_v18 }
 0x18f   : > { %v9704_v8 = vld [vmem:[#allocation2 + $0x90] ss:$0 sps:$4 sm:$0x11]   ;;  %v3400_v61 = vrot.slane %v9698_v12, 1  ;;  %v3690_v58 = vshrl.u32 %v9686_v54, 16  ;;  %v3693_v53 = vshll.u32 %v9686_v54, 16  ;;  %v2452_v16 = vsel %vm2320_vm14, %v2447_v29, %v2451_v48 }
 0x190   : > { %11544 = vst [vmem:[#allocation11_spill] sm:$0xff] %v9704_v8  ;;  %v2459_v21 = vrot.slane %v2457_v0, 1  ;;  %v2455_v14 = vor.u32 %v2453_v37, %v2451_v48  ;;  %v2465_v7 = vshll.u32 %v9704_v8, 16  ;;  %v3684_v17 = vrot.slane %v3682_v32, 1  ;;  %v9743_v29 = vld [vmem:[#allocation2 + $0x30] sm:$0xff]  }
 0x191   : > { %6844 = vmatmul.mubr.msk.bf16.gmra.mrb[60].mxu0 %vm2469_vm6, %v2436_v35  ;;  %v3687_v30 = vrot.slane %v3685_v28, 2  ;;  %v3692_v47 = vrot.slane %v3690_v58, 1  ;;  %v3695_v51 = vrot.slane %v3693_v53, 2  ;;  %v3699_v59 = vshrl.u32 %v9700_v24, 16  ;;  %v9754_v53 = vld [vmem:[#allocation2 + $0x8] sm:$0xc] }
 0x192   : > { %6958 = vmatmul.mubr.msk.bf16.gmra.mrb[8].mxu1 %vm2469_vm6, %v3395_v46  ;;  %6847 = vmatprep.mubr.msk.bf16.mxu0 %vm2469_vm6, %v2444_v42  ;;  %v2461_v20 = vshrl.u32 %v9691_v26, 16  ;;  %v3402_v33 = vrot.slane %v7632_v63, 1  ;;  %v3702_v10 = vshll.u32 %v9700_v24, 16  ;;  %v3708_v62 = vshrl.u32 %v9706_v60, 16 }
 0x193   : > { %6961 = vmatprep.mubr.msk.bf16.mxu1 %vm2469_vm6, %v3397_v1  ;;  %v3399_v25 = vsel %vm2927_vm1, %v3396_v56, %v3398_v34  ;;  %v2460_v35 = vsel %vm2320_vm14, %v2455_v14, %v2459_v21  ;;  %v3401_v46 = vsel %vm2927_vm1, %v3398_v34, %v3400_v61  ;;  %v3711_v42 = vshll.u32 %v9706_v60, 16  ;;  %v9748_v34 = vld [vmem:[#allocation2 + $0x38] sm:$0xff]  }
 0x194   : > { %v2463_v48 = vor.u32 %v2461_v20, %v2459_v21  ;;  %v2467_v0 = vrot.slane %v2465_v7, 1  ;;  %v3688_v1 = vor.u32 %v3687_v30, %v3684_v17  ;;  %v3696_v4 = vor.u32 %v3695_v51, %v3692_v47 }
 0x195   : > { %v3701_v39 = vrot.slane %v3699_v59, 1  ;;  %v3704_v63 = vrot.slane %v3702_v10, 2  ;;  %v3717_v37 = vshrl.u32 %v9731_v6, 16  ;;  %v3720_v32 = vshll.u32 %v9731_v6, 16 }
 0x196   : > { %vm3680_vm15 = vsmask.f32 6400  ;;  %v3710_v56 = vrot.slane %v3708_v62, 1  ;;  %v3713_v28 = vrot.slane %v3711_v42, 2  ;;  %v3726_v21 = vshrl.u32 %v9743_v29, 16 }
 0x197   : > { %v3729_v58 = vshll.u32 %v9743_v29, 16  ;;  %v2468_v14 = vsel %vm2320_vm14, %v2463_v48, %v2467_v0  ;;  %v9761_v7 = vsel %vm11547_vm7, %v9618_v23, 0  ;;  %v3697_v30 = vsel %vm3680_vm15, %v3688_v1, %v3696_v4  ;;  %vm11550_vm14 = vmmov %vm11546_vm0 }
 0x198   : > { %v3705_v47 = vor.u32 %v3704_v63, %v3701_v39  ;;  %v3719_v51 = vrot.slane %v3717_v37, 1  ;;  %v3722_v59 = vrot.slane %v3720_v32, 2  ;;  %v9766_v20 = vor.u32 %v3713_v28, %v3710_v56 }
 0x199   : > { %6848 = vmatmul.mubr.msk.bf16.gmra.mrb[64].mxu0 %vm2469_vm6, %v2452_v16  ;;  %v3403_v16 = vsel %vm2927_vm1, %v3400_v61, %v3402_v33  ;;  %v3735_v10 = vshrl.u32 %v9748_v34, 16  ;;  %v3753_v62 = vshrl.u32 %v9569_v2, 16  ;;  %v3756_v61 = vshll.u32 %v9569_v2, 16 }
 0x19a   : > { %6962 = vmatmul.mubr.msk.bf16.gmra.mrb[12].mxu1 %vm2469_vm6, %v3399_v25  ;;  %6851 = vmatprep.mubr.msk.bf16.mxu0 %vm2469_vm6, %v2460_v35  ;;  %v9771_v33 = vrot.slane %v3726_v21, 1  ;;  %v9773_v23 = vrot.slane %v3729_v58, 2  ;;  %v3762_v35 = vshrl.u32 %v9575_v38, 16  ;;  %v3765_v48 = vshll.u32 %v9575_v38, 16  ;;  %v11548_v58 = vld [vmem:[#allocation24_spill] sm:$0xff] }
 0x19b   : > { %6965 = vmatprep.mubr.msk.bf16.mxu1 %vm2469_vm6, %v3401_v46  ;;  %v3755_v46 = vrot.slane %v3753_v62, 1  ;;  %v3758_v42 = vrot.slane %v3756_v61, 2  ;;  %v3771_v0 = vshrl.u32 %v9590_v36, 16  ;;  %v3706_v1 = vsel %vm3680_vm15, %v3696_v4, %v3705_v47 }
 0x19c   : > { %v9780_v39 = vor.u32 %v3722_v59, %v3719_v51  ;;  %v3764_v63 = vrot.slane %v3762_v35, 1  ;;  %v3774_v37 = vshll.u32 %v9590_v36, 16  ;;  %v9784_v32 = vrot.slane %v3735_v10, 1 }
 0x19d   : > { %v3767_v56 = vrot.slane %v3765_v48, 2  ;;  %v3773_v28 = vrot.slane %v3771_v0, 1  ;;  %v3780_v21 = vshrl.u32 %v9606_v52, 16  ;;  %v3715_v4 = vsel %vm3680_vm15, %v3705_v47, %v9766_v20 }
 0x19e   : > { %v3776_v51 = vrot.slane %v3774_v37, 2  ;;  %v3783_v59 = vshll.u32 %v9606_v52, 16  ;;  %v3789_v62 = vshrl.u32 %v9613_v40, 16  ;;  %v3792_v35 = vshll.u32 %v9613_v40, 16 }
 0x19f   : > { %v3768_v10 = vor.u32 %v3767_v56, %v3764_v63  ;;  %v3782_v61 = vrot.slane %v3780_v21, 1  ;;  %v3801_v57 = vshll.u32 %v9629_v41, 16  ;;  %v3810_v56 = vshll.u32 %v9662_v13, 16 }
 0x1a0   : > { %v3785_v48 = vrot.slane %v3783_v59, 2  ;;  %v3791_v0 = vrot.slane %v3789_v62, 1  ;;  %v3794_v37 = vrot.slane %v3792_v35, 2  ;;  %v3816_v62 = vshrl.u32 %v9672_v19, 16 }
 0x1a1   : > { %6852 = vmatmul.mubr.msk.bf16.gmra.mrb[68].mxu0 %vm2469_vm6, %v2468_v14  ;;  %v9795_v14 = vor.u32 %v3758_v42, %v3755_v46  ;;  %v3812_v17 = vrot.slane %v3810_v56, 2  ;;  %v3819_v25 = vshll.u32 %v9672_v19, 16  ;;  %v3834_v9 = vshrl.u32 %v9698_v12, 16 }
 0x1a2   : > { %6966 = vmatmul.mubr.msk.bf16.gmra.mrb[16].mxu1 %vm2469_vm6, %v3403_v16  ;;  %6857 = vmatprep.mubr.msk.bf16.mxu0 %vm2469_vm6, %v11548_v58  ;;  %v3777_v16 = vor.u32 %v3776_v51, %v3773_v28  ;;  %v3798_v58 = vshrl.u32 %v9629_v41, 16  ;;  %v3786_v42 = vor.u32 %v3785_v48, %v3782_v61  ;;  %v9809_v28 = vld [vmem:[#allocation2 + $0x40] sm:$0xff]   ;;  %v3795_v21 = vor.u32 %v3794_v37, %v3791_v0  ;;  %v9820_v61 = vld [vmem:[%s11016_s4 + $0x18] sm:$0xf]  ;;  %v9822_v48 = vld [vmem:[#allocation2 + $0x8] sm:$0xff]  }
 0x1a3   : > { %6971 = vmatprep.mubr.msk.bf16.mxu1 %vm2469_vm6, %v3697_v30  ;;  %v9801_v47 = vsel %vm3680_vm15, %v9795_v14, %v3768_v10  ;;  %v3807_v30 = vshrl.u32 %v9662_v13, 16  ;;  %11549 = vst [vmem:[#allocation10_spill] sm:$0xff] %v9809_v28  ;;  %v3803_v51 = vrot.slane %v3801_v57, 2  ;;  %v3818_v0 = vrot.slane %v3816_v62, 1 }
 0x1a4   : > { %v9806_v46 = vsel %vm3680_vm15, %v3768_v10, %v3777_v16  ;;  %v3800_v63 = vrot.slane %v3798_v58, 1  ;;  %v9813_v35 = vsel %vm3680_vm15, %v3777_v16, %v3786_v42  ;;  %v3825_v10 = vshrl.u32 %v9689_v31, 16  ;;  %v9830_v37 = vld [vmem:[#allocation2 + $0x98] ss:$0 sps:$4 sm:$0x33]  }
 0x1a5   : > { %v3809_v59 = vrot.slane %v3807_v30, 1  ;;  %v9827_v57 = vsel %vm3680_vm15, %v3786_v42, %v3795_v21  ;;  %v3828_v58 = vshll.u32 %v9689_v31, 16  ;;  %v9832_v30 = vld [vmem:[#allocation2 + $0x10] sm:$0xff]   ;;  %v3821_v8 = vrot.slane %v3819_v25, 2 }
 0x1a6   : > { %v3804_v16 = vor.u32 %v3803_v51, %v3800_v63  ;;  %v3827_v26 = vrot.slane %v3825_v10, 1  ;;  %v3744_v42 = vshrl.u32 %v9809_v28, 16  ;;  %v3837_v62 = vshll.u32 %v9698_v12, 16 }
 0x1a7   : > { %v3813_v56 = vor.u32 %v3812_v17, %v3809_v59  ;;  %v3830_v51 = vrot.slane %v3828_v58, 2  ;;  %v3822_v25 = vor.u32 %v3821_v8, %v3818_v0  ;;  %v3836_v59 = vrot.slane %v3834_v9, 1 }
 0x1a8   : > { %v9842_v63 = vsel %vm3680_vm15, %v3795_v21, %v3804_v16  ;;  %v3843_v10 = vshrl.u32 %v9830_v37, 16  ;;  %v3846_v21 = vshll.u32 %v9830_v37, 16  ;;  %v3747_v58 = vshll.u32 %v9809_v28, 16 }
 0x1a9   : > { %6858 = vmatmul.mubr.msk.bf16.vlgmr.msra.gmra.mrb[36].mxu0 %vm2469_vm6, %v9822_v48  ;;  %v9848_v17 = vsel %vm3680_vm15, %v3804_v16, %v3813_v56  ;;  %v9856_v15 = vsel %vm3680_vm15, %v3813_v56, %v3822_v25  ;;  %vm4127_vm10 = vcmask 1045504   ;;  %v3724_v16 = vsel %vm3680_vm15, %v9766_v20, %v9780_v39 }
 0x1aa   : > { %6861 = vmatprep.mubr.msk.bf16.mxu0 %vm2469_vm6, %v9832_v30  ;;  %6972 = vmatmul.mubr.msk.bf16.vlgmr.msra.gmra.mrb[20].mxu1 %vm2469_vm6, %v3706_v1  ;;  %v3732_v1 = vor.u32 %v9773_v23, %v9771_v33  ;;  %v3020_v33 = vsel %vm11551_vm12, %v9711_v18, 0  ;;  %v3845_v23 = vrot.slane %v3843_v10, 1  ;;  %v11552_v0 = vshll.u32 %v9748_v34, 16 }
 0x1ab   : > { %7008 = vmatpush3.bf16.msra.mxu1 %v9761_v7  ;;  %6975 = vmatprep.mubr.msk.bf16.mxu1 %vm2469_vm6, %v3715_v4  ;;  %v3831_v7 = vor.u32 %v3830_v51, %v3827_v26  ;;  %v3839_v4 = vrot.slane %v3837_v62, 2  ;;  %v3848_v26 = vrot.slane %v3846_v21, 2  ;;  %v11553_v56 = vcombine.low %v9754_v53, %v9676_v45  ;;  %v9884_v53 = vld [vmem:[#allocation2 + $0x20] sm:$0xff]  }
 0x1ac   : > { %7495 = vmatprep.subr.msk.bf16.mxu1 %vm11550_vm14, %v9820_v61  ;;  %6894 = vmatpush3.bf16.msra.mxu0 %v3020_v33  ;;  %v3740_v51 = vrot.slane %v11552_v0, 2  ;;  %v4129_v18 = vrot.slane %v9686_v54, 2  ;;  %v3746_v20 = vrot.slane %v3744_v42, 1  ;;  %v4131_v45 = vrot.slane %v9700_v24, 2 }
 0x1ad   : > { %v9861_v9 = vsel %vm3680_vm15, %v3822_v25, %v3831_v7  ;;  %v3840_v8 = vor.u32 %v3839_v4, %v3836_v59  ;;  %v4128_v62 = vrot.slane %v11553_v56, 2  ;;  %v7668_v25 = vld [vmem:[%s11016_s4 + $0xc] sm:$0xf]  ;;  %v9876_v59 = vld [vmem:[#allocation2 + $0x18] sm:$0xff]   ;;  %v3849_v10 = vor.u32 %v3848_v26, %v3845_v23 }
 0x1ae   : > { %7491 = vmatprep.subr.msk.bf16.mxu0 %vm11554_vm4, %v7668_v25  ;;  %v3733_v21 = vsel %vm3680_vm15, %v9780_v39, %v3732_v1  ;;  %v3749_v33 = vrot.slane %v3747_v58, 2  ;;  %v4133_v42 = vrot.slane %v9706_v60, 2  ;;  %v9900_v23 = vsel %vm4127_vm10, %v4129_v18, %v4131_v45 }
 0x1af   : > { %v9881_v4 = vsel %vm3680_vm15, %v3831_v7, %v3840_v8  ;;  %v9892_v0 = vsel %vm4127_vm10, %v4128_v62, %v4129_v18  ;;  %v9897_v7 = vsel %vm3680_vm15, %v3840_v8, %v3849_v10  ;;  %v4137_v39 = vrot.slane %v9743_v29, 2 }
 0x1b0   : > { %v9903_v26 = vsel %vm4127_vm10, %v4131_v45, %v4133_v42  ;;  %v3741_v58 = vor.u32 %v3740_v51, %v9784_v32  ;;  %v4139_v56 = vrot.slane %v9748_v34, 2  ;;  %v3750_v62 = vor.u32 %v3749_v33, %v3746_v20  ;;  %v9924_v51 = vld [vmem:[#allocation2 + $0x28] sm:$0xff]  }
 0x1b1   : > { %6862 = vmatmul.mubr.msk.bf16.gmra.mrb[40].mxu0 %vm2469_vm6, %v9876_v59  ;;  %v4141_v18 = vrot.slane %v9809_v28, 2  ;;  %v4145_v32 = vrot.slane %v9575_v38, 2  ;;  %v4147_v33 = vrot.slane %v9590_v36, 2  ;;  %vm1656_vm2 = vcmask 59392  }
 0x1b2   : > { %6865 = vmatprep.mubr.msk.bf16.mxu0 %vm2469_vm6, %v9884_v53  ;;  %6976 = vmatmul.mubr.msk.bf16.gmra.mrb[24].mxu1 %vm2469_vm6, %v3724_v16  ;;  %v4135_v16 = vrot.slane %v9731_v6, 2  ;;  %v9917_v10 = vsel %vm4127_vm10, %v4137_v39, %v4139_v56  ;;  %v3742_v20 = vsel %vm3680_vm15, %v3732_v1, %v3741_v58  ;;  %vm4880_vm9 = vsmask.f32 5376 }
 0x1b3   : > { %6979 = vmatprep.mubr.msk.bf16.mxu1 %vm2469_vm6, %v3733_v21  ;;  %v9920_v45 = vsel %vm4127_vm10, %v4139_v56, %v4141_v18  ;;  %v4143_v21 = vrot.slane %v9569_v2, 2  ;;  %v9943_v1 = vsel %vm4127_vm10, %v4145_v32, %v4147_v33  ;;  %v4155_v56 = vrot.slane %v9662_v13, 2 }
 0x1b4   : > { %v9910_v25 = vsel %vm4127_vm10, %v4133_v42, %v4135_v16  ;;  %v9913_v8 = vsel %vm4127_vm10, %v4135_v16, %v4137_v39  ;;  %v3751_v42 = vsel %vm3680_vm15, %v3741_v58, %v3750_v62  ;;  %v4149_v39 = vrot.slane %v9606_v52, 2 }
 0x1b5   : > { %v9935_v16 = vsel %vm4127_vm10, %v4141_v18, %v4143_v21  ;;  %v9938_v38 = vsel %vm4127_vm10, %v4143_v21, %v4145_v32  ;;  %v4153_v58 = vrot.slane %v9629_v41, 2  ;;  %v4157_v52 = vrot.slane %v9672_v19, 2 }
 0x1b6   : > { %v9946_v36 = vsel %vm4127_vm10, %v4147_v33, %v4149_v39  ;;  %v4161_v41 = vrot.slane %v9698_v12, 2  ;;  %v3760_v13 = vsel %vm3680_vm15, %v3750_v62, %v9795_v14  ;;  %v3367_v33 = vrot.slane %v9694_v44, 1  ;;  %v2921_v12 = vld [vmem:[#allocation2] sm:$0xe]  ;;  %vm11605_vm15 = vmmov %vm11554_vm4 }
 0x1b7   : > { %v9959_v32 = vsel %vm4127_vm10, %v4153_v58, %v4155_v56  ;;  %v3368_v19 = vrot.slane %v9686_v54, 1  ;;  %v3370_v54 = vrot.slane %v9700_v24, 1  ;;  %v3372_v14 = vrot.slane %v9706_v60, 1 }
 0x1b8   : > { %v3378_v24 = vrot.slane %v9748_v34, 1  ;;  %v11122_v60 = vrot.slane %v9809_v28, 1  ;;  %v2929_v34 = vrot.slane %v9822_v48, 1  ;;  %v10035_v48 = vld [vmem:[#allocation2 + $0x20] sm:$0xff]   ;;  %vm5327_vm3 = vcmask 1044480  }
 0x1b9   : > { %6866 = vmatmul.mubr.msk.bf16.gmra.mrb[44].mxu0 %vm2469_vm6, %v9924_v51  ;;  %v9985_v44 = vsel %vm2927_vm1, %v3367_v33, %v3368_v19  ;;  %v9993_v62 = vsel %vm2927_vm1, %v3368_v19, %v3370_v54  ;;  %v10028_v33 = vld [vmem:[#allocation2 + $0x10] sm:$0x8]  ;;  %v10037_v19 = vld [vmem:[#allocation2 + $0x28] sm:$0xff]   ;;  %vm11597_vm5 = vcmask 1041408   ;;  %vm5722_vm7 = vcmask 31744  }
 0x1ba   : > { %6869 = vmatprep.mubr.msk.bf16.mxu0 %vm2469_vm6, %v9404_v27  ;;  %6980 = vmatmul.mubr.msk.bf16.gmra.mrb[28].mxu1 %vm2469_vm6, %v3742_v20  ;;  %v4151_v27 = vrot.slane %v9613_v40, 2  ;;  %v9962_v20 = vsel %vm4127_vm10, %v4155_v56, %v4157_v52  ;;  %v4159_v40 = vrot.slane %v9689_v31, 2  ;;  %11557 = vst [vmem:[#allocation16_spill] sm:$0xff] %v9985_v44  ;;  %11559 = vst [vmem:[#allocation19_spill] sm:$0xff] %v9993_v62 }
 0x1bb   : > { %6983 = vmatprep.mubr.msk.bf16.mxu1 %vm2469_vm6, %v3751_v42  ;;  %vm11603_vm0 = vmmov %vm11597_vm5 }
 0x1bc   : > { %v9952_v18 = vsel %vm4127_vm10, %v4149_v39, %v4151_v27  ;;  %v9955_v21 = vsel %vm4127_vm10, %v4151_v27, %v4153_v58  ;;  %v9976_v42 = vsel %vm4127_vm10, %v4157_v52, %v4159_v40  ;;  %v9979_v31 = vsel %vm4127_vm10, %v4159_v40, %v4161_v41 }
 0x1bd   : > { %11555 = vst [vmem:[#allocation7_spill] sm:$0xff] %v9976_v42  ;;  %11556 = vst [vmem:[#allocation4_spill] sm:$0xff] %v9979_v31  ;;  %v3374_v39 = vrot.slane %v9731_v6, 1  ;;  %v3376_v58 = vrot.slane %v9743_v29, 1  ;;  %v4435_v6 = vld [vmem:[#allocation2 + $0x10] sm:$0xc] }
 0x1bf   : > { %v10001_v56 = vsel %vm2927_vm1, %v3372_v14, %v3374_v39  ;;  %v10005_v52 = vsel %vm2927_vm1, %v3374_v39, %v3376_v58  ;;  %v10011_v40 = vsel %vm2927_vm1, %v3376_v58, %v3378_v24  ;;  %v11567_v39 = vmov 0  }
 0x1c0   : > { %11561 = vst [vmem:[#allocation13_spill] sm:$0xff] %v10001_v56  ;;  %11562 = vst [vmem:[#allocation22_spill] sm:$0xff] %v10005_v52 }
 0x1c1   : > { %6870 = vmatmul.mubr.msk.bf16.gmra.mrb[48].mxu0 %vm2469_vm6, %v9456_v11  ;;  %v4163_v11 = vrot.slane %v9830_v37, 2  ;;  %v7672_v37 = vld [vmem:[#allocation2 + $0x4] sm:$0xf]  ;;  %11563 = vst [vmem:[#allocation21_spill] sm:$0xff] %v10011_v40  ;;  %1657 = vst.msk [vmem:[#allocation2 + $0xa0] sm:$0x7] %vm1656_vm2, %v11567_v39 }
 0x1c2   : > { %6873 = vmatprep.mubr.msk.bf16.mxu0 %vm2469_vm6, %v9481_v3  ;;  %6984 = vmatmul.mubr.msk.bf16.gmra.mrb[32].mxu1 %vm2469_vm6, %v3760_v13  ;;  %v6329_v27 = vcombine.low %v2921_v12, %v7672_v37  ;;  %v10026_v13 = vld [vmem:[#allocation2 + $0x14] sm:$0xf]  ;;  %v10070_v39 = vld [vmem:[#allocation2 + $0x40] sm:$0xff]   ;;  %v4911_v12 = vshll.u32 %v10037_v19, 16 }
 0x1c3   : > { %6987 = vmatprep.mubr.msk.bf16.mxu1 %vm2469_vm6, %v9801_v47  ;;  %v9989_v3 = vsel %vm4127_vm10, %v4161_v41, %v4163_v11  ;;  %v9997_v47 = vsel %vm2927_vm1, %v3370_v54, %v3372_v14  ;;  %v10021_v41 = vsel %vm2927_vm1, %v3378_v24, %v11122_v60  ;;  %v10050_v54 = vsel %vm11566_vm8, %v9820_v61, 0  ;;  %v10052_v14 = vld [vmem:[#allocation2 + $0x30] sm:$0xff]   ;;  %v10060_v24 = vld [vmem:[#allocation2 + $0x38] sm:$0xff]  }
 0x1c4   : > { %11558 = vst [vmem:[#allocation12_spill] sm:$0xff] %v9989_v3  ;;  %11560 = vst [vmem:[#allocation20_spill] sm:$0xff] %v9997_v47  ;;  %v2928_v29 = vrot.slane %v6329_v27, 1  ;;  %v4913_v56 = vrot.slane %v4911_v12, 3  ;;  %v10077_v47 = vld [vmem:[#allocation2 + $0x48] sm:$0xff]   ;;  %v4929_v62 = vshll.u32 %v10060_v24, 16 }
 0x1c5   : > { %11564 = vst [vmem:[#allocation14_spill] sm:$0xff] %v10021_v41  ;;  %v10081_v3 = vld [vmem:[#allocation2 + $0x50] sm:$0xff]   ;;  %v11568_v12 = vrot.slane %v9876_v59, 1 }
 0x1c6   : > { %v10040_v11 = vsel %vm2927_vm1, %v2928_v29, %v2929_v34  ;;  %v4902_v29 = vshll.u32 %v10035_v48, 16 }
 0x1c8   : > { %v4904_v41 = vrot.slane %v4902_v29, 3 }
 0x1c9   : > { %6874 = vmatmul.mubr.msk.bf16.gmra.mrb[52].mxu0 %vm2469_vm6, %v9561_v22  ;;  %v2931_v22 = vrot.slane %v9832_v30, 1 }
 0x1ca   : > { %6877 = vmatprep.mubr.msk.bf16.mxu0 %vm2469_vm6, %v9577_v50  ;;  %6988 = vmatmul.mubr.msk.bf16.gmra.mrb[0].mxu1 %vm2469_vm6, %v9806_v46  ;;  %v10031_v50 = vcombine.low %v4435_v6, %v10026_v13  ;;  %v10033_v46 = vld [vmem:[#allocation2 + $0x18] sm:$0xff]   ;;  %v4899_v6 = vshrl.u32 %v10035_v48, 16 }
 0x1cb   : > { %6991 = vmatprep.mubr.msk.bf16.mxu1 %vm2469_vm6, %v9813_v35  ;;  %v10045_v30 = vsel %vm2927_vm1, %v2929_v34, %v2931_v22  ;;  %v4890_v58 = vshrl.u32 %v10033_v46, 16  ;;  %v4893_v61 = vshll.u32 %v10033_v46, 16  ;;  %v4908_v34 = vshrl.u32 %v10037_v19, 16 }
 0x1cc   : > { %11565 = vst [vmem:[#allocation25_spill] sm:$0xff] %v10031_v50  ;;  %v4882_v37 = vshrl.u32 %v10031_v50, 16  ;;  %v4885_v27 = vshll.u32 %v10031_v50, 16  ;;  %v4901_v2 = vrot.slane %v4899_v6, 2  ;;  %v10087_v29 = vsel %vm2927_vm1, %v2931_v22, %v11568_v12  ;;  %v10103_v22 = vld [vmem:[#allocation2 + $0x60] sm:$0xff]  }
 0x1cd   : > { %v4892_v35 = vrot.slane %v4890_v58, 2  ;;  %v4895_v28 = vrot.slane %v4893_v61, 3  ;;  %v4910_v40 = vrot.slane %v4908_v34, 2  ;;  %v4926_v58 = vshrl.u32 %v10060_v24, 16 }
 0x1ce   : > { %v4884_v60 = vrot.slane %v4882_v37, 2 }
 0x1cf   : > { %v4896_v37 = vor.u32 %v4895_v28, %v4892_v35  ;;  %v4928_v28 = vrot.slane %v4926_v58, 2  ;;  %v10096_v35 = vld [vmem:[#allocation2 + $0x58] sm:$0xff]   ;;  %v4953_v58 = vshrl.u32 %v10081_v3, 16 }
 0x1d1   : > { %6878 = vmatmul.mubr.msk.bf16.gmra.mrb[56].mxu0 %vm2469_vm6, %v9592_v43  ;;  %v4887_v43 = vrot.slane %v4885_v27, 3  ;;  %v4905_v27 = vor.u32 %v4904_v41, %v4901_v2  ;;  %v4955_v41 = vrot.slane %v4953_v58, 2 }
 0x1d2   : > { %6881 = vmatprep.mubr.msk.bf16.mxu0 %vm2469_vm6, %v9608_v55  ;;  %6992 = vmatmul.mubr.msk.bf16.gmra.mrb[4].mxu1 %vm2469_vm6, %v9827_v57  ;;  %v4917_v55 = vshrl.u32 %v10052_v14, 16  ;;  %v4920_v57 = vshll.u32 %v10052_v14, 16 }
 0x1d3   : > { %6995 = vmatprep.mubr.msk.bf16.mxu1 %vm2469_vm6, %v9842_v63  ;;  %v4888_v52 = vor.u32 %v4887_v43, %v4884_v60  ;;  %v4914_v63 = vor.u32 %v4913_v56, %v4910_v40  ;;  %v4935_v60 = vshrl.u32 %v10070_v39, 16  ;;  %v10093_v2 = vsel %vm4880_vm9, %v4896_v37, %v4905_v27 }
 0x1d4   : > { %v4919_v61 = vrot.slane %v4917_v55, 2  ;;  %v4922_v6 = vrot.slane %v4920_v57, 3  ;;  %11570 = vst [vmem:[#allocation15_spill] sm:$0xff] %v10093_v2  ;;  %v4931_v43 = vrot.slane %v4929_v62, 3  ;;  %v4938_v55 = vshll.u32 %v10070_v39, 16 }
 0x1d5   : > { %v10090_v34 = vsel %vm4880_vm9, %v4888_v52, %v4896_v37  ;;  %v10099_v56 = vsel %vm4880_vm9, %v4905_v27, %v4914_v63  ;;  %v4937_v52 = vrot.slane %v4935_v60, 2  ;;  %v4944_v57 = vshrl.u32 %v10077_v47, 16  ;;  %v10112_v27 = vld [vmem:[#allocation2 + $0x68] sm:$0xff]  }
 0x1d6   : > { %11569 = vst [vmem:[#allocation23_spill] sm:$0xff] %v10090_v34  ;;  %11571 = vst [vmem:[#allocation27_spill] sm:$0xff] %v10099_v56  ;;  %v4923_v40 = vor.u32 %v4922_v6, %v4919_v61  ;;  %v4947_v37 = vshll.u32 %v10077_v47, 16  ;;  %v4956_v61 = vshll.u32 %v10081_v3, 16  ;;  %v4940_v60 = vrot.slane %v4938_v55, 3  ;;  %v10132_v55 = vld [vmem:[#allocation2 + $0x80] sm:$0xff]  }
 0x1d7   : > { %v4971_v6 = vshrl.u32 %v10103_v22, 16  ;;  %v4980_v58 = vshrl.u32 %v10112_v27, 16  ;;  %v5010_v31 = vshll.u32 %v10132_v55, 16 }
 0x1d8   : > { %v10115_v62 = vsel %vm4880_vm9, %v4914_v63, %v4923_v40  ;;  %v4949_v12 = vrot.slane %v4947_v37, 3  ;;  %v4958_v56 = vrot.slane %v4956_v61, 3  ;;  %v4962_v63 = vshrl.u32 %v10096_v35, 16 }
 0x1d9   : > { %6882 = vmatmul.mubr.msk.bf16.gmra.mrb[60].mxu0 %vm2469_vm6, %v9621_v49  ;;  %11572 = vst [vmem:[#allocation26_spill] sm:$0xff] %v10115_v62  ;;  %v4932_v49 = vor.u32 %v4931_v43, %v4928_v28  ;;  %v10126_v28 = vld [vmem:[#allocation2 + $0x70] sm:$0xff]   ;;  %v10128_v43 = vld [vmem:[#allocation2 + $0x78] sm:$0xff]   ;;  %v4941_v62 = vor.u32 %v4940_v60, %v4937_v52  ;;  %v4973_v60 = vrot.slane %v4971_v6, 2  ;;  %v4982_v34 = vrot.slane %v4980_v58, 2 }
 0x1da   : > { %6885 = vmatprep.mubr.msk.bf16.mxu0 %vm2469_vm6, %v9641_v5  ;;  %6996 = vmatmul.mubr.msk.bf16.gmra.mrb[8].mxu1 %vm2469_vm6, %v9848_v17  ;;  %v4946_v5 = vrot.slane %v4944_v57, 2  ;;  %v4959_v57 = vor.u32 %v4958_v56, %v4955_v41  ;;  %v4964_v37 = vrot.slane %v4962_v63, 2  ;;  %v4983_v41 = vshll.u32 %v10112_v27, 16  ;;  %v11577_v56 = vld [vmem:[#allocation8_spill] sm:$0xff]  ;;  %v11578_v6 = vld [vmem:[#allocation9_spill] sm:$0xff] }
 0x1db   : > { %6999 = vmatprep.mubr.msk.bf16.mxu1 %vm2469_vm6, %v9856_v15  ;;  %v10123_v17 = vsel %vm4880_vm9, %v4923_v40, %v4932_v49  ;;  %v4965_v15 = vshll.u32 %v10096_v35, 16  ;;  %v4974_v40 = vshll.u32 %v10103_v22, 16  ;;  %v10137_v61 = vsel %vm4880_vm9, %v4932_v49, %v4941_v62  ;;  %v10148_v63 = vld [vmem:[#allocation2 + $0x88] sm:$0xff]  }
 0x1dc   : > { %11573 = vst [vmem:[#allocation17_spill] sm:$0xff] %v10123_v17  ;;  %v4950_v2 = vor.u32 %v4949_v12, %v4946_v5  ;;  %11574 = vst [vmem:[#allocation29_spill] sm:$0xff] %v10137_v61  ;;  %v4989_v49 = vshrl.u32 %v10126_v28, 16  ;;  %v4985_v58 = vrot.slane %v4983_v41, 3  ;;  %v10166_v61 = vld [vmem:[#allocation2 + $0x98] sm:$0xff]   ;;  %v5016_v42 = vshrl.u32 %v10148_v63, 16 }
 0x1dd   : > { %v4967_v52 = vrot.slane %v4965_v15, 3  ;;  %v4976_v12 = vrot.slane %v4974_v40, 3  ;;  %v4998_v15 = vshrl.u32 %v10128_v43, 16 }
 0x1de   : > { %v10140_v17 = vsel %vm4880_vm9, %v4941_v62, %v4950_v2  ;;  %v10143_v5 = vsel %vm4880_vm9, %v4950_v2, %v4959_v57  ;;  %v4992_v62 = vshll.u32 %v10126_v28, 16  ;;  %v10157_v2 = vld [vmem:[#allocation2 + $0x90] sm:$0xff]  }
 0x1df   : > { %11575 = vst [vmem:[#allocation28_spill] sm:$0xff] %v10140_v17  ;;  %11576 = vst [vmem:[#allocation18_spill] sm:$0xff] %v10143_v5  ;;  %v4968_v44 = vor.u32 %v4967_v52, %v4964_v37  ;;  %v4977_v40 = vor.u32 %v4976_v12, %v4973_v60  ;;  %v5007_v37 = vshrl.u32 %v10132_v55, 16  ;;  %v4991_v5 = vrot.slane %v4989_v49, 2 }
 0x1e0   : > { %v4994_v17 = vrot.slane %v4992_v62, 3  ;;  %v4986_v60 = vor.u32 %v4985_v58, %v4982_v34 }
 0x1e1   : > { %6886 = vmatmul.mubr.msk.bf16.gmra.mrb[64].mxu0 %vm2469_vm6, %v11577_v56  ;;  %v5001_v56 = vshll.u32 %v10128_v43, 16  ;;  %v10164_v52 = vsel %vm4880_vm9, %v4959_v57, %v4968_v44  ;;  %v5009_v41 = vrot.slane %v5007_v37, 2  ;;  %v10174_v57 = vld [vmem:[#allocation2 + $0xa0] ss:$0 sps:$4 sm:$0x77]  }
 0x1e2   : > { %6889 = vmatprep.mubr.msk.bf16.mxu0 %vm2469_vm6, %v11578_v6  ;;  %7000 = vmatmul.mubr.msk.bf16.gmra.mrb[12].mxu1 %vm2469_vm6, %v9861_v9  ;;  %11579 = vst [vmem:[#allocation35_spill] sm:$0xff] %v10164_v52  ;;  %v5000_v6 = vrot.slane %v4998_v15, 2  ;;  %v10169_v9 = vsel %vm4880_vm9, %v4968_v44, %v4977_v40  ;;  %v4995_v50 = vor.u32 %v4994_v17, %v4991_v5  ;;  %v5025_v15 = vshrl.u32 %v10157_v2, 16 }
 0x1e3   : > { %7003 = vmatprep.mubr.msk.bf16.mxu1 %vm2469_vm6, %v9881_v4  ;;  %11580 = vst [vmem:[#allocation33_spill] sm:$0xff] %v10169_v9  ;;  %v5003_v12 = vrot.slane %v5001_v56, 3  ;;  %v5019_v4 = vshll.u32 %v10148_v63, 16  ;;  %v10177_v49 = vsel %vm4880_vm9, %v4977_v40, %v4986_v60  ;;  %v5028_v44 = vshll.u32 %v10157_v2, 16  ;;  %v11582_v40 = vld [vmem:[#allocation6_spill] sm:$0xff] }
 0x1e4   : > { %11581 = vst [vmem:[#allocation30_spill] sm:$0xff] %v10177_v49  ;;  %v10182_v34 = vsel %vm4880_vm9, %v4986_v60, %v4995_v50  ;;  %v5012_v17 = vrot.slane %v5010_v31, 3  ;;  %v5018_v5 = vrot.slane %v5016_v42, 2  ;;  %v5027_v37 = vrot.slane %v5025_v15, 2 }
 0x1e5   : > { %v5004_v62 = vor.u32 %v5003_v12, %v5000_v6  ;;  %v5021_v58 = vrot.slane %v5019_v4, 3  ;;  %v5030_v9 = vrot.slane %v5028_v44, 3  ;;  %v5034_v52 = vshrl.u32 %v10166_v61, 16 }
 0x1e6   : > { %v5013_v6 = vor.u32 %v5012_v17, %v5009_v41  ;;  %v5037_v49 = vshll.u32 %v10166_v61, 16  ;;  %v5043_v60 = vshrl.u32 %v10174_v57, 16  ;;  %v5329_v17 = vrot.slane %v10033_v46, 3 }
 0x1e7   : > { %v10185_v56 = vsel %vm4880_vm9, %v4995_v50, %v5004_v62  ;;  %v5022_v12 = vor.u32 %v5021_v58, %v5018_v5  ;;  %v5031_v42 = vor.u32 %v5030_v9, %v5027_v37  ;;  %v5036_v31 = vrot.slane %v5034_v52, 2 }
 0x1e8   : > { %v5046_v50 = vshll.u32 %v10174_v57, 16  ;;  %v10200_v41 = vsel %vm4880_vm9, %v5004_v62, %v5013_v6  ;;  %v5039_v15 = vrot.slane %v5037_v49, 3  ;;  %v5045_v44 = vrot.slane %v5043_v60, 2 }
 0x1e9   : > { %6890 = vmatmul.mubr.msk.bf16.gmra.mrb[68].mxu0 %vm2469_vm6, %v11582_v40  ;;  %v10203_v4 = vsel %vm4880_vm9, %v5013_v6, %v5022_v12  ;;  %v11583_v52 = vcombine.low %v10028_v33, %v10026_v13  ;;  %v5333_v62 = vrot.slane %v10037_v19, 3  ;;  %v5335_v58 = vrot.slane %v10052_v14, 3 }
 0x1ea   : > { %6895 = vmatprep.mubr.msk.bf16.mxu0 %vm2469_vm6, %v10040_v11  ;;  %7004 = vmatmul.mubr.msk.bf16.gmra.mrb[16].mxu1 %vm2469_vm6, %v9897_v7  ;;  %v10206_v11 = vsel %vm4880_vm9, %v5022_v12, %v5031_v42  ;;  %v5048_v7 = vrot.slane %v5046_v50, 3  ;;  %v5040_v5 = vor.u32 %v5039_v15, %v5036_v31  ;;  %v5337_v40 = vrot.slane %v10060_v24, 3 }
 0x1eb   : > { %7009 = vmatprep.mubr.msk.bf16.mxu1 %vm2469_vm6, %v9892_v0  ;;  %v5328_v9 = vrot.slane %v11583_v52, 3  ;;  %v5331_v0 = vrot.slane %v10035_v48, 3  ;;  %v5339_v6 = vrot.slane %v10070_v39, 3  ;;  %v10230_v60 = vsel %vm5327_vm3, %v5333_v62, %v5335_v58 }
 0x1ec   : > { %v5049_v37 = vor.u32 %v5048_v7, %v5045_v44  ;;  %v10221_v13 = vsel %vm4880_vm9, %v5031_v42, %v5040_v5  ;;  %v10236_v50 = vsel %vm5327_vm3, %v5335_v58, %v5337_v40  ;;  %v5341_v42 = vrot.slane %v10077_v47, 3  ;;  %v10247_v44 = vld [vmem:[%s11016_s4 + $0x1c] sm:$0xf] }
 0x1ed   : > { %v10216_v49 = vsel %vm5327_vm3, %v5328_v9, %v5329_v17  ;;  %v10224_v33 = vsel %vm5327_vm3, %v5329_v17, %v5331_v0  ;;  %v10227_v12 = vsel %vm5327_vm3, %v5331_v0, %v5333_v62  ;;  %v10239_v15 = vsel %vm5327_vm3, %v5337_v40, %v5339_v6  ;;  %v11585_v40 = vld [vmem:[#allocation56_spill] sm:$0xff] }
 0x1ee   : > { %v10233_v31 = vsel %vm4880_vm9, %v5040_v5, %v5049_v37  ;;  %v5343_v7 = vrot.slane %v10081_v3, 3  ;;  %v5345_v52 = vrot.slane %v10096_v35, 3  ;;  %v5347_v9 = vrot.slane %v10103_v22, 3 }
 0x1ef   : > { %v5349_v17 = vrot.slane %v10112_v27, 3  ;;  %v5351_v5 = vrot.slane %v10126_v28, 3  ;;  %v5353_v0 = vrot.slane %v10128_v43, 3  ;;  %v5355_v62 = vrot.slane %v10132_v55, 3 }
 0x1f0   : > { %v10267_v58 = vsel %vm5327_vm3, %v5341_v42, %v5343_v7  ;;  %v5357_v37 = vrot.slane %v10148_v63, 3 }
 0x1f1   : > { %6896 = vmatmul.mubr.msk.bf16.vlgmr.msra.gmra.mrb[36].mxu0 %vm2469_vm6, %v10045_v30  ;;  %v10258_v30 = vsel %vm5327_vm3, %v5339_v6, %v5341_v42  ;;  %v10286_v6 = vsel %vm5327_vm3, %v5351_v5, %v5353_v0  ;;  %v5359_v42 = vrot.slane %v10157_v2, 3 }
 0x1f2   : > { %6899 = vmatprep.mubr.msk.bf16.mxu0 %vm2469_vm6, %v10087_v29  ;;  %7010 = vmatmul.mubr.msk.bf16.vlgmr.msra.gmra.mrb[20].mxu1 %vm2469_vm6, %v9900_v23  ;;  %v10270_v29 = vsel %vm5327_vm3, %v5343_v7, %v5345_v52  ;;  %v10273_v23 = vsel %vm5327_vm3, %v5345_v52, %v5347_v9  ;;  %11587 = vst [vmem:[#allocation36_spill] sm:$0xff] %v10286_v6  ;;  %v11589_v6 = vrot.slane %v9884_v53, 1 }
 0x1f3   : > { %7046 = vmatpush3.bf16.msra.mxu1 %v10050_v54  ;;  %7013 = vmatprep.mubr.msk.bf16.mxu1 %vm2469_vm6, %v9903_v26  ;;  %11584 = vst [vmem:[#allocation38_spill] sm:$0xff] %v10273_v23  ;;  %v10280_v54 = vsel %vm5327_vm3, %v5347_v9, %v5349_v17  ;;  %v10283_v26 = vsel %vm5327_vm3, %v5349_v17, %v5351_v5  ;;  %v5363_v23 = vrot.slane %v10174_v57, 3 }
 0x1f4   : > { %6932 = vmatpush3.bf16.msra.mxu0 %v11585_v40  ;;  %7496 = vmatprep.subr.msk.bf16.mxu1 %vm11586_vm13, %v10247_v44  ;;  %v10290_v7 = vsel %vm5327_vm3, %v5353_v0, %v5355_v62  ;;  %v10293_v52 = vsel %vm5327_vm3, %v5355_v62, %v5357_v37  ;;  %v5361_v40 = vrot.slane %v10166_v61, 3  ;;  %v10298_v9 = vsel %vm5327_vm3, %v5357_v37, %v5359_v42 }
 0x1f5   : > { %11588 = vst [vmem:[#allocation31_spill] sm:$0xff] %v10293_v52  ;;  %v11590_v0 = vrot.slane %v9876_v59, 1  ;;  %v11591_v52 = vrot.slane %v9924_v51, 1  ;;  %v11592_v57 = vmov %v11589_v6 }
 0x1f6   : > { %v10301_v17 = vsel %vm5327_vm3, %v5359_v42, %v5361_v40  ;;  %v10304_v5 = vsel %vm5327_vm3, %v5361_v40, %v5363_v23  ;;  %v7673_v23 = vld [vmem:[#allocation2 + $0x30] sm:$0xff]   ;;  %v7674_v42 = vld [vmem:[#allocation2 + $0x38] sm:$0xff]  }
 0x1f7   : > { %v2936_v62 = vsel %vm2927_vm1, %v11590_v0, %v11589_v6  ;;  %v2938_v37 = vsel %vm2927_vm1, %v11592_v57, %v11591_v52  ;;  %v2939_v59 = vrot.slane %v7673_v23, 1  ;;  %v2941_v6 = vrot.slane %v7674_v42, 1 }
 0x1f8   : > { %v11593_v40 = vmov %v11591_v52  ;;  %v7676_v52 = vld [vmem:[#allocation2 + $0x48] sm:$0xff]  }
 0x1f9   : > { %6900 = vmatmul.mubr.msk.bf16.gmra.mrb[40].mxu0 %vm2469_vm6, %v2936_v62  ;;  %v2940_v0 = vsel %vm2927_vm1, %v11593_v40, %v2939_v59  ;;  %v2942_v53 = vsel %vm2927_vm1, %v2939_v59, %v2941_v6  ;;  %v2945_v62 = vrot.slane %v7676_v52, 1 }
 0x1fa   : > { %6903 = vmatprep.mubr.msk.bf16.mxu0 %vm2469_vm6, %v2938_v37  ;;  %7014 = vmatmul.mubr.msk.bf16.gmra.mrb[24].mxu1 %vm2469_vm6, %v9910_v25  ;;  %v7675_v25 = vld [vmem:[#allocation2 + $0x40] sm:$0xff]   ;;  %v7678_v37 = vld [vmem:[#allocation2 + $0x58] sm:$0xff]  }
 0x1fb   : > { %7017 = vmatprep.mubr.msk.bf16.mxu1 %vm2469_vm6, %v9913_v8  ;;  %v2943_v8 = vrot.slane %v7675_v25, 1  ;;  %v2949_v23 = vrot.slane %v7678_v37, 1  ;;  %v7682_v25 = vld [vmem:[#allocation2 + $0x78] sm:$0xff]   ;;  %v11594_v37 = vld [vmem:[#allocation7_spill] sm:$0xff] }
 0x1fd   : > { %v2944_v51 = vsel %vm2927_vm1, %v2941_v6, %v2943_v8  ;;  %v2946_v57 = vsel %vm2927_vm1, %v2943_v8, %v2945_v62  ;;  %v7680_v6 = vld [vmem:[#allocation2 + $0x68] sm:$0xff]   ;;  %v2957_v8 = vrot.slane %v7682_v25, 1 }
 0x1fe   : > { %v2953_v40 = vrot.slane %v7680_v6, 1  ;;  %v11602_v25 = vld [vmem:[#allocation19_spill] sm:$0xff] }
 0x201   : > { %6904 = vmatmul.mubr.msk.bf16.gmra.mrb[44].mxu0 %vm2469_vm6, %v2940_v0 }
 0x202   : > { %6907 = vmatprep.mubr.msk.bf16.mxu0 %vm2469_vm6, %v2942_v53  ;;  %7018 = vmatmul.mubr.msk.bf16.gmra.mrb[28].mxu1 %vm2469_vm6, %v9917_v10  ;;  %v7677_v10 = vld [vmem:[#allocation2 + $0x50] sm:$0xff]  }
 0x203   : > { %7021 = vmatprep.mubr.msk.bf16.mxu1 %vm2469_vm6, %v9920_v45  ;;  %v2947_v45 = vrot.slane %v7677_v10, 1 }
 0x205   : > { %v2948_v59 = vsel %vm2927_vm1, %v2945_v62, %v2947_v45  ;;  %v2950_v42 = vsel %vm2927_vm1, %v2947_v45, %v2949_v23 }
 0x209   : > { %6908 = vmatmul.mubr.msk.bf16.gmra.mrb[48].mxu0 %vm2469_vm6, %v2944_v51  ;;  %v7684_v51 = vld [vmem:[#allocation2 + $0x88] sm:$0xff]  }
 0x20a   : > { %6911 = vmatprep.mubr.msk.bf16.mxu0 %vm2469_vm6, %v2946_v57  ;;  %7022 = vmatmul.mubr.msk.bf16.gmra.mrb[32].mxu1 %vm2469_vm6, %v9935_v16  ;;  %v7679_v16 = vld [vmem:[#allocation2 + $0x60] sm:$0xff]   ;;  %v2961_v57 = vrot.slane %v7684_v51, 1 }
 0x20b   : > { %7025 = vmatprep.mubr.msk.bf16.mxu1 %vm2469_vm6, %v9938_v38  ;;  %v2951_v38 = vrot.slane %v7679_v16, 1 }
 0x20d   : > { %v2952_v0 = vsel %vm2927_vm1, %v2949_v23, %v2951_v38  ;;  %v2954_v53 = vsel %vm2927_vm1, %v2951_v38, %v2953_v40  ;;  %v11595_v23 = vld [vmem:[#allocation4_spill] sm:$0xff]  ;;  %v11598_v38 = vld [vmem:[#allocation25_spill] sm:$0xff] }
 0x20e   : > { %v4567_v6 = vrot.slane %v11598_v38, 2 }
 0x211   : > { %6912 = vmatmul.mubr.msk.bf16.gmra.mrb[52].mxu0 %vm2469_vm6, %v2948_v59 }
 0x212   : > { %6915 = vmatprep.mubr.msk.bf16.mxu0 %vm2469_vm6, %v2950_v42  ;;  %7026 = vmatmul.mubr.msk.bf16.gmra.mrb[0].mxu1 %vm2469_vm6, %v9943_v1  ;;  %v7681_v1 = vld [vmem:[#allocation2 + $0x70] sm:$0xff]   ;;  %v4568_v42 = vrot.slane %v10033_v46, 2  ;;  %v4572_v46 = vrot.slane %v10037_v19, 2  ;;  %v4574_v19 = vrot.slane %v10052_v14, 2  ;;  %v4580_v14 = vrot.slane %v10077_v47, 2 }
 0x213   : > { %7029 = vmatprep.mubr.msk.bf16.mxu1 %vm2469_vm6, %v9946_v36  ;;  %v2955_v36 = vrot.slane %v7681_v1, 1  ;;  %v4570_v1 = vrot.slane %v10035_v48, 2  ;;  %v11610_v47 = vld [vmem:[#allocation5_spill] sm:$0xff] }
 0x214   : > { %v4575_v51 = vsel %vm4127_vm10, %v4572_v46, %v4574_v19 }
 0x215   : > { %v2956_v52 = vsel %vm2927_vm1, %v2953_v40, %v2955_v36  ;;  %v2958_v62 = vsel %vm2927_vm1, %v2955_v36, %v2957_v8  ;;  %v11599_v40 = vld [vmem:[#allocation16_spill] sm:$0xff]  ;;  %v5106_v36 = vsel %vm11601_vm11, %v10247_v44, 0  ;;  %v4573_v48 = vsel %vm4127_vm10, %v4570_v1, %v4572_v46 }
 0x216   : > { %v4576_v44 = vrot.slane %v10060_v24, 2  ;;  %v11608_v24 = vld [vmem:[#allocation21_spill] sm:$0xff] }
 0x219   : > { %6916 = vmatmul.mubr.msk.bf16.gmra.mrb[56].mxu0 %vm2469_vm6, %v2952_v0  ;;  %v11600_v0 = vld [vmem:[#allocation12_spill] sm:$0xff] }
 0x21a   : > { %6919 = vmatprep.mubr.msk.bf16.mxu0 %vm2469_vm6, %v2954_v53  ;;  %7030 = vmatmul.mubr.msk.bf16.gmra.mrb[4].mxu1 %vm2469_vm6, %v9952_v18  ;;  %v7683_v18 = vld [vmem:[#allocation2 + $0x80] sm:$0xff]   ;;  %v4569_v53 = vsel %vm4127_vm10, %v4567_v6, %v4568_v42 }
 0x21b   : > { %7033 = vmatprep.mubr.msk.bf16.mxu1 %vm2469_vm6, %v9955_v21  ;;  %v2959_v21 = vrot.slane %v7683_v18, 1  ;;  %v11604_v18 = vld [vmem:[#allocation20_spill] sm:$0xff] }
 0x21d   : > { %v2960_v10 = vsel %vm2927_vm1, %v2957_v8, %v2959_v21  ;;  %v2962_v45 = vsel %vm2927_vm1, %v2959_v21, %v2961_v57  ;;  %v4571_v8 = vsel %vm4127_vm10, %v4568_v42, %v4570_v1  ;;  %v11606_v21 = vld [vmem:[#allocation13_spill] sm:$0xff]  ;;  %v11612_v42 = vld [vmem:[#allocation10_spill] sm:$0xff]  ;;  %v7686_v1 = vld [vmem:[%s7790_s24 + $0x8] sm:$0xff]  }
 0x221   : > { %6920 = vmatmul.mubr.msk.bf16.gmra.mrb[60].mxu0 %vm2469_vm6, %v2956_v52  ;;  %v10397_v52 = vld [vmem:[%s11016_s4 + $0x20] sm:$0xf] }
 0x222   : > { %6923 = vmatprep.mubr.msk.bf16.mxu0 %vm2469_vm6, %v2958_v62  ;;  %7034 = vmatmul.mubr.msk.bf16.gmra.mrb[8].mxu1 %vm2469_vm6, %v9959_v32  ;;  %v5721_v32 = vld [vmem:[%s11019_s7] sm:$0x3] }
 0x223   : > { %7037 = vmatprep.mubr.msk.bf16.mxu1 %vm2469_vm6, %v9962_v20  ;;  %v11596_v20 = vld [vmem:[#allocation11_spill] sm:$0xff]  ;;  %7498 = vmatprep.subr.msk.bf16.mxu0 %vm11597_vm5, %v5721_v32  ;;  %v5760_v62 = vsel %vm11603_vm0, %v5721_v32, 0 }
 0x224   : > { %v2963_v59 = vrot.slane %v11596_v20, 1  ;;  %v4584_v20 = vrot.slane %v10096_v35, 2  ;;  %v4588_v35 = vrot.slane %v10112_v27, 2  ;;  %v4592_v27 = vrot.slane %v10128_v43, 2 }
 0x225   : > { %v4596_v43 = vrot.slane %v10148_v63, 2  ;;  %v4600_v63 = vrot.slane %v10166_v61, 2 }
 0x226   : > { %v2964_v16 = vsel %vm2927_vm1, %v2961_v57, %v2963_v59  ;;  %v11607_v57 = vld [vmem:[#allocation22_spill] sm:$0xff]  ;;  %v11611_v59 = vrot.slane %v11610_v47, 1 }
 0x227   : > { %v7697_v47 = vld [vmem:[%s7790_s24 + $0x60] sm:$0xff]  }
 0x229   : > { %6924 = vmatmul.mubr.msk.bf16.gmra.mrb[64].mxu0 %vm2469_vm6, %v2960_v10  ;;  %v4577_v10 = vsel %vm4127_vm10, %v4574_v19, %v4576_v44  ;;  %v7690_v19 = vld [vmem:[%s7790_s24 + $0x28] sm:$0xff]  }
 0x22a   : > { %6927 = vmatprep.mubr.msk.bf16.mxu0 %vm2469_vm6, %v2962_v45  ;;  %7038 = vmatmul.mubr.msk.bf16.gmra.mrb[12].mxu1 %vm2469_vm6, %v11594_v37  ;;  %v4578_v45 = vrot.slane %v10070_v39, 2  ;;  %v4582_v39 = vrot.slane %v10081_v3, 2  ;;  %v4586_v3 = vrot.slane %v10103_v22, 2  ;;  %v4590_v22 = vrot.slane %v10126_v28, 2 }
 0x22b   : > { %7041 = vmatprep.mubr.msk.bf16.mxu1 %vm2469_vm6, %v11595_v23  ;;  %v11609_v23 = vld [vmem:[#allocation14_spill] sm:$0xff]  ;;  %v4594_v28 = vrot.slane %v10132_v55, 2  ;;  %v4598_v55 = vrot.slane %v10157_v2, 2 }
 0x22c   : > { %v4579_v37 = vsel %vm4127_vm10, %v4576_v44, %v4578_v45  ;;  %v4581_v32 = vsel %vm4127_vm10, %v4578_v45, %v4580_v14  ;;  %v4583_v6 = vsel %vm4127_vm10, %v4580_v14, %v4582_v39  ;;  %v4589_v46 = vsel %vm4127_vm10, %v4586_v3, %v4588_v35  ;;  %v7693_v14 = vld [vmem:[%s7790_s24 + $0x40] sm:$0xff]  }
 0x22d   : > { %v4597_v44 = vsel %vm4127_vm10, %v4594_v28, %v4596_v43  ;;  %v4601_v45 = vsel %vm4127_vm10, %v4598_v55, %v4600_v63 }
 0x231   : > { %6928 = vmatmul.mubr.msk.bf16.gmra.mrb[68].mxu0 %vm2469_vm6, %v2964_v16  ;;  %v11613_v16 = vrot.slane %v11612_v42, 1  ;;  %v7698_v42 = vld [vmem:[%s7790_s24 + $0x68] sm:$0xff]  }
 0x232   : > { %6933 = vmatprep.mubr.msk.bf16.mxu0 %vm2469_vm6, %v11599_v40  ;;  %7042 = vmatmul.mubr.msk.bf16.gmra.mrb[16].mxu1 %vm2469_vm6, %v11600_v0  ;;  %v4585_v40 = vsel %vm4127_vm10, %v4582_v39, %v4584_v20  ;;  %v7685_v0 = vld [vmem:[%s7790_s24] sm:$0xff]   ;;  %v7696_v39 = vld [vmem:[%s7790_s24 + $0x58] sm:$0xff]  }
 0x233   : > { %7047 = vmatprep.mubr.msk.bf16.mxu1 %vm2469_vm6, %v4569_v53  ;;  %v3383_v38 = vsel %vm2927_vm1, %v11613_v16, %v11611_v59  ;;  %v4587_v53 = vsel %vm4127_vm10, %v4584_v20, %v4586_v3  ;;  %vm11615_vm1 = vmmov %vm11554_vm4  ;;  %v11616_v20 = vld [vmem:[#allocation15_spill] sm:$0xff]  ;;  %v11618_v16 = vld [vmem:[#allocation26_spill] sm:$0xff] }
 0x234   : > { %v11617_v59 = vld [vmem:[#allocation27_spill] sm:$0xff]  ;;  %v11621_v3 = vld [vmem:[#allocation28_spill] sm:$0xff] }
 0x239   : > { %6934 = vmatmul.mubr.msk.bf16.vlgmr.msra.gmra.mrb[36].mxu0 %vm2469_vm6, %v11602_v25  ;;  %v4591_v25 = vsel %vm4127_vm10, %v4588_v35, %v4590_v22  ;;  %v7702_v35 = vld [vmem:[%s7790_s24 + $0x88] sm:$0xff]  }
 0x23a   : > { %6937 = vmatprep.mubr.msk.bf16.mxu0 %vm2469_vm6, %v11604_v18  ;;  %7048 = vmatmul.mubr.msk.bf16.vlgmr.msra.gmra.mrb[20].mxu1 %vm2469_vm6, %v4571_v8  ;;  %v7688_v8 = vld [vmem:[%s7790_s24 + $0x18] sm:$0xff]   ;;  %v7689_v18 = vld [vmem:[%s7790_s24 + $0x20] sm:$0xff]  }
 0x23b   : > { %7084 = vmatpush3.bf16.msra.mxu1 %v5106_v36  ;;  %7051 = vmatprep.mubr.msk.bf16.mxu1 %vm2469_vm6, %v4573_v48  ;;  %v7687_v36 = vld [vmem:[%s7790_s24 + $0x10] sm:$0xff]   ;;  %v4595_v48 = vsel %vm4127_vm10, %v4592_v27, %v4594_v28 }
 0x23c   : > { %7497 = vmatprep.subr.msk.bf16.mxu1 %vm11605_vm15, %v10397_v52  ;;  %7160 = vmatpush3.bf16.msra.mxu0 %v5760_v62  ;;  %v4593_v62 = vsel %vm4127_vm10, %v4590_v22, %v4592_v27 }
 0x241   : > { %6938 = vmatmul.mubr.msk.bf16.gmra.mrb[40].mxu0 %vm2469_vm6, %v11606_v21  ;;  %v7691_v21 = vld [vmem:[%s7790_s24 + $0x30] sm:$0xff]  }
 0x242   : > { %6941 = vmatprep.mubr.msk.bf16.mxu0 %vm2469_vm6, %v11607_v57  ;;  %7052 = vmatmul.mubr.msk.bf16.gmra.mrb[24].mxu1 %vm2469_vm6, %v4575_v51  ;;  %v4599_v51 = vsel %vm4127_vm10, %v4596_v43, %v4598_v55  ;;  %v7661_v57 = vld [vmem:[#allocation2 + $0xa0] ss:$0 sps:$4 sm:$0x33]  }
 0x243   : > { %7055 = vmatprep.mubr.msk.bf16.mxu1 %vm2469_vm6, %v4577_v10  ;;  %v7692_v10 = vld [vmem:[%s7790_s24 + $0x38] sm:$0xff]   ;;  %v4602_v2 = vrot.slane %v7661_v57, 2 }
 0x245   : > { %v4603_v61 = vsel %vm4127_vm10, %v4600_v63, %v4602_v2 }
 0x249   : > { %6942 = vmatmul.mubr.msk.bf16.gmra.mrb[44].mxu0 %vm2469_vm6, %v11608_v24  ;;  %v7694_v24 = vld [vmem:[%s7790_s24 + $0x48] sm:$0xff]  }
 0x24a   : > { %6945 = vmatprep.mubr.msk.bf16.mxu0 %vm2469_vm6, %v11609_v23  ;;  %7056 = vmatmul.mubr.msk.bf16.gmra.mrb[28].mxu1 %vm2469_vm6, %v4579_v37  ;;  %v7695_v37 = vld [vmem:[%s7790_s24 + $0x50] sm:$0xff]   ;;  %v11614_v23 = vld [vmem:[#allocation23_spill] sm:$0xff] }
 0x24b   : > { %7059 = vmatprep.mubr.msk.bf16.mxu1 %vm2469_vm6, %v4581_v32  ;;  %v5420_v32 = vsel %vm11615_vm1, %v10397_v52, 0  ;;  %v7699_v52 = vld [vmem:[%s7790_s24 + $0x70] sm:$0xff]  }
 0x251   : > { %6946 = vmatmul.mubr.msk.bf16.gmra.mrb[48].mxu0 %vm2469_vm6, %v3383_v38  ;;  %v11619_v38 = vld [vmem:[#allocation17_spill] sm:$0xff] }
 0x252   : > { %7060 = vmatmul.mubr.msk.bf16.gmra.mrb[32].mxu1 %vm2469_vm6, %v4583_v6  ;;  %7161 = vmatprep.mubr.msk.bf16.mxu0 %vm5722_vm7, %v7685_v0  ;;  %v7700_v6 = vld [vmem:[%s7790_s24 + $0x78] sm:$0xff]   ;;  %v7701_v0 = vld [vmem:[%s7790_s24 + $0x80] sm:$0xff]  }
 0x253   : > { %7063 = vmatprep.mubr.msk.bf16.mxu1 %vm2469_vm6, %v4585_v40  ;;  %v11620_v40 = vld [vmem:[#allocation29_spill] sm:$0xff] }
 0x259   : > { %7162 = vmatmul.mubr.msk.bf16.vlgmr.msra.gmra.mrb[72].mxu0 %vm5722_vm7, %v7686_v1  ;;  %v11623_v1 = vld [vmem:[#allocation35_spill] sm:$0xff] }
 0x25a   : > { %7064 = vmatmul.mubr.msk.bf16.gmra.mrb[0].mxu1 %vm2469_vm6, %v4587_v53  ;;  %7165 = vmatprep.mubr.msk.bf16.mxu0 %vm5722_vm7, %v7687_v36  ;;  %v11622_v53 = vld [vmem:[#allocation18_spill] sm:$0xff] }
 0x25b   : > { %7067 = vmatprep.mubr.msk.bf16.mxu1 %vm2469_vm6, %v4589_v46  ;;  %v11624_v46 = vld [vmem:[#allocation33_spill] sm:$0xff]  ;;  %v11625_v36 = vld [vmem:[#allocation30_spill] sm:$0xff] }
 0x261   : > { %7166 = vmatmul.mubr.msk.bf16.gmra.mrb[76].mxu0 %vm5722_vm7, %v7688_v8 }
 0x262   : > { %7068 = vmatmul.mubr.msk.bf16.gmra.mrb[4].mxu1 %vm2469_vm6, %v4591_v25  ;;  %7169 = vmatprep.mubr.msk.bf16.mxu0 %vm5722_vm7, %v7689_v18 }
 0x263   : > { %7071 = vmatprep.mubr.msk.bf16.mxu1 %vm2469_vm6, %v4593_v62 }
 0x269   : > { %7170 = vmatmul.mubr.msk.bf16.gmra.mrb[80].mxu0 %vm5722_vm7, %v7690_v19 }
 0x26a   : > { %7072 = vmatmul.mubr.msk.bf16.gmra.mrb[8].mxu1 %vm2469_vm6, %v4595_v48  ;;  %7173 = vmatprep.mubr.msk.bf16.mxu0 %vm5722_vm7, %v7691_v21 }
 0x26b   : > { %7075 = vmatprep.mubr.msk.bf16.mxu1 %vm2469_vm6, %v4597_v44 }
 0x271   : > { %7174 = vmatmul.mubr.msk.bf16.gmra.mrb[84].mxu0 %vm5722_vm7, %v7692_v10 }
 0x272   : > { %7076 = vmatmul.mubr.msk.bf16.gmra.mrb[12].mxu1 %vm2469_vm6, %v4599_v51  ;;  %7177 = vmatprep.mubr.msk.bf16.mxu0 %vm5722_vm7, %v7693_v14 }
 0x273   : > { %7079 = vmatprep.mubr.msk.bf16.mxu1 %vm2469_vm6, %v4601_v45 }
 0x279   : > { %7178 = vmatmul.mubr.msk.bf16.gmra.mrb[88].mxu0 %vm5722_vm7, %v7694_v24 }
 0x27a   : > { %7080 = vmatmul.mubr.msk.bf16.gmra.mrb[16].mxu1 %vm2469_vm6, %v4603_v61  ;;  %7181 = vmatprep.mubr.msk.bf16.mxu0 %vm5722_vm7, %v7695_v37 }
 0x27b   : > { %7085 = vmatprep.mubr.msk.bf16.mxu1 %vm2469_vm6, %v11614_v23 }
 0x281   : > { %7182 = vmatmul.mubr.msk.bf16.gmra.mrb[92].mxu0 %vm5722_vm7, %v7696_v39 }
 0x282   : > { %7086 = vmatmul.mubr.msk.bf16.vlgmr.msra.gmra.mrb[20].mxu1 %vm2469_vm6, %v11616_v20  ;;  %7185 = vmatprep.mubr.msk.bf16.mxu0 %vm5722_vm7, %v7697_v47 }
 0x283   : > { %7122 = vmatpush3.bf16.msra.mxu1 %v5420_v32  ;;  %7089 = vmatprep.mubr.msk.bf16.mxu1 %vm2469_vm6, %v11617_v59 }
 0x289   : > { %7186 = vmatmul.mubr.msk.bf16.gmra.mrb[96].mxu0 %vm5722_vm7, %v7698_v42 }
 0x28a   : > { %7090 = vmatmul.mubr.msk.bf16.gmra.mrb[24].mxu1 %vm2469_vm6, %v11618_v16  ;;  %7189 = vmatprep.mubr.msk.bf16.mxu0 %vm5722_vm7, %v7699_v52 }
 0x28b   : > { %7093 = vmatprep.mubr.msk.bf16.mxu1 %vm2469_vm6, %v11619_v38 }
 0x291   : > { %7190 = vmatmul.mubr.msk.bf16.gmra.mrb[100].mxu0 %vm5722_vm7, %v7700_v6 }
 0x292   : > { %7094 = vmatmul.mubr.msk.bf16.gmra.mrb[28].mxu1 %vm2469_vm6, %v11620_v40  ;;  %7193 = vmatprep.mubr.msk.bf16.mxu0 %vm5722_vm7, %v7701_v0 }
 0x293   : > { %7097 = vmatprep.mubr.msk.bf16.mxu1 %vm2469_vm6, %v11621_v3 }
 0x299   : > { %7194 = vmatmul.mubr.msk.bf16.gmra.mrb[104].mxu0 %vm5722_vm7, %v7702_v35 }
 0x29a   : > { %7098 = vmatmul.mubr.msk.bf16.gmra.mrb[32].mxu1 %vm2469_vm6, %v11622_v53 }
 0x29b   : > { %7101 = vmatprep.mubr.msk.bf16.mxu1 %vm2469_vm6, %v11623_v1 }
 0x2a2   : > { %7102 = vmatmul.mubr.msk.bf16.gmra.mrb[0].mxu1 %vm2469_vm6, %v11624_v46 }
 0x2a3   : > { %7105 = vmatprep.mubr.msk.bf16.mxu1 %vm2469_vm6, %v11625_v36 }
 0x2aa   : > { %7106 = vmatmul.mubr.msk.bf16.gmra.mrb[4].mxu1 %vm2469_vm6, %v10182_v34 }
 0x2ab   : > { %7109 = vmatprep.mubr.msk.bf16.mxu1 %vm2469_vm6, %v10185_v56 }
 0x2b2   : > { %7110 = vmatmul.mubr.msk.bf16.gmra.mrb[8].mxu1 %vm2469_vm6, %v10200_v41 }
 0x2b3   : > { %7113 = vmatprep.mubr.msk.bf16.mxu1 %vm2469_vm6, %v10203_v4 }
 0x2ba   : > { %7114 = vmatmul.mubr.msk.bf16.gmra.mrb[12].mxu1 %vm2469_vm6, %v10206_v11  ;;  %v11626_v11 = vld [vmem:[#allocation38_spill] sm:$0xff] }
 0x2bb   : > { %7117 = vmatprep.mubr.msk.bf16.mxu1 %vm2469_vm6, %v10221_v13 }
 0x2c2   : > { %7118 = vmatmul.mubr.msk.bf16.gmra.mrb[16].mxu1 %vm2469_vm6, %v10233_v31 }
 0x2c3   : > { %7123 = vmatprep.mubr.msk.bf16.mxu1 %vm2469_vm6, %v10216_v49 }
 0x2ca   : > { %7124 = vmatmul.mubr.msk.bf16.vlgmr.msra.gmra.mrb[20].mxu1 %vm2469_vm6, %v10224_v33 }
 0x2cb   : > { %7127 = vmatprep.mubr.msk.bf16.mxu1 %vm2469_vm6, %v10227_v12 }
 0x2d2   : > { %7128 = vmatmul.mubr.msk.bf16.gmra.mrb[24].mxu1 %vm2469_vm6, %v10230_v60  ;;  %v11627_v60 = vld [vmem:[#allocation36_spill] sm:$0xff] }
 0x2d3   : > { %7131 = vmatprep.mubr.msk.bf16.mxu1 %vm2469_vm6, %v10236_v50 }
 0x2da   : > { %7132 = vmatmul.mubr.msk.bf16.gmra.mrb[28].mxu1 %vm2469_vm6, %v10239_v15 }
 0x2db   : > { %7135 = vmatprep.mubr.msk.bf16.mxu1 %vm2469_vm6, %v10258_v30 }
 0x2e2   : > { %7136 = vmatmul.mubr.msk.bf16.gmra.mrb[32].mxu1 %vm2469_vm6, %v10267_v58  ;;  %v11632_v58 = vld [vmem:[#allocation31_spill] sm:$0xff] }
 0x2e3   : > { %7139 = vmatprep.mubr.msk.bf16.mxu1 %vm2469_vm6, %v10270_v29 }
 0x2e4   : > { %v10557_v34 = vpop.f32.mrb[52].mxu0 }
 0x2e5   : > { %v10559_v56 = vpop.f32.mrb[53].mxu0 }
 0x2e6   : > { %v10561_v41 = vpop.f32.mrb[54].mxu0 }
 0x2e7   : > { %v10563_v4 = vpop.f32.mrb[55].mxu0 }
 0x2ea   : > { %7140 = vmatmul.mubr.msk.bf16.gmra.mrb[0].mxu1 %vm2469_vm6, %v11626_v11 }
 0x2eb   : > { %7143 = vmatprep.mubr.msk.bf16.mxu1 %vm2469_vm6, %v10280_v54 }
 0x2ec   : > { %v10569_v49 = vpop.f32.mrb[56].mxu0 }
 0x2ed   : > { %v10571_v13 = vpop.f32.mrb[57].mxu0 }
 0x2ee   : > { %v10573_v33 = vpop.f32.mrb[58].mxu0 }
 0x2ef   : > { %v10575_v12 = vpop.f32.mrb[59].mxu0 }
 0x2f2   : > { %7144 = vmatmul.mubr.msk.bf16.gmra.mrb[4].mxu1 %vm2469_vm6, %v10283_v26 }
 0x2f3   : > { %7147 = vmatprep.mubr.msk.bf16.mxu1 %vm2469_vm6, %v11627_v60 }
 0x2f4   : > { %v10581_v31 = vpop.f32.mrb[60].mxu0 }
 0x2f5   : > { %11628 = vst [vmem:[#allocation40_spill] sm:$0xff] %v10581_v31  ;;  %v10583_v50 = vpop.f32.mrb[61].mxu0 }
 0x2f6   : > { %11629 = vst [vmem:[#allocation39_spill] sm:$0xff] %v10583_v50  ;;  %v10585_v15 = vpop.f32.mrb[62].mxu0 }
 0x2f7   : > { %11630 = vst [vmem:[#allocation32_spill] sm:$0xff] %v10585_v15  ;;  %v10587_v30 = vpop.f32.mrb[63].mxu0 }
 0x2f8   : > { %11631 = vst [vmem:[#allocation43_spill] sm:$0xff] %v10587_v30  ;;  %v10706_v30 = vld [vmem:[%s11020_s8] ss:$0 sm:$0xff] }
 0x2fa   : > { %7148 = vmatmul.mubr.msk.bf16.gmra.mrb[8].mxu1 %vm2469_vm6, %v10290_v7 }
 0x2fb   : > { %7151 = vmatprep.mubr.msk.bf16.mxu1 %vm2469_vm6, %v11632_v58 }
 0x2fc   : > { %v10593_v29 = vpop.f32.mrb[64].mxu0 }
 0x2fd   : > { %11633 = vst [vmem:[#allocation41_spill] sm:$0xff] %v10593_v29  ;;  %v10595_v54 = vpop.f32.mrb[65].mxu0 }
 0x2fe   : > { %11634 = vst [vmem:[#allocation34_spill] sm:$0xff] %v10595_v54  ;;  %v10597_v26 = vpop.f32.mrb[66].mxu0 }
 0x2ff   : > { %11635 = vst [vmem:[#allocation37_spill] sm:$0xff] %v10597_v26  ;;  %v10599_v22 = vpop.f32.mrb[67].mxu0 }
 0x300   : > { %11636 = vst [vmem:[#allocation44_spill] sm:$0xff] %v10599_v22 }
 0x302   : > { %7152 = vmatmul.mubr.msk.bf16.gmra.mrb[12].mxu1 %vm2469_vm6, %v10298_v9 }
 0x303   : > { %7155 = vmatprep.mubr.msk.bf16.mxu1 %vm2469_vm6, %v10301_v17 }
 0x304   : > { %v10605_v27 = vpop.f32.mrb[68].mxu0 }
 0x305   : > { %11637 = vst [vmem:[#allocation42_spill] sm:$0xff] %v10605_v27  ;;  %v10607_v7 = vpop.f32.mrb[69].mxu0 }
 0x306   : > { %11638 = vst [vmem:[#allocation45_spill] sm:$0xff] %v10607_v7  ;;  %v10609_v25 = vpop.f32.mrb[70].mxu0 }
 0x307   : > { %11639 = vst [vmem:[#allocation51_spill] sm:$0xff] %v10609_v25  ;;  %v10611_v8 = vpop.f32.mrb[71].mxu0 }
 0x308   : > { %11640 = vst [vmem:[#allocation49_spill] sm:$0xff] %v10611_v8 }
 0x30a   : > { %7156 = vmatmul.mubr.msk.bf16.gmra.mrb[16].mxu1 %vm2469_vm6, %v10304_v5 }
 0x30c   : > { %v6935_v62 = vpop.f32.mrb[36].mxu0 }
 0x30d   : > { %v3495_v18 = vpop.f32.mrb[37].mxu0 }
 0x30e   : > { %v10615_v28 = vpop.f32.mrb[38].mxu0 }
 0x30f   : > { %v10617_v43 = vpop.f32.mrb[39].mxu0 }
 0x314   : > { %v10619_v9 = vpop.f32.mrb[40].mxu0 }
 0x315   : > { %v10621_v17 = vpop.f32.mrb[41].mxu0 }
 0x316   : > { %v10623_v48 = vpop.f32.mrb[42].mxu0 }
 0x317   : > { %v10625_v19 = vpop.f32.mrb[43].mxu0 }
 0x31c   : > { %v10627_v44 = vpop.f32.mrb[44].mxu0 }
 0x31d   : > { %v10629_v21 = vpop.f32.mrb[45].mxu0 }
 0x31e   : > { %v10631_v55 = vpop.f32.mrb[46].mxu0 }
 0x31f   : > { %v10633_v5 = vpop.f32.mrb[47].mxu0 }
 0x324   : > { %v10635_v63 = vpop.f32.mrb[48].mxu0 }
 0x325   : > { %v10637_v51 = vpop.f32.mrb[49].mxu0 }
 0x326   : > { %v10639_v57 = vpop.f32.mrb[50].mxu0 }
 0x327   : > { %v10641_v10 = vpop.f32.mrb[51].mxu0 }
 0x32c   : > { %v7163_v45 = vpop.f32.mrb[72].mxu0 }
 0x32d   : > { %v5796_v14 = vpop.f32.mrb[73].mxu0 }
 0x32e   : > { %v7164_v2 = vpop.f32.mrb[74].mxu0 }
 0x32f   : > { %v5799_v61 = vpop.f32.mrb[75].mxu0  ;;  %v5949_v50 = vmul.f32 %v7164_v2, %v10706_v30 }
 0x334   : > { %v7167_v24 = vpop.f32.mrb[76].mxu0 }
 0x335   : > { %v5812_v37 = vpop.f32.mrb[77].mxu0 }
 0x336   : > { %v10643_v23 = vpop.f32.mrb[78].mxu0 }
 0x337   : > { %v10645_v32 = vpop.f32.mrb[79].mxu0 }
 0x33c   : > { %v10647_v39 = vpop.f32.mrb[80].mxu0 }
 0x33d   : > { %v10649_v20 = vpop.f32.mrb[81].mxu0 }
 0x33e   : > { %v10651_v47 = vpop.f32.mrb[82].mxu0 }
 0x33f   : > { %v10653_v59 = vpop.f32.mrb[83].mxu0 }
 0x344   : > { %v10655_v42 = vpop.f32.mrb[84].mxu0 }
 0x345   : > { %v10657_v16 = vpop.f32.mrb[85].mxu0 }
 0x346   : > { %v10659_v52 = vpop.f32.mrb[86].mxu0 }
 0x347   : > { %v10661_v38 = vpop.f32.mrb[87].mxu0 }
 0x34c   : > { %v10663_v6 = vpop.f32.mrb[88].mxu0 }
 0x34d   : > { %v10665_v40 = vpop.f32.mrb[89].mxu0 }
 0x34e   : > { %v10667_v0 = vpop.f32.mrb[90].mxu0 }
 0x34f   : > { %v10669_v3 = vpop.f32.mrb[91].mxu0 }
 0x354   : > { %v10671_v35 = vpop.f32.mrb[92].mxu0 }
 0x355   : > { %v10673_v53 = vpop.f32.mrb[93].mxu0 }
 0x356   : > { %v10675_v1 = vpop.f32.mrb[94].mxu0 }
 0x357   : > { %v10677_v46 = vpop.f32.mrb[95].mxu0 }
 0x35c   : > { %v10679_v36 = vpop.f32.mrb[96].mxu0 }
 0x35d   : > { %11641 = vst [vmem:[#allocation46_spill] sm:$0xff] %v10679_v36  ;;  %v10681_v11 = vpop.f32.mrb[97].mxu0 }
 0x35e   : > { %11642 = vst [vmem:[#allocation53_spill] sm:$0xff] %v10681_v11  ;;  %v10683_v60 = vpop.f32.mrb[98].mxu0 }
 0x35f   : > { %11643 = vst [vmem:[#allocation52_spill] sm:$0xff] %v10683_v60  ;;  %v10685_v58 = vpop.f32.mrb[99].mxu0 }
 0x360   : > { %11644 = vst [vmem:[#allocation47_spill] sm:$0xff] %v10685_v58 }
 0x364   : > { %v10687_v8 = vpop.f32.mrb[100].mxu0 }
 0x365   : > { %11645 = vst [vmem:[#allocation58_spill] sm:$0xff] %v10687_v8  ;;  %v10689_v25 = vpop.f32.mrb[101].mxu0  ;;  %v10723_v8 = vld [vmem:[%s11018_s6] ss:$0 sm:$0xff] }
 0x366   : > { %11646 = vst [vmem:[#allocation48_spill] sm:$0xff] %v10689_v25  ;;  %v10691_v7 = vpop.f32.mrb[102].mxu0  ;;  %v5948_v25 = vmul.f32 %v7163_v45, %v10706_v30 }
 0x367   : > { %11647 = vst [vmem:[#allocation50_spill] sm:$0xff] %v10691_v7  ;;  %v10693_v27 = vpop.f32.mrb[103].mxu0 }
 0x368   : > { %11648 = vst [vmem:[#allocation59_spill] sm:$0xff] %v10693_v27  ;;  %v10712_v27 = vld [vmem:[%s11021_s9] ss:$0 sm:$0xff] }
 0x369   : > { %v5991_v15 = vadd.f32 %v10712_v27, %v5948_v25 }
 0x36c   : > { %v10695_v22 = vpop.f32.mrb[104].mxu0 }
 0x36d   : > { %11649 = vst [vmem:[#allocation60_spill] sm:$0xff] %v10695_v22  ;;  %v10697_v26 = vpop.f32.mrb[105].mxu0 }
 0x36e   : > { %11650 = vst [vmem:[#allocation54_spill] sm:$0xff] %v10697_v26  ;;  %v10699_v54 = vpop.f32.mrb[106].mxu0 }
 0x36f   : > { %11651 = vst [vmem:[#allocation62_spill] sm:$0xff] %v10699_v54  ;;  %v10701_v29 = vpop.f32.mrb[107].mxu0  ;;  %v10717_v54 = vld [vmem:[%s11017_s5] ss:$0 sm:$0xff] }
 0x370   : > { %11652 = vst [vmem:[#allocation61_spill] sm:$0xff] %v10701_v29  ;;  %v5946_v29 = vmul.f32 %v10706_v30, %v5796_v14  ;;  %v5947_v14 = vmul.f32 %v10706_v30, %v5799_v61 }
 0x39d   : > { %v7125_v22 = vpop.f32.mrb[20].mxu1 }
 0x39e   : > { %v7199_v26 = vadd.f32 %v7125_v22, %v6935_v62  ;;  %v5456_v7 = vpop.f32.mrb[21].mxu1  ;;  %v5989_v22 = vadd.f32 %v10712_v27, %v5946_v29 }
 0x39f   : > { %v7200_v45 = vadd.f32 %v5456_v7, %v3495_v18  ;;  %v7126_v58 = vpop.f32.mrb[22].mxu1 }
 0x3a0   : > { %v5644_v60 = vmul.f32 %v7199_v26, %v10717_v54  ;;  %v7201_v31 = vadd.f32 %v7126_v58, %v10615_v28  ;;  %v5459_v11 = vpop.f32.mrb[23].mxu1  ;;  %v5952_v26 = vmul.f32 %v7167_v24, %v10706_v30  ;;  %v5992_v58 = vadd.f32 %v10712_v27, %v5949_v50 }
 0x3a1   : > { %v5642_v62 = vmul.f32 %v7200_v45, %v10717_v54  ;;  %v7202_v36 = vadd.f32 %v5459_v11, %v10617_v43  ;;  %v5950_v45 = vmul.f32 %v10706_v30, %v5812_v37  ;;  %v5990_v43 = vadd.f32 %v10712_v27, %v5947_v14 }
 0x3a2   : > { %v5687_v7 = vadd.f32 %v10723_v8, %v5644_v60  ;;  %v5645_v25 = vmul.f32 %v7201_v31, %v10717_v54  ;;  %v5995_v50 = vadd.f32 %v10712_v27, %v5952_v26 }
 0x3a3   : > { %v5685_v18 = vadd.f32 %v10723_v8, %v5642_v62  ;;  %v5643_v28 = vmul.f32 %v7202_v36, %v10717_v54  ;;  %v5993_v26 = vadd.f32 %v10712_v27, %v5950_v45 }
 0x3a4   : > { %v6027_v2 = vadd.f32 %v5991_v15, %v5687_v7  ;;  %v5688_v29 = vadd.f32 %v10723_v8, %v5645_v25 }
 0x3a5   : > { %v6025_v31 = vadd.f32 %v5989_v22, %v5685_v18  ;;  %v5686_v61 = vadd.f32 %v10723_v8, %v5643_v28  ;;  %v7129_v24 = vpop.f32.mrb[24].mxu1  ;;  %v5953_v22 = vmul.f32 %v10643_v23, %v10706_v30  ;;  %v5951_v23 = vmul.f32 %v10706_v30, %v10645_v32 }
 0x3a6   : > { %v6063_v36 = vmax.f32 %v6027_v2, 0.0  ;;  %v6028_v15 = vadd.f32 %v5992_v58, %v5688_v29  ;;  %v7203_v11 = vadd.f32 %v7129_v24, %v10619_v9  ;;  %v5472_v37 = vpop.f32.mrb[25].mxu1  ;;  %v5954_v24 = vmul.f32 %v10706_v30, %v10649_v20 }
 0x3a7   : > { %v6061_v60 = vmax.f32 %v6025_v31, 0.0  ;;  %v6026_v62 = vadd.f32 %v5990_v43, %v5686_v61  ;;  %v7204_v7 = vadd.f32 %v5472_v37, %v10621_v17  ;;  %v7130_v14 = vpop.f32.mrb[26].mxu1  ;;  %v5996_v32 = vadd.f32 %v10712_v27, %v5953_v22 }
 0x3a8   : > { %6099 = vst.msk [vmem:[%s10745_s12 + $0x10] sm:$0xff] %vm2469_vm6, %v6063_v36  ;;  %v6064_v25 = vmax.f32 %v6028_v15, 0.0  ;;  %v5648_v18 = vmul.f32 %v7203_v11, %v10717_v54  ;;  %v7205_v9 = vadd.f32 %v7130_v14, %v10623_v48  ;;  %v5475_v28 = vpop.f32.mrb[27].mxu1  ;;  %v5956_v48 = vmul.f32 %v10647_v39, %v10706_v30 }
 0x3a9   : > { %6097 = vst.msk [vmem:[%s10745_s12] sm:$0xff] %vm2469_vm6, %v6061_v60  ;;  %v6062_v2 = vmax.f32 %v6026_v62, 0.0  ;;  %v5646_v17 = vmul.f32 %v7204_v7, %v10717_v54  ;;  %v7206_v58 = vadd.f32 %v5475_v28, %v10625_v19  ;;  %v5994_v15 = vadd.f32 %v10712_v27, %v5951_v23 }
 0x3aa   : > { %6100 = vst.msk [vmem:[%s10745_s12 + $0x18] sm:$0xff] %vm2469_vm6, %v6064_v25  ;;  %v5691_v29 = vadd.f32 %v10723_v8, %v5648_v18  ;;  %v5649_v31 = vmul.f32 %v7205_v9, %v10717_v54  ;;  %v5999_v62 = vadd.f32 %v10712_v27, %v5956_v48  ;;  %v5957_v20 = vmul.f32 %v10651_v47, %v10706_v30 }
 0x3ab   : > { %6098 = vst.msk [vmem:[%s10745_s12 + $0x8] sm:$0xff] %vm2469_vm6, %v6062_v2  ;;  %v5689_v45 = vadd.f32 %v10723_v8, %v5646_v17  ;;  %v5647_v43 = vmul.f32 %v7206_v58, %v10717_v54  ;;  %v5997_v28 = vadd.f32 %v10712_v27, %v5954_v24  ;;  %v5955_v47 = vmul.f32 %v10706_v30, %v10653_v59 }
 0x3ac   : > { %v6031_v61 = vadd.f32 %v5995_v50, %v5691_v29  ;;  %v5692_v19 = vadd.f32 %v10723_v8, %v5649_v31  ;;  %v6000_v59 = vadd.f32 %v10712_v27, %v5957_v20 }
 0x3ad   : > { %v6029_v36 = vadd.f32 %v5993_v26, %v5689_v45  ;;  %v5690_v39 = vadd.f32 %v10723_v8, %v5647_v43  ;;  %v7133_v11 = vpop.f32.mrb[28].mxu1  ;;  %v5958_v43 = vmul.f32 %v10706_v30, %v10657_v16  ;;  %v5961_v16 = vmul.f32 %v10659_v52, %v10706_v30 }
 0x3ae   : > { %v6067_v37 = vmax.f32 %v6031_v61, 0.0  ;;  %v6032_v60 = vadd.f32 %v5996_v32, %v5692_v19  ;;  %v7207_v50 = vadd.f32 %v7133_v11, %v10627_v44  ;;  %v5488_v7 = vpop.f32.mrb[29].mxu1  ;;  %v5998_v32 = vadd.f32 %v10712_v27, %v5955_v47 }
 0x3af   : > { %v6065_v22 = vmax.f32 %v6029_v36, 0.0  ;;  %v6030_v14 = vadd.f32 %v5994_v15, %v5690_v39  ;;  %v7208_v25 = vadd.f32 %v5488_v7, %v10629_v21  ;;  %v7134_v18 = vpop.f32.mrb[30].mxu1  ;;  %v5959_v52 = vmul.f32 %v10706_v30, %v10661_v38 }
 0x3b0   : > { %6103 = vst.msk [vmem:[%s10745_s12 + $0x30] sm:$0xff] %vm2469_vm6, %v6067_v37  ;;  %v6068_v26 = vmax.f32 %v6032_v60, 0.0  ;;  %v5652_v9 = vmul.f32 %v7207_v50, %v10717_v54  ;;  %v7209_v44 = vadd.f32 %v7134_v18, %v10631_v55  ;;  %v5491_v2 = vpop.f32.mrb[31].mxu1  ;;  %v5960_v55 = vmul.f32 %v10655_v42, %v10706_v30 }
 0x3b1   : > { %6101 = vst.msk [vmem:[%s10745_s12 + $0x20] sm:$0xff] %vm2469_vm6, %v6065_v22  ;;  %v6066_v17 = vmax.f32 %v6030_v14, 0.0  ;;  %v5650_v21 = vmul.f32 %v7208_v25, %v10717_v54  ;;  %v7210_v23 = vadd.f32 %v5491_v2, %v10633_v5  ;;  %v6001_v14 = vadd.f32 %v10712_v27, %v5958_v43 }
 0x3b2   : > { %6104 = vst.msk [vmem:[%s10745_s12 + $0x38] sm:$0xff] %vm2469_vm6, %v6068_v26  ;;  %v5695_v58 = vadd.f32 %v10723_v8, %v5652_v9  ;;  %v5653_v29 = vmul.f32 %v7209_v44, %v10717_v54  ;;  %v6003_v15 = vadd.f32 %v10712_v27, %v5960_v55  ;;  %v6004_v38 = vadd.f32 %v10712_v27, %v5961_v16 }
 0x3b3   : > { %6102 = vst.msk [vmem:[%s10745_s12 + $0x28] sm:$0xff] %vm2469_vm6, %v6066_v17  ;;  %v5693_v31 = vadd.f32 %v10723_v8, %v5650_v21  ;;  %v5651_v48 = vmul.f32 %v7210_v23, %v10717_v54  ;;  %v5962_v17 = vmul.f32 %v10706_v30, %v10665_v40  ;;  %v6002_v47 = vadd.f32 %v10712_v27, %v5959_v52 }
 0x3b4   : > { %v6035_v45 = vadd.f32 %v5999_v62, %v5695_v58  ;;  %v5696_v5 = vadd.f32 %v10723_v8, %v5653_v29  ;;  %v5965_v40 = vmul.f32 %v10667_v0, %v10706_v30  ;;  %v5963_v0 = vmul.f32 %v10706_v30, %v10669_v3 }
 0x3b5   : > { %v6033_v61 = vadd.f32 %v5997_v28, %v5693_v31  ;;  %v5694_v42 = vadd.f32 %v10723_v8, %v5651_v48  ;;  %v7137_v19 = vpop.f32.mrb[32].mxu1 }
 0x3b6   : > { %v6071_v24 = vmax.f32 %v6035_v45, 0.0  ;;  %v6036_v36 = vadd.f32 %v6000_v59, %v5696_v5  ;;  %v7211_v39 = vadd.f32 %v7137_v19, %v10635_v63  ;;  %v5504_v11 = vpop.f32.mrb[33].mxu1  ;;  %v6008_v3 = vadd.f32 %v10712_v27, %v5965_v40 }
 0x3b7   : > { %v6069_v37 = vmax.f32 %v6033_v61, 0.0  ;;  %v6034_v60 = vadd.f32 %v5998_v32, %v5694_v42  ;;  %v7212_v62 = vadd.f32 %v5504_v11, %v10637_v51  ;;  %v7138_v50 = vpop.f32.mrb[34].mxu1  ;;  %v6005_v42 = vadd.f32 %v10712_v27, %v5962_v17 }
 0x3b8   : > { %6107 = vst.msk [vmem:[%s10745_s12 + $0x50] sm:$0xff] %vm2469_vm6, %v6071_v24  ;;  %v6072_v7 = vmax.f32 %v6036_v36, 0.0  ;;  %v5656_v22 = vmul.f32 %v7211_v39, %v10717_v54  ;;  %v7213_v63 = vadd.f32 %v7138_v50, %v10639_v57  ;;  %v5507_v25 = vpop.f32.mrb[35].mxu1  ;;  %v5964_v57 = vmul.f32 %v10663_v6, %v10706_v30 }
 0x3b9   : > { %6105 = vst.msk [vmem:[%s10745_s12 + $0x40] sm:$0xff] %vm2469_vm6, %v6069_v37  ;;  %v6070_v20 = vmax.f32 %v6034_v60, 0.0  ;;  %v5654_v51 = vmul.f32 %v7212_v62, %v10717_v54  ;;  %v7214_v18 = vadd.f32 %v5507_v25, %v10641_v10  ;;  %v5966_v62 = vmul.f32 %v10706_v30, %v10673_v53 }
 0x3ba   : > { %6108 = vst.msk [vmem:[%s10745_s12 + $0x58] sm:$0xff] %vm2469_vm6, %v6072_v7  ;;  %v5699_v26 = vadd.f32 %v10723_v8, %v5656_v22  ;;  %v5657_v9 = vmul.f32 %v7213_v63, %v10717_v54  ;;  %v6007_v55 = vadd.f32 %v10712_v27, %v5964_v57  ;;  %v6006_v50 = vadd.f32 %v10712_v27, %v5963_v0 }
 0x3bb   : > { %6106 = vst.msk [vmem:[%s10745_s12 + $0x48] sm:$0xff] %vm2469_vm6, %v6070_v20  ;;  %v5697_v28 = vadd.f32 %v10723_v8, %v5654_v51  ;;  %v5655_v44 = vmul.f32 %v7214_v18, %v10717_v54  ;;  %v5969_v53 = vmul.f32 %v10675_v1, %v10706_v30  ;;  %v5967_v1 = vmul.f32 %v10706_v30, %v10677_v46 }
 0x3bc   : > { %v6039_v2 = vadd.f32 %v6003_v15, %v5699_v26  ;;  %v5700_v10 = vadd.f32 %v10723_v8, %v5657_v9 }
 0x3bd   : > { %v6037_v21 = vadd.f32 %v6001_v14, %v5697_v28  ;;  %v5698_v6 = vadd.f32 %v10723_v8, %v5655_v44  ;;  %v7141_v23 = vpop.f32.mrb[0].mxu1  ;;  %v6009_v28 = vadd.f32 %v10712_v27, %v5966_v62  ;;  %v6012_v46 = vadd.f32 %v10712_v27, %v5969_v53  ;;  %v11659_v62 = vld [vmem:[#allocation47_spill] sm:$0xff]  ;;  %v11662_v53 = vld [vmem:[#allocation48_spill] sm:$0xff] }
 0x3be   : > { %v6075_v58 = vmax.f32 %v6039_v2, 0.0  ;;  %v6040_v29 = vadd.f32 %v6004_v38, %v5700_v10  ;;  %v7215_v31 = vadd.f32 %v7141_v23, %v10557_v34  ;;  %v5520_v48 = vpop.f32.mrb[1].mxu1 }
 0x3bf   : > { %v6073_v45 = vmax.f32 %v6037_v21, 0.0  ;;  %v6038_v59 = vadd.f32 %v6002_v47, %v5698_v6  ;;  %v7216_v5 = vadd.f32 %v5520_v48, %v10559_v56  ;;  %v7142_v43 = vpop.f32.mrb[2].mxu1  ;;  %v11653_v21 = vld [vmem:[#allocation46_spill] sm:$0xff] }
 0x3c0   : > { %6111 = vst.msk [vmem:[%s10745_s12 + $0x70] sm:$0xff] %vm2469_vm6, %v6075_v58  ;;  %v6076_v61 = vmax.f32 %v6040_v29, 0.0  ;;  %v5660_v32 = vmul.f32 %v7215_v31, %v10717_v54  ;;  %v7217_v34 = vadd.f32 %v7142_v43, %v10561_v41  ;;  %v5523_v19 = vpop.f32.mrb[3].mxu1  ;;  %v5968_v41 = vmul.f32 %v10671_v35, %v10706_v30  ;;  %v11654_v58 = vld [vmem:[#allocation53_spill] sm:$0xff]  ;;  %v11655_v43 = vld [vmem:[#allocation40_spill] sm:$0xff] }
 0x3c1   : > { %6109 = vst.msk [vmem:[%s10745_s12 + $0x60] sm:$0xff] %vm2469_vm6, %v6073_v45  ;;  %v6074_v24 = vmax.f32 %v6038_v59, 0.0  ;;  %v5658_v56 = vmul.f32 %v7216_v5, %v10717_v54  ;;  %v7218_v36 = vadd.f32 %v5523_v19, %v10563_v4  ;;  %v5970_v29 = vmul.f32 %v10706_v30, %v11654_v58  ;;  %v11656_v19 = vld [vmem:[#allocation39_spill] sm:$0xff] }
 0x3c2   : > { %6112 = vst.msk [vmem:[%s10745_s12 + $0x78] sm:$0xff] %vm2469_vm6, %v6076_v61  ;;  %v5703_v15 = vadd.f32 %v10723_v8, %v5660_v32  ;;  %v5661_v39 = vmul.f32 %v7217_v34, %v10717_v54  ;;  %v6011_v63 = vadd.f32 %v10712_v27, %v5968_v41  ;;  %v6010_v31 = vadd.f32 %v10712_v27, %v5967_v1  ;;  %v11663_v1 = vld [vmem:[#allocation41_spill] sm:$0xff] }
 0x3c3   : > { %6110 = vst.msk [vmem:[%s10745_s12 + $0x68] sm:$0xff] %vm2469_vm6, %v6074_v24  ;;  %v5701_v11 = vadd.f32 %v10723_v8, %v5658_v56  ;;  %v5659_v37 = vmul.f32 %v7218_v36, %v10717_v54  ;;  %v11657_v56 = vld [vmem:[#allocation52_spill] sm:$0xff]  ;;  %v6013_v41 = vadd.f32 %v10712_v27, %v5970_v29 }
 0x3c4   : > { %v6043_v60 = vadd.f32 %v6007_v55, %v5703_v15  ;;  %v5704_v4 = vadd.f32 %v10723_v8, %v5661_v39  ;;  %v5973_v0 = vmul.f32 %v11657_v56, %v10706_v30 }
 0x3c5   : > { %v6041_v16 = vadd.f32 %v6005_v42, %v5701_v11  ;;  %v5702_v35 = vadd.f32 %v10723_v8, %v5659_v37  ;;  %v7145_v7 = vpop.f32.mrb[4].mxu1  ;;  %v11658_v11 = vld [vmem:[#allocation32_spill] sm:$0xff] }
 0x3c6   : > { %v6079_v22 = vmax.f32 %v6043_v60, 0.0  ;;  %v6044_v14 = vadd.f32 %v6008_v3, %v5704_v4  ;;  %v7219_v25 = vadd.f32 %v7145_v7, %v10569_v49  ;;  %v5536_v20 = vpop.f32.mrb[5].mxu1 }
 0x3c7   : > { %v6077_v51 = vmax.f32 %v6041_v16, 0.0  ;;  %v6042_v52 = vadd.f32 %v6006_v50, %v5702_v35  ;;  %v7220_v18 = vadd.f32 %v5536_v20, %v10571_v13  ;;  %v7146_v26 = vpop.f32.mrb[6].mxu1  ;;  %v5971_v16 = vmul.f32 %v10706_v30, %v11659_v62  ;;  %v11660_v50 = vld [vmem:[#allocation43_spill] sm:$0xff] }
 0x3c8   : > { %6115 = vst.msk [vmem:[%s10745_s12 + $0x90] sm:$0xff] %vm2469_vm6, %v6079_v22  ;;  %v6080_v9 = vmax.f32 %v6044_v14, 0.0  ;;  %v5664_v57 = vmul.f32 %v7219_v25, %v10717_v54  ;;  %v7221_v49 = vadd.f32 %v7146_v26, %v10573_v33  ;;  %v5539_v44 = vpop.f32.mrb[7].mxu1  ;;  %v5972_v33 = vmul.f32 %v11653_v21, %v10706_v30  ;;  %v11661_v14 = vld [vmem:[#allocation58_spill] sm:$0xff] }
 0x3c9   : > { %6113 = vst.msk [vmem:[%s10745_s12 + $0x80] sm:$0xff] %vm2469_vm6, %v6077_v51  ;;  %v6078_v2 = vmax.f32 %v6042_v52, 0.0  ;;  %v5662_v13 = vmul.f32 %v7220_v18, %v10717_v54  ;;  %v7222_v38 = vadd.f32 %v5539_v44, %v10575_v12  ;;  %v6016_v52 = vadd.f32 %v10712_v27, %v5973_v0 }
 0x3ca   : > { %6116 = vst.msk [vmem:[%s10745_s12 + $0x98] sm:$0xff] %vm2469_vm6, %v6080_v9  ;;  %v5707_v10 = vadd.f32 %v10723_v8, %v5664_v57  ;;  %v5665_v17 = vmul.f32 %v7221_v49, %v10717_v54  ;;  %v6015_v40 = vadd.f32 %v10712_v27, %v5972_v33  ;;  %v5974_v26 = vmul.f32 %v10706_v30, %v11662_v53  ;;  %v11664_v33 = vld [vmem:[#allocation34_spill] sm:$0xff] }
 0x3cb   : > { %6114 = vst.msk [vmem:[%s10745_s12 + $0x88] sm:$0xff] %vm2469_vm6, %v6078_v2  ;;  %v5705_v47 = vadd.f32 %v10723_v8, %v5662_v13  ;;  %v5663_v6 = vmul.f32 %v7222_v38, %v10717_v54  ;;  %v6014_v57 = vadd.f32 %v10712_v27, %v5971_v16 }
 0x3cc   : > { %v6047_v23 = vadd.f32 %v6011_v63, %v5707_v10  ;;  %v5708_v12 = vadd.f32 %v10723_v8, %v5665_v17  ;;  %v5976_v63 = vmul.f32 %v11661_v14, %v10706_v30  ;;  %v6017_v29 = vadd.f32 %v10712_v27, %v5974_v26 }
 0x3cd   : > { %v6045_v55 = vadd.f32 %v6009_v28, %v5705_v47  ;;  %v5706_v48 = vadd.f32 %v10723_v8, %v5663_v6  ;;  %v7149_v45 = vpop.f32.mrb[8].mxu1  ;;  %v11665_v6 = vld [vmem:[#allocation50_spill] sm:$0xff] }
 0x3ce   : > { %v6083_v59 = vmax.f32 %v6047_v23, 0.0  ;;  %v6048_v5 = vadd.f32 %v6012_v46, %v5708_v12  ;;  %v7223_v61 = vadd.f32 %v7149_v45, %v11655_v43  ;;  %v5552_v32 = vpop.f32.mrb[9].mxu1  ;;  %v6019_v13 = vadd.f32 %v10712_v27, %v5976_v63  ;;  %v11668_v43 = vld [vmem:[#allocation44_spill] sm:$0xff]  ;;  %v11672_v63 = vld [vmem:[#allocation45_spill] sm:$0xff] }
 0x3cf   : > { %v6081_v42 = vmax.f32 %v6045_v55, 0.0  ;;  %v6046_v34 = vadd.f32 %v6010_v31, %v5706_v48  ;;  %v7224_v24 = vadd.f32 %v5552_v32, %v11656_v19  ;;  %v7150_v36 = vpop.f32.mrb[10].mxu1  ;;  %v5977_v23 = vmul.f32 %v11665_v6, %v10706_v30  ;;  %v11666_v55 = vld [vmem:[#allocation37_spill] sm:$0xff] }
 0x3d0   : > { %6119 = vst.msk [vmem:[%s10745_s12 + $0xb0] sm:$0xff] %vm2469_vm6, %v6083_v59  ;;  %v6084_v15 = vmax.f32 %v6048_v5, 0.0  ;;  %v5668_v39 = vmul.f32 %v7223_v61, %v10717_v54  ;;  %v7225_v37 = vadd.f32 %v7150_v36, %v11658_v11  ;;  %v5555_v60 = vpop.f32.mrb[11].mxu1  ;;  %v11667_v5 = vld [vmem:[#allocation59_spill] sm:$0xff] }
 0x3d1   : > { %6117 = vst.msk [vmem:[%s10745_s12 + $0xa0] sm:$0xff] %vm2469_vm6, %v6081_v42  ;;  %v6082_v3 = vmax.f32 %v6046_v34, 0.0  ;;  %v5666_v4 = vmul.f32 %v7224_v24, %v10717_v54  ;;  %v7226_v35 = vadd.f32 %v5555_v60, %v11660_v50  ;;  %v11669_v34 = vld [vmem:[#allocation60_spill] sm:$0xff]  ;;  %v6020_v36 = vadd.f32 %v10712_v27, %v5977_v23  ;;  %v11671_v50 = vld [vmem:[#allocation42_spill] sm:$0xff] }
 0x3d2   : > { %6120 = vst.msk [vmem:[%s10745_s12 + $0xb8] sm:$0xff] %vm2469_vm6, %v6084_v15  ;;  %v5711_v7 = vadd.f32 %v10723_v8, %v5668_v39  ;;  %v5669_v22 = vmul.f32 %v7225_v37, %v10717_v54  ;;  %v5980_v19 = vmul.f32 %v11669_v34, %v10706_v30  ;;  %v11670_v39 = vld [vmem:[#allocation54_spill] sm:$0xff] }
 0x3d3   : > { %6118 = vst.msk [vmem:[%s10745_s12 + $0xa8] sm:$0xff] %vm2469_vm6, %v6082_v3  ;;  %v5709_v25 = vadd.f32 %v10723_v8, %v5666_v4  ;;  %v5667_v20 = vmul.f32 %v7226_v35, %v10717_v54 }
 0x3d4   : > { %v6051_v51 = vadd.f32 %v6015_v40, %v5711_v7  ;;  %v5712_v18 = vadd.f32 %v10723_v8, %v5669_v22  ;;  %v5975_v40 = vmul.f32 %v10706_v30, %v11667_v5  ;;  %v6023_v16 = vadd.f32 %v10712_v27, %v5980_v19 }
 0x3d5   : > { %v6049_v9 = vadd.f32 %v6013_v41, %v5709_v25  ;;  %v5710_v28 = vadd.f32 %v10723_v8, %v5667_v20  ;;  %v7153_v49 = vpop.f32.mrb[12].mxu1  ;;  %v5978_v41 = vmul.f32 %v10706_v30, %v11670_v39  ;;  %v11673_v20 = vld [vmem:[#allocation62_spill] sm:$0xff] }
 0x3d6   : > { %v6087_v44 = vmax.f32 %v6051_v51, 0.0  ;;  %v6052_v2 = vadd.f32 %v6016_v52, %v5712_v18  ;;  %v7227_v38 = vadd.f32 %v7153_v49, %v11663_v1  ;;  %v5568_v10 = vpop.f32.mrb[13].mxu1  ;;  %v6018_v37 = vadd.f32 %v10712_v27, %v5975_v40  ;;  %v11676_v1 = vld [vmem:[#allocation49_spill] sm:$0xff] }
 0x3d7   : > { %v6085_v17 = vmax.f32 %v6049_v9, 0.0  ;;  %v6050_v21 = vadd.f32 %v6014_v57, %v5710_v28  ;;  %v7228_v47 = vadd.f32 %v5568_v10, %v11664_v33  ;;  %v7154_v46 = vpop.f32.mrb[14].mxu1  ;;  %v5981_v51 = vmul.f32 %v11673_v20, %v10706_v30  ;;  %v11674_v9 = vld [vmem:[#allocation51_spill] sm:$0xff] }
 0x3d8   : > { %6123 = vst.msk [vmem:[%s10745_s12 + $0xd0] sm:$0xff] %vm2469_vm6, %v6087_v44  ;;  %v6088_v12 = vmax.f32 %v6052_v2, 0.0  ;;  %v5672_v58 = vmul.f32 %v7227_v38, %v10717_v54  ;;  %v7229_v31 = vadd.f32 %v7154_v46, %v11666_v55  ;;  %v5571_v48 = vpop.f32.mrb[15].mxu1  ;;  %v6021_v26 = vadd.f32 %v10712_v27, %v5978_v41  ;;  %v11675_v2 = vld [vmem:[#allocation61_spill] sm:$0xff] }
 0x3d9   : > { %6121 = vst.msk [vmem:[%s10745_s12 + $0xc0] sm:$0xff] %vm2469_vm6, %v6085_v17  ;;  %v6086_v45 = vmax.f32 %v6050_v21, 0.0  ;;  %v5670_v59 = vmul.f32 %v7228_v47, %v10717_v54  ;;  %v7230_v61 = vadd.f32 %v5571_v48, %v11668_v43 }
 0x3da   : > { %6124 = vst.msk [vmem:[%s10745_s12 + $0xd8] sm:$0xff] %vm2469_vm6, %v6088_v12  ;;  %v5715_v32 = vadd.f32 %v10723_v8, %v5672_v58  ;;  %v5673_v42 = vmul.f32 %v7229_v31, %v10717_v54 }
 0x3db   : > { %6122 = vst.msk [vmem:[%s10745_s12 + $0xc8] sm:$0xff] %vm2469_vm6, %v6086_v45  ;;  %v5713_v24 = vadd.f32 %v10723_v8, %v5670_v59  ;;  %v5671_v56 = vmul.f32 %v7230_v61, %v10717_v54 }
 0x3dc   : > { %v6055_v0 = vadd.f32 %v6019_v13, %v5715_v32  ;;  %v5716_v15 = vadd.f32 %v10723_v8, %v5673_v42  ;;  %v5979_v13 = vmul.f32 %v10706_v30, %v11675_v2  ;;  %v6024_v30 = vadd.f32 %v10712_v27, %v5981_v51 }
 0x3dd   : > { %v6053_v11 = vadd.f32 %v6017_v29, %v5713_v24  ;;  %v5714_v60 = vadd.f32 %v10723_v8, %v5671_v56  ;;  %v7157_v3 = vpop.f32.mrb[16].mxu1 }
 0x3de   : > { %v6091_v4 = vmax.f32 %v6055_v0, 0.0  ;;  %v6056_v62 = vadd.f32 %v6020_v36, %v5716_v15  ;;  %v7231_v35 = vadd.f32 %v7157_v3, %v11671_v50  ;;  %v5584_v7 = vpop.f32.mrb[17].mxu1  ;;  %v6022_v46 = vadd.f32 %v10712_v27, %v5979_v13 }
 0x3df   : > { %v6089_v22 = vmax.f32 %v6053_v11, 0.0  ;;  %v6054_v14 = vadd.f32 %v6018_v37, %v5714_v60  ;;  %v7232_v25 = vadd.f32 %v5584_v7, %v11672_v63  ;;  %v7158_v52 = vpop.f32.mrb[18].mxu1 }
 0x3e0   : > { %6127 = vst.msk [vmem:[%s10745_s12 + $0xf0] sm:$0xff] %vm2469_vm6, %v6091_v4  ;;  %v6092_v18 = vmax.f32 %v6056_v62, 0.0  ;;  %v5676_v53 = vmul.f32 %v7231_v35, %v10717_v54  ;;  %v7233_v57 = vadd.f32 %v7158_v52, %v11674_v9  ;;  %v5587_v28 = vpop.f32.mrb[19].mxu1 }
 0x3e1   : > { %6125 = vst.msk [vmem:[%s10745_s12 + $0xe0] sm:$0xff] %vm2469_vm6, %v6089_v22  ;;  %v6090_v49 = vmax.f32 %v6054_v14, 0.0  ;;  %v5674_v44 = vmul.f32 %v7232_v25, %v10717_v54  ;;  %v7234_v38 = vadd.f32 %v5587_v28, %v11676_v1 }
 0x3e2   : > { %6128 = vst.msk [vmem:[%s10745_s12 + $0xf8] sm:$0xff] %vm2469_vm6, %v6092_v18  ;;  %v5719_v10 = vadd.f32 %v10723_v8, %v5676_v53  ;;  %v5677_v17 = vmul.f32 %v7233_v57, %v10717_v54 }
 0x3e3   : > { %6126 = vst.msk [vmem:[%s10745_s12 + $0xe8] sm:$0xff] %vm2469_vm6, %v6090_v49  ;;  %v5717_v21 = vadd.f32 %v10723_v8, %v5674_v44  ;;  %v5675_v33 = vmul.f32 %v7234_v38, %v10717_v54 }
 0x3e4   : > { %v6059_v47 = vadd.f32 %v6023_v16, %v5719_v10  ;;  %v5720_v6 = vadd.f32 %v10723_v8, %v5677_v17 }
 0x3e5   : > { %v6057_v23 = vadd.f32 %v6021_v26, %v5717_v21  ;;  %v5718_v12 = vadd.f32 %v10723_v8, %v5675_v33 }
 0x3e6   : > { %v6095_v58 = vmax.f32 %v6059_v47, 0.0  ;;  %v6060_v29 = vadd.f32 %v6024_v30, %v5720_v6 }
 0x3e7   : > { %v6093_v55 = vmax.f32 %v6057_v23, 0.0  ;;  %v6058_v31 = vadd.f32 %v6022_v46, %v5718_v12 }
 0x3e8   : > { %6131 = vst.msk [vmem:[%s10745_s12 + $0x110] sm:$0xff] %vm2469_vm6, %v6095_v58  ;;  %v6096_v48 = vmax.f32 %v6060_v29, 0.0 }
 0x3e9   : > { %6129 = vst.msk [vmem:[%s10745_s12 + $0x100] sm:$0xff] %vm2469_vm6, %v6093_v55  ;;  %v6094_v54 = vmax.f32 %v6058_v31, 0.0 }
 0x3ea   : > { %6132 = vst.msk [vmem:[%s10745_s12 + $0x118] sm:$0xff] %vm2469_vm6, %v6096_v48 }
 0x3eb   : > { %6130 = vst.msk [vmem:[%s10745_s12 + $0x108] sm:$0xff] %vm2469_vm6, %v6094_v54 }
 0x3ec PF: > { %s20_s13 = sadd.s32 1, %s7709_s13  }
 0x3ed   : > { %p17_p4 = scmp.ge.s32.totalorder %s20_s13, 4  }
 0x3ef   :  { %19 = sbr.rel (!%p17_p4) target bundleno = 1 (0x1), region = 98 }

</bundles_post_ra>
